<compile_context>
chip_gen: v6e
topology: v6e:2x2x1
jax: 0.10.0
libtpu: 0.0.40
codegen_flags: <defaults>
</compile_context>

<pallas_src>
import math
import jax
import jax.numpy as jnp
from jax import lax
from jax.experimental import pallas as pl
from jax.experimental.pallas import tpu as pltpu

LANE = 128
SUBLANE = 8


def _round_up(x, m):
    return ((x + m - 1) // m) * m


# ---------------------------------------------------------------------------
# Fused kernel: all GRU layers (with dilation) in a single invocation.
# ---------------------------------------------------------------------------
def _make_drnn_kernel(n_layers, rates, t_pad, tb, hp, hr):
    g3 = 3 * hp

    def kernel(x_ref, *refs):
        # refs = [wih_0, whh_0, bi_0, bhn_0, ..., out_0, ..., out_{L-1}, gi_buf]
        w_refs = refs[: 4 * n_layers]
        out_refs = refs[4 * n_layers: 5 * n_layers]
        gi_ref = refs[5 * n_layers]

        for l in range(n_layers):
            wih = w_refs[4 * l][...]        # (K_in, 3Hp) f32  (VMEM resident)
            whh = w_refs[4 * l + 1][...]    # (Hr, 3Hp)  bf16  (VMEM resident)
            bi = w_refs[4 * l + 2][...]     # (1, 3Hp)  b_ih + [b_hr, b_hz, 0]
            bhn = w_refs[4 * l + 3][...]    # (1, Hp)   b_hn (inside r*(...))
            rate = rates[l]
            t_dil = t_pad // rate
            m = rate * tb                   # dilated batch rows for this layer

            # ---- input projection: one bulk matmul, OFF the serial path ----
            src = x_ref if l == 0 else out_refs[l - 1]
            inp = src[...]                                  # (T_pad, tb, K_in)
            k_in = inp.shape[-1]
            gi = jnp.dot(inp.reshape(t_pad * tb, k_in), wih,
                         preferred_element_type=jnp.float32) + bi
            gi_ref[...] = gi.reshape(t_pad, tb, g3)

            bhn_b = jnp.broadcast_to(bhn, (m, hp))          # hoisted broadcast
            out_ref = out_refs[l]

            # ---- serial recurrence over dilated steps (h stays in registers)
            def step(t, h):
                s = pl.multiple_of(t * rate, rate)
                g = gi_ref[pl.ds(s, rate)].reshape(m, g3)   # (rate*tb, 3Hp)
                gh = jnp.dot(h[:, :hr].astype(jnp.bfloat16), whh,
                             preferred_element_type=jnp.float32)
                r_g = jax.nn.sigmoid(g[:, 0:hp] + gh[:, 0:hp])
                z_g = jax.nn.sigmoid(g[:, hp:2 * hp] + gh[:, hp:2 * hp])
                n_g = jnp.tanh(g[:, 2 * hp:3 * hp]
                               + r_g * (gh[:, 2 * hp:3 * hp] + bhn_b))
                h_new = (1.0 - z_g) * n_g + z_g * h
                out_ref[pl.ds(s, rate)] = h_new.reshape(rate, tb, hp)
                return h_new

            h0 = jnp.zeros((m, hp), jnp.float32)            # init_hidden(): 0
            # T_dil is tiny here; full unroll is fine (see TODO for long T).
            lax.fori_loop(0, t_dil, step, h0, unroll=True)

    return kernel


# ---------------------------------------------------------------------------
# Wrapper: pad once, call the fused kernel, slice back to module semantics.
# ---------------------------------------------------------------------------
def drnn_forward_pallas(x, packed_params, dilations, n_hidden, n_input):
    B, T, _ = x.shape
    n_layers = len(dilations)
    max_rate = max(dilations)
    t_pad = _round_up(T, max_rate)
    bp = _round_up(B, SUBLANE)
    hp = _round_up(n_hidden, LANE)
    hr = _round_up(n_hidden, SUBLANE)
    in_p = _round_up(max(n_input, 1), LANE)

    # Single batch tile unless the padded batch is big enough that a 2-way
    # split keeps >=128 rows per tile (feeds both v7x TensorCores); on a
    # single-TC chip extra grid steps would just serialize the recurrence.
    if bp >= 256 and bp % 16 == 0:
        n_tiles, tb = 2, bp // 2
    else:
        n_tiles, tb = 1, bp

    # Time-major once, zero-pad once (time, batch*sublane, feature*lane).
    x_tm = jnp.transpose(x, (1, 0, 2)).astype(jnp.float32)
    x_tm = jnp.pad(x_tm, ((0, t_pad - T), (0, bp - B), (0, in_p - n_input)))

    flat_w = []
    in_specs = [pl.BlockSpec((t_pad, tb, in_p), lambda b: (0, b, 0))]
    for (wih, whh, bi, bhn) in packed_params:
        flat_w += [wih, whh, bi, bhn]
        # Constant index maps -> weight blocks invariant across the grid.
        in_specs += [
            pl.BlockSpec(wih.shape, lambda b: (0, 0)),
            pl.BlockSpec(whh.shape, lambda b: (0, 0)),
            pl.BlockSpec(bi.shape, lambda b: (0, 0)),
            pl.BlockSpec(bhn.shape, lambda b: (0, 0)),
        ]

    out_shape = [jax.ShapeDtypeStruct((t_pad, bp, hp), jnp.float32)
                 for _ in range(n_layers)]
    out_specs = [pl.BlockSpec((t_pad, tb, hp), lambda b: (0, b, 0))
                 for _ in range(n_layers)]

    kernel = _make_drnn_kernel(n_layers, tuple(dilations), t_pad, tb, hp, hr)

    outs = pl.pallas_call(
        kernel,
        out_shape=out_shape,
        grid_spec=pltpu.PrefetchScalarGridSpec(
            num_scalar_prefetch=0,
            grid=(n_tiles,),
            in_specs=in_specs,
            out_specs=out_specs,
            scratch_shapes=[pltpu.VMEM((t_pad, tb, 3 * hp), jnp.float32)],
        ),
        compiler_params=pltpu.CompilerParams(
            dimension_semantics=("parallel",),      # v7x: 2 TCs when n_tiles=2
            vmem_limit_bytes=32 * 1024 * 1024,      # explicit budget (v7x safe)
        ),
    )(x_tm, *flat_w)

    # Module contract: list of per-layer outputs, batch_first.
    return [jnp.transpose(o[:T, :B, :n_hidden], (1, 0, 2)) for o in outs]


# ---------------------------------------------------------------------------
# Parameter packing: PyTorch GRU layout (gate order [r|z|n]) -> transposed,
# per-gate zero-padded kernel weights.  Padded rows/cols/biases are EXACTLY
# zero (required so the padded hidden lanes stay zero through the recurrence).
# ---------------------------------------------------------------------------
def pack_gru_layer(w_ih, w_hh, b_ih, b_hh, H, hp, hr, in_p):
    I = w_ih.shape[1]

    def pad_gate_rows(w):                 # (3H, X) -> (3*hp, X)
        X = w.shape[1]
        return jnp.pad(w.reshape(3, H, X),
                       ((0, 0), (0, hp - H), (0, 0))).reshape(3 * hp, X)

    wih_t = jnp.pad(pad_gate_rows(w_ih).T, ((0, in_p - I), (0, 0)))   # (in_p, 3hp) f32
    whh_t = jnp.pad(pad_gate_rows(w_hh).T, ((0, hr - H), (0, 0)))     # (hr, 3hp)
    whh_t = whh_t.astype(jnp.bfloat16)    # bf16 operand for the serial-path MXU
    bi = jnp.pad(b_ih.reshape(3, H), ((0, 0), (0, hp - H))).reshape(3 * hp)
    bh = jnp.pad(b_hh.reshape(3, H), ((0, 0), (0, hp - H))).reshape(3 * hp)
    bi_comb = (bi + bh.at[2 * hp:].set(0.0)).reshape(1, 3 * hp)       # fold b_hr,b_hz
    b_hn = bh[2 * hp:3 * hp].reshape(1, hp)                           # keep b_hn
    return wih_t, whh_t, bi_comb, b_hn


def init_drnn_raw_params(key, n_input, n_hidden, n_layers):
    """PyTorch-style uniform(-1/sqrt(H), 1/sqrt(H)) GRU parameters."""
    k = 1.0 / math.sqrt(n_hidden)
    raw = []
    for i in range(n_layers):
        in_dim = n_input if i == 0 else n_hidden
        key, k1, k2, k3, k4 = jax.random.split(key, 5)
        raw.append(dict(
            w_ih=jax.random.uniform(k1, (3 * n_hidden, in_dim), jnp.float32, -k, k),
            w_hh=jax.random.uniform(k2, (3 * n_hidden, n_hidden), jnp.float32, -k, k),
            b_ih=jax.random.uniform(k3, (3 * n_hidden,), jnp.float32, -k, k),
            b_hh=jax.random.uniform(k4, (3 * n_hidden,), jnp.float32, -k, k)))
    return raw


def pack_drnn_params(raw, n_input, n_hidden):
    hp = _round_up(n_hidden, LANE)
    hr = _round_up(n_hidden, SUBLANE)
    in_p0 = _round_up(max(n_input, 1), LANE)
    packed = []
    for i, p in enumerate(raw):
        in_p = in_p0 if i == 0 else hp
        packed.append(pack_gru_layer(p["w_ih"], p["w_hh"], p["b_ih"], p["b_hh"],
                                     n_hidden, hp, hr, in_p))
    return packed


# ---------------------------------------------------------------------------
# Pure-JAX reference (mirrors the PyTorch DRNN forward exactly, f32).
# ---------------------------------------------------------------------------
def drnn_reference(x, raw_params, dilations, n_hidden):
    inputs = jnp.transpose(x, (1, 0, 2))
    outs = []
    H = n_hidden
    for p, rate in zip(raw_params, dilations):
        T, B, F = inputs.shape
        t_dil = -(-T // rate)
        xp = jnp.pad(inputs, ((0, t_dil * rate - T), (0, 0), (0, 0)))
        dil = xp.reshape(t_dil, rate, B, F).reshape(t_dil, rate * B, F)
        w_ih, w_hh, b_ih, b_hh = p["w_ih"], p["w_hh"], p["b_ih"], p["b_hh"]

        def cell(h, x_t):
            gi = x_t @ w_ih.T + b_ih
            gh = h @ w_hh.T + b_hh
            r = jax.nn.sigmoid(gi[:, :H] + gh[:, :H])
            z = jax.nn.sigmoid(gi[:, H:2 * H] + gh[:, H:2 * H])
            n = jnp.tanh(gi[:, 2 * H:] + r * gh[:, 2 * H:])
            h_new = (1.0 - z) * n + z * h
            return h_new, h_new

        h0 = jnp.zeros((rate * B, H), jnp.float32)
        _, dil_out = lax.scan(cell, h0, dil)
        inter = dil_out.reshape(t_dil, rate, B, H).reshape(t_dil * rate, B, H)
        inputs = inter[:T]
        outs.append(jnp.transpose(inputs, (1, 0, 2)))
    return outs


if __name__ == "__main__":
    batch, seq, n_input, n_hidden, n_layers = 2, 8, 4, 32, 3
    dilations = [2 ** i for i in range(n_layers)]          # [1, 2, 4]

    key = jax.random.PRNGKey(0)
    key, xk = jax.random.split(key)
    x = jax.random.normal(xk, (batch, seq, n_input), jnp.float32)

    raw_params = init_drnn_raw_params(key, n_input, n_hidden, n_layers)
    packed = pack_drnn_params(raw_params, n_input, n_hidden)

    fwd = jax.jit(lambda xx, pp: drnn_forward_pallas(xx, pp, dilations,
                                                     n_hidden, n_input))
    outs = fwd(x, packed)
    outs = [jax.block_until_ready(o) for o in outs]

    refs = drnn_reference(x, raw_params, dilations, n_hidden)

    for o, r in zip(outs, refs):
        assert o.shape == (batch, seq, n_hidden)
        assert bool(jnp.all(jnp.isfinite(o)))
        # bf16 hidden matmul + MXU f32 rounding -> small tolerance
        assert bool(jnp.max(jnp.abs(o - r)) < 5e-2)

    print("KERNEL_OK")
</pallas_src>

<mosaic_0001>
module attributes {stable_mosaic.version = 11 : i64} {
  func.func @kernel(%arg0: i32, %arg1: memref<8x8x128xf32, #tpu.memory_space<vmem>>, %arg2: memref<128x384xf32, #tpu.memory_space<vmem>>, %arg3: memref<32x384xbf16, #tpu.memory_space<vmem>>, %arg4: memref<1x384xf32, #tpu.memory_space<vmem>>, %arg5: memref<1x128xf32, #tpu.memory_space<vmem>>, %arg6: memref<128x384xf32, #tpu.memory_space<vmem>>, %arg7: memref<32x384xbf16, #tpu.memory_space<vmem>>, %arg8: memref<1x384xf32, #tpu.memory_space<vmem>>, %arg9: memref<1x128xf32, #tpu.memory_space<vmem>>, %arg10: memref<128x384xf32, #tpu.memory_space<vmem>>, %arg11: memref<32x384xbf16, #tpu.memory_space<vmem>>, %arg12: memref<1x384xf32, #tpu.memory_space<vmem>>, %arg13: memref<1x128xf32, #tpu.memory_space<vmem>>, %arg14: memref<8x8x128xf32, #tpu.memory_space<vmem>>, %arg15: memref<8x8x128xf32, #tpu.memory_space<vmem>>, %arg16: memref<8x8x128xf32, #tpu.memory_space<vmem>>, %arg17: memref<8x8x384xf32, #tpu.memory_space<vmem>>) attributes {dimension_semantics = [#tpu.dimension_semantics<parallel>], iteration_bounds = array<i64: 1>, scalar_prefetch = 0 : i64, scratch_operands = 1 : i64, tpu.core_type = #tpu.core_type<tc>, window_params = [{transform_indices = @transform_0, window_bounds = array<i64: 8, 8, 128>}, {pipeline_mode = #tpu.pipeline_mode<synchronous>, transform_indices = @transform_1, window_bounds = array<i64: 128, 384>}, {pipeline_mode = #tpu.pipeline_mode<synchronous>, transform_indices = @transform_2, window_bounds = array<i64: 32, 384>}, {pipeline_mode = #tpu.pipeline_mode<synchronous>, transform_indices = @transform_3, window_bounds = array<i64: 1, 384>}, {pipeline_mode = #tpu.pipeline_mode<synchronous>, transform_indices = @transform_4, window_bounds = array<i64: 1, 128>}, {pipeline_mode = #tpu.pipeline_mode<synchronous>, transform_indices = @transform_5, window_bounds = array<i64: 128, 384>}, {pipeline_mode = #tpu.pipeline_mode<synchronous>, transform_indices = @transform_6, window_bounds = array<i64: 32, 384>}, {pipeline_mode = #tpu.pipeline_mode<synchronous>, transform_indices = @transform_7, window_bounds = array<i64: 1, 384>}, {pipeline_mode = #tpu.pipeline_mode<synchronous>, transform_indices = @transform_8, window_bounds = array<i64: 1, 128>}, {pipeline_mode = #tpu.pipeline_mode<synchronous>, transform_indices = @transform_9, window_bounds = array<i64: 128, 384>}, {pipeline_mode = #tpu.pipeline_mode<synchronous>, transform_indices = @transform_10, window_bounds = array<i64: 32, 384>}, {pipeline_mode = #tpu.pipeline_mode<synchronous>, transform_indices = @transform_11, window_bounds = array<i64: 1, 384>}, {pipeline_mode = #tpu.pipeline_mode<synchronous>, transform_indices = @transform_12, window_bounds = array<i64: 1, 128>}, {transform_indices = @transform_13, window_bounds = array<i64: 8, 8, 128>}, {transform_indices = @transform_14, window_bounds = array<i64: 8, 8, 128>}, {transform_indices = @transform_15, window_bounds = array<i64: 8, 8, 128>}]} {
    %c0 = arith.constant 0 : index
    %c0_0 = arith.constant 0 : index
    %0 = vector.load %arg2[%c0, %c0_0] : memref<128x384xf32, #tpu.memory_space<vmem>>, vector<128x384xf32>
    %c0_1 = arith.constant 0 : index
    %c0_2 = arith.constant 0 : index
    %1 = vector.load %arg3[%c0_1, %c0_2] : memref<32x384xbf16, #tpu.memory_space<vmem>>, vector<32x384xbf16>
    %c0_3 = arith.constant 0 : index
    %c0_4 = arith.constant 0 : index
    %2 = vector.load %arg4[%c0_3, %c0_4] : memref<1x384xf32, #tpu.memory_space<vmem>>, vector<1x384xf32>
    %c0_5 = arith.constant 0 : index
    %c0_6 = arith.constant 0 : index
    %3 = vector.load %arg5[%c0_5, %c0_6] : memref<1x128xf32, #tpu.memory_space<vmem>>, vector<1x128xf32>
    %c0_7 = arith.constant 0 : index
    %c0_8 = arith.constant 0 : index
    %c0_9 = arith.constant 0 : index
    %4 = vector.load %arg1[%c0_7, %c0_8, %c0_9] : memref<8x8x128xf32, #tpu.memory_space<vmem>>, vector<8x8x128xf32>
    %5 = vector.shape_cast %4 : vector<8x8x128xf32> to vector<64x128xf32>
    %cst = arith.constant dense<0.000000e+00> : vector<64x384xf32>
    %6 = tpu.matmul %5, %0, %cst {dimension_numbers = #tpu.dot_dimension_numbers<[1], [0], [0], [1], [0, 0, 1, 1], [], []>} : vector<64x128xf32>, vector<128x384xf32>, vector<64x384xf32> -> vector<64x384xf32>
    %7 = vector.broadcast %2 : vector<1x384xf32> to vector<64x384xf32>
    %8 = arith.addf %6, %7 : vector<64x384xf32>
    %9 = vector.shape_cast %8 : vector<64x384xf32> to vector<8x8x384xf32>
    %c0_10 = arith.constant 0 : index
    %c0_11 = arith.constant 0 : index
    %c0_12 = arith.constant 0 : index
    %10 = vector.load %arg17[%c0_10, %c0_11, %c0_12] : memref<8x8x384xf32, #tpu.memory_space<vmem>>, vector<8x8x384xf32>
    tpu.vector_store %arg17[%c0_10, %c0_11, %c0_12], %9 {strides = array<i32>} : memref<8x8x384xf32, #tpu.memory_space<vmem>>, vector<8x8x384xf32>,
    %11 = vector.shape_cast %3 : vector<1x128xf32> to vector<1x128xf32>
    %12 = vector.broadcast %11 : vector<1x128xf32> to vector<8x128xf32>
    %cst_13 = arith.constant 0.000000e+00 : f32
    %13 = vector.broadcast %cst_13 : f32 to vector<8x128xf32>
    %c0_i32 = arith.constant 0 : i32
    %c1_i32 = arith.constant 1 : i32
    %14 = arith.muli %c0_i32, %c1_i32 : i32
    %15 = tpu.assume_multiple %14, 1 : i32
    %16 = arith.index_cast %15 : i32 to index
    %c0_14 = arith.constant 0 : index
    %c0_15 = arith.constant 0 : index
    %17 = vector.load %arg17[%16, %c0_14, %c0_15] : memref<8x8x384xf32, #tpu.memory_space<vmem>>, vector<1x8x384xf32>
    %18 = vector.shape_cast %17 : vector<1x8x384xf32> to vector<8x384xf32>
    %19 = vector.extract_strided_slice %13 {offsets = [0, 0], sizes = [8, 32], strides = [1, 1]} : vector<8x128xf32> to vector<8x32xf32>
    %20 = arith.truncf %19 : vector<8x32xf32> to vector<8x32xbf16>
    %cst_16 = arith.constant dense<0.000000e+00> : vector<8x384xf32>
    %21 = tpu.matmul %20, %1, %cst_16 {dimension_numbers = #tpu.dot_dimension_numbers<[1], [0], [0], [1], [0, 0, 1, 1], [], []>} : vector<8x32xbf16>, vector<32x384xbf16>, vector<8x384xf32> -> vector<8x384xf32>
    %22 = vector.extract_strided_slice %18 {offsets = [0, 0], sizes = [8, 128], strides = [1, 1]} : vector<8x384xf32> to vector<8x128xf32>
    %23 = vector.extract_strided_slice %21 {offsets = [0, 0], sizes = [8, 128], strides = [1, 1]} : vector<8x384xf32> to vector<8x128xf32>
    %24 = arith.addf %22, %23 : vector<8x128xf32>
    %25 = arith.negf %24 : vector<8x128xf32>
    %26 = math.exp %25 : vector<8x128xf32>
    %cst_17 = arith.constant 1.000000e+00 : f32
    %27 = vector.broadcast %cst_17 : f32 to vector<8x128xf32>
    %28 = arith.addf %27, %26 : vector<8x128xf32>
    %29 = arith.divf %27, %28 : vector<8x128xf32>
    %30 = vector.extract_strided_slice %18 {offsets = [0, 128], sizes = [8, 128], strides = [1, 1]} : vector<8x384xf32> to vector<8x128xf32>
    %31 = vector.extract_strided_slice %21 {offsets = [0, 128], sizes = [8, 128], strides = [1, 1]} : vector<8x384xf32> to vector<8x128xf32>
    %32 = arith.addf %30, %31 : vector<8x128xf32>
    %33 = arith.negf %32 : vector<8x128xf32>
    %34 = math.exp %33 : vector<8x128xf32>
    %cst_18 = arith.constant 1.000000e+00 : f32
    %35 = vector.broadcast %cst_18 : f32 to vector<8x128xf32>
    %36 = arith.addf %35, %34 : vector<8x128xf32>
    %37 = arith.divf %35, %36 : vector<8x128xf32>
    %38 = vector.extract_strided_slice %18 {offsets = [0, 256], sizes = [8, 128], strides = [1, 1]} : vector<8x384xf32> to vector<8x128xf32>
    %39 = vector.extract_strided_slice %21 {offsets = [0, 256], sizes = [8, 128], strides = [1, 1]} : vector<8x384xf32> to vector<8x128xf32>
    %40 = arith.addf %39, %12 : vector<8x128xf32>
    %41 = arith.mulf %29, %40 : vector<8x128xf32>
    %42 = arith.addf %38, %41 : vector<8x128xf32>
    %43 = math.tanh %42 : vector<8x128xf32>
    %cst_19 = arith.constant 1.000000e+00 : f32
    %44 = vector.broadcast %cst_19 : f32 to vector<8x128xf32>
    %45 = arith.subf %44, %37 : vector<8x128xf32>
    %46 = arith.mulf %45, %43 : vector<8x128xf32>
    %47 = arith.mulf %37, %13 : vector<8x128xf32>
    %48 = arith.addf %46, %47 : vector<8x128xf32>
    %49 = vector.shape_cast %48 : vector<8x128xf32> to vector<1x8x128xf32>
    %50 = arith.index_cast %15 : i32 to index
    %c0_20 = arith.constant 0 : index
    %c0_21 = arith.constant 0 : index
    %51 = vector.load %arg14[%50, %c0_20, %c0_21] : memref<8x8x128xf32, #tpu.memory_space<vmem>>, vector<1x8x128xf32>
    tpu.vector_store %arg14[%50, %c0_20, %c0_21], %49 {strides = array<i32>} : memref<8x8x128xf32, #tpu.memory_space<vmem>>, vector<1x8x128xf32>,
    %c1_i32_22 = arith.constant 1 : i32
    %c1_i32_23 = arith.constant 1 : i32
    %52 = arith.muli %c1_i32_22, %c1_i32_23 : i32
    %53 = tpu.assume_multiple %52, 1 : i32
    %54 = arith.index_cast %53 : i32 to index
    %c0_24 = arith.constant 0 : index
    %c0_25 = arith.constant 0 : index
    %55 = vector.load %arg17[%54, %c0_24, %c0_25] : memref<8x8x384xf32, #tpu.memory_space<vmem>>, vector<1x8x384xf32>
    %56 = vector.shape_cast %55 : vector<1x8x384xf32> to vector<8x384xf32>
    %57 = vector.extract_strided_slice %48 {offsets = [0, 0], sizes = [8, 32], strides = [1, 1]} : vector<8x128xf32> to vector<8x32xf32>
    %58 = arith.truncf %57 : vector<8x32xf32> to vector<8x32xbf16>
    %cst_26 = arith.constant dense<0.000000e+00> : vector<8x384xf32>
    %59 = tpu.matmul %58, %1, %cst_26 {dimension_numbers = #tpu.dot_dimension_numbers<[1], [0], [0], [1], [0, 0, 1, 1], [], []>} : vector<8x32xbf16>, vector<32x384xbf16>, vector<8x384xf32> -> vector<8x384xf32>
    %60 = vector.extract_strided_slice %56 {offsets = [0, 0], sizes = [8, 128], strides = [1, 1]} : vector<8x384xf32> to vector<8x128xf32>
    %61 = vector.extract_strided_slice %59 {offsets = [0, 0], sizes = [8, 128], strides = [1, 1]} : vector<8x384xf32> to vector<8x128xf32>
    %62 = arith.addf %60, %61 : vector<8x128xf32>
    %63 = arith.negf %62 : vector<8x128xf32>
    %64 = math.exp %63 : vector<8x128xf32>
    %cst_27 = arith.constant 1.000000e+00 : f32
    %65 = vector.broadcast %cst_27 : f32 to vector<8x128xf32>
    %66 = arith.addf %65, %64 : vector<8x128xf32>
    %67 = arith.divf %65, %66 : vector<8x128xf32>
    %68 = vector.extract_strided_slice %56 {offsets = [0, 128], sizes = [8, 128], strides = [1, 1]} : vector<8x384xf32> to vector<8x128xf32>
    %69 = vector.extract_strided_slice %59 {offsets = [0, 128], sizes = [8, 128], strides = [1, 1]} : vector<8x384xf32> to vector<8x128xf32>
    %70 = arith.addf %68, %69 : vector<8x128xf32>
    %71 = arith.negf %70 : vector<8x128xf32>
    %72 = math.exp %71 : vector<8x128xf32>
    %cst_28 = arith.constant 1.000000e+00 : f32
    %73 = vector.broadcast %cst_28 : f32 to vector<8x128xf32>
    %74 = arith.addf %73, %72 : vector<8x128xf32>
    %75 = arith.divf %73, %74 : vector<8x128xf32>
    %76 = vector.extract_strided_slice %56 {offsets = [0, 256], sizes = [8, 128], strides = [1, 1]} : vector<8x384xf32> to vector<8x128xf32>
    %77 = vector.extract_strided_slice %59 {offsets = [0, 256], sizes = [8, 128], strides = [1, 1]} : vector<8x384xf32> to vector<8x128xf32>
    %78 = arith.addf %77, %12 : vector<8x128xf32>
    %79 = arith.mulf %67, %78 : vector<8x128xf32>
    %80 = arith.addf %76, %79 : vector<8x128xf32>
    %81 = math.tanh %80 : vector<8x128xf32>
    %cst_29 = arith.constant 1.000000e+00 : f32
    %82 = vector.broadcast %cst_29 : f32 to vector<8x128xf32>
    %83 = arith.subf %82, %75 : vector<8x128xf32>
    %84 = arith.mulf %83, %81 : vector<8x128xf32>
    %85 = arith.mulf %75, %48 : vector<8x128xf32>
    %86 = arith.addf %84, %85 : vector<8x128xf32>
    %87 = vector.shape_cast %86 : vector<8x128xf32> to vector<1x8x128xf32>
    %88 = arith.index_cast %53 : i32 to index
    %c0_30 = arith.constant 0 : index
    %c0_31 = arith.constant 0 : index
    %89 = vector.load %arg14[%88, %c0_30, %c0_31] : memref<8x8x128xf32, #tpu.memory_space<vmem>>, vector<1x8x128xf32>
    tpu.vector_store %arg14[%88, %c0_30, %c0_31], %87 {strides = array<i32>} : memref<8x8x128xf32, #tpu.memory_space<vmem>>, vector<1x8x128xf32>,
    %c2_i32 = arith.constant 2 : i32
    %c1_i32_32 = arith.constant 1 : i32
    %90 = arith.muli %c2_i32, %c1_i32_32 : i32
    %91 = tpu.assume_multiple %90, 1 : i32
    %92 = arith.index_cast %91 : i32 to index
    %c0_33 = arith.constant 0 : index
    %c0_34 = arith.constant 0 : index
    %93 = vector.load %arg17[%92, %c0_33, %c0_34] : memref<8x8x384xf32, #tpu.memory_space<vmem>>, vector<1x8x384xf32>
    %94 = vector.shape_cast %93 : vector<1x8x384xf32> to vector<8x384xf32>
    %95 = vector.extract_strided_slice %86 {offsets = [0, 0], sizes = [8, 32], strides = [1, 1]} : vector<8x128xf32> to vector<8x32xf32>
    %96 = arith.truncf %95 : vector<8x32xf32> to vector<8x32xbf16>
    %cst_35 = arith.constant dense<0.000000e+00> : vector<8x384xf32>
    %97 = tpu.matmul %96, %1, %cst_35 {dimension_numbers = #tpu.dot_dimension_numbers<[1], [0], [0], [1], [0, 0, 1, 1], [], []>} : vector<8x32xbf16>, vector<32x384xbf16>, vector<8x384xf32> -> vector<8x384xf32>
    %98 = vector.extract_strided_slice %94 {offsets = [0, 0], sizes = [8, 128], strides = [1, 1]} : vector<8x384xf32> to vector<8x128xf32>
    %99 = vector.extract_strided_slice %97 {offsets = [0, 0], sizes = [8, 128], strides = [1, 1]} : vector<8x384xf32> to vector<8x128xf32>
    %100 = arith.addf %98, %99 : vector<8x128xf32>
    %101 = arith.negf %100 : vector<8x128xf32>
    %102 = math.exp %101 : vector<8x128xf32>
    %cst_36 = arith.constant 1.000000e+00 : f32
    %103 = vector.broadcast %cst_36 : f32 to vector<8x128xf32>
    %104 = arith.addf %103, %102 : vector<8x128xf32>
    %105 = arith.divf %103, %104 : vector<8x128xf32>
    %106 = vector.extract_strided_slice %94 {offsets = [0, 128], sizes = [8, 128], strides = [1, 1]} : vector<8x384xf32> to vector<8x128xf32>
    %107 = vector.extract_strided_slice %97 {offsets = [0, 128], sizes = [8, 128], strides = [1, 1]} : vector<8x384xf32> to vector<8x128xf32>
    %108 = arith.addf %106, %107 : vector<8x128xf32>
    %109 = arith.negf %108 : vector<8x128xf32>
    %110 = math.exp %109 : vector<8x128xf32>
    %cst_37 = arith.constant 1.000000e+00 : f32
    %111 = vector.broadcast %cst_37 : f32 to vector<8x128xf32>
    %112 = arith.addf %111, %110 : vector<8x128xf32>
    %113 = arith.divf %111, %112 : vector<8x128xf32>
    %114 = vector.extract_strided_slice %94 {offsets = [0, 256], sizes = [8, 128], strides = [1, 1]} : vector<8x384xf32> to vector<8x128xf32>
    %115 = vector.extract_strided_slice %97 {offsets = [0, 256], sizes = [8, 128], strides = [1, 1]} : vector<8x384xf32> to vector<8x128xf32>
    %116 = arith.addf %115, %12 : vector<8x128xf32>
    %117 = arith.mulf %105, %116 : vector<8x128xf32>
    %118 = arith.addf %114, %117 : vector<8x128xf32>
    %119 = math.tanh %118 : vector<8x128xf32>
    %cst_38 = arith.constant 1.000000e+00 : f32
    %120 = vector.broadcast %cst_38 : f32 to vector<8x128xf32>
    %121 = arith.subf %120, %113 : vector<8x128xf32>
    %122 = arith.mulf %121, %119 : vector<8x128xf32>
    %123 = arith.mulf %113, %86 : vector<8x128xf32>
    %124 = arith.addf %122, %123 : vector<8x128xf32>
    %125 = vector.shape_cast %124 : vector<8x128xf32> to vector<1x8x128xf32>
    %126 = arith.index_cast %91 : i32 to index
    %c0_39 = arith.constant 0 : index
    %c0_40 = arith.constant 0 : index
    %127 = vector.load %arg14[%126, %c0_39, %c0_40] : memref<8x8x128xf32, #tpu.memory_space<vmem>>, vector<1x8x128xf32>
    tpu.vector_store %arg14[%126, %c0_39, %c0_40], %125 {strides = array<i32>} : memref<8x8x128xf32, #tpu.memory_space<vmem>>, vector<1x8x128xf32>,
    %c3_i32 = arith.constant 3 : i32
    %c1_i32_41 = arith.constant 1 : i32
    %128 = arith.muli %c3_i32, %c1_i32_41 : i32
    %129 = tpu.assume_multiple %128, 1 : i32
    %130 = arith.index_cast %129 : i32 to index
    %c0_42 = arith.constant 0 : index
    %c0_43 = arith.constant 0 : index
    %131 = vector.load %arg17[%130, %c0_42, %c0_43] : memref<8x8x384xf32, #tpu.memory_space<vmem>>, vector<1x8x384xf32>
    %132 = vector.shape_cast %131 : vector<1x8x384xf32> to vector<8x384xf32>
    %133 = vector.extract_strided_slice %124 {offsets = [0, 0], sizes = [8, 32], strides = [1, 1]} : vector<8x128xf32> to vector<8x32xf32>
    %134 = arith.truncf %133 : vector<8x32xf32> to vector<8x32xbf16>
    %cst_44 = arith.constant dense<0.000000e+00> : vector<8x384xf32>
    %135 = tpu.matmul %134, %1, %cst_44 {dimension_numbers = #tpu.dot_dimension_numbers<[1], [0], [0], [1], [0, 0, 1, 1], [], []>} : vector<8x32xbf16>, vector<32x384xbf16>, vector<8x384xf32> -> vector<8x384xf32>
    %136 = vector.extract_strided_slice %132 {offsets = [0, 0], sizes = [8, 128], strides = [1, 1]} : vector<8x384xf32> to vector<8x128xf32>
    %137 = vector.extract_strided_slice %135 {offsets = [0, 0], sizes = [8, 128], strides = [1, 1]} : vector<8x384xf32> to vector<8x128xf32>
    %138 = arith.addf %136, %137 : vector<8x128xf32>
    %139 = arith.negf %138 : vector<8x128xf32>
    %140 = math.exp %139 : vector<8x128xf32>
    %cst_45 = arith.constant 1.000000e+00 : f32
    %141 = vector.broadcast %cst_45 : f32 to vector<8x128xf32>
    %142 = arith.addf %141, %140 : vector<8x128xf32>
    %143 = arith.divf %141, %142 : vector<8x128xf32>
    %144 = vector.extract_strided_slice %132 {offsets = [0, 128], sizes = [8, 128], strides = [1, 1]} : vector<8x384xf32> to vector<8x128xf32>
    %145 = vector.extract_strided_slice %135 {offsets = [0, 128], sizes = [8, 128], strides = [1, 1]} : vector<8x384xf32> to vector<8x128xf32>
    %146 = arith.addf %144, %145 : vector<8x128xf32>
    %147 = arith.negf %146 : vector<8x128xf32>
    %148 = math.exp %147 : vector<8x128xf32>
    %cst_46 = arith.constant 1.000000e+00 : f32
    %149 = vector.broadcast %cst_46 : f32 to vector<8x128xf32>
    %150 = arith.addf %149, %148 : vector<8x128xf32>
    %151 = arith.divf %149, %150 : vector<8x128xf32>
    %152 = vector.extract_strided_slice %132 {offsets = [0, 256], sizes = [8, 128], strides = [1, 1]} : vector<8x384xf32> to vector<8x128xf32>
    %153 = vector.extract_strided_slice %135 {offsets = [0, 256], sizes = [8, 128], strides = [1, 1]} : vector<8x384xf32> to vector<8x128xf32>
    %154 = arith.addf %153, %12 : vector<8x128xf32>
    %155 = arith.mulf %143, %154 : vector<8x128xf32>
    %156 = arith.addf %152, %155 : vector<8x128xf32>
    %157 = math.tanh %156 : vector<8x128xf32>
    %cst_47 = arith.constant 1.000000e+00 : f32
    %158 = vector.broadcast %cst_47 : f32 to vector<8x128xf32>
    %159 = arith.subf %158, %151 : vector<8x128xf32>
    %160 = arith.mulf %159, %157 : vector<8x128xf32>
    %161 = arith.mulf %151, %124 : vector<8x128xf32>
    %162 = arith.addf %160, %161 : vector<8x128xf32>
    %163 = vector.shape_cast %162 : vector<8x128xf32> to vector<1x8x128xf32>
    %164 = arith.index_cast %129 : i32 to index
    %c0_48 = arith.constant 0 : index
    %c0_49 = arith.constant 0 : index
    %165 = vector.load %arg14[%164, %c0_48, %c0_49] : memref<8x8x128xf32, #tpu.memory_space<vmem>>, vector<1x8x128xf32>
    tpu.vector_store %arg14[%164, %c0_48, %c0_49], %163 {strides = array<i32>} : memref<8x8x128xf32, #tpu.memory_space<vmem>>, vector<1x8x128xf32>,
    %c4_i32 = arith.constant 4 : i32
    %c1_i32_50 = arith.constant 1 : i32
    %166 = arith.muli %c4_i32, %c1_i32_50 : i32
    %167 = tpu.assume_multiple %166, 1 : i32
    %168 = arith.index_cast %167 : i32 to index
    %c0_51 = arith.constant 0 : index
    %c0_52 = arith.constant 0 : index
    %169 = vector.load %arg17[%168, %c0_51, %c0_52] : memref<8x8x384xf32, #tpu.memory_space<vmem>>, vector<1x8x384xf32>
    %170 = vector.shape_cast %169 : vector<1x8x384xf32> to vector<8x384xf32>
    %171 = vector.extract_strided_slice %162 {offsets = [0, 0], sizes = [8, 32], strides = [1, 1]} : vector<8x128xf32> to vector<8x32xf32>
    %172 = arith.truncf %171 : vector<8x32xf32> to vector<8x32xbf16>
    %cst_53 = arith.constant dense<0.000000e+00> : vector<8x384xf32>
    %173 = tpu.matmul %172, %1, %cst_53 {dimension_numbers = #tpu.dot_dimension_numbers<[1], [0], [0], [1], [0, 0, 1, 1], [], []>} : vector<8x32xbf16>, vector<32x384xbf16>, vector<8x384xf32> -> vector<8x384xf32>
    %174 = vector.extract_strided_slice %170 {offsets = [0, 0], sizes = [8, 128], strides = [1, 1]} : vector<8x384xf32> to vector<8x128xf32>
    %175 = vector.extract_strided_slice %173 {offsets = [0, 0], sizes = [8, 128], strides = [1, 1]} : vector<8x384xf32> to vector<8x128xf32>
    %176 = arith.addf %174, %175 : vector<8x128xf32>
    %177 = arith.negf %176 : vector<8x128xf32>
    %178 = math.exp %177 : vector<8x128xf32>
    %cst_54 = arith.constant 1.000000e+00 : f32
    %179 = vector.broadcast %cst_54 : f32 to vector<8x128xf32>
    %180 = arith.addf %179, %178 : vector<8x128xf32>
    %181 = arith.divf %179, %180 : vector<8x128xf32>
    %182 = vector.extract_strided_slice %170 {offsets = [0, 128], sizes = [8, 128], strides = [1, 1]} : vector<8x384xf32> to vector<8x128xf32>
    %183 = vector.extract_strided_slice %173 {offsets = [0, 128], sizes = [8, 128], strides = [1, 1]} : vector<8x384xf32> to vector<8x128xf32>
    %184 = arith.addf %182, %183 : vector<8x128xf32>
    %185 = arith.negf %184 : vector<8x128xf32>
    %186 = math.exp %185 : vector<8x128xf32>
    %cst_55 = arith.constant 1.000000e+00 : f32
    %187 = vector.broadcast %cst_55 : f32 to vector<8x128xf32>
    %188 = arith.addf %187, %186 : vector<8x128xf32>
    %189 = arith.divf %187, %188 : vector<8x128xf32>
    %190 = vector.extract_strided_slice %170 {offsets = [0, 256], sizes = [8, 128], strides = [1, 1]} : vector<8x384xf32> to vector<8x128xf32>
    %191 = vector.extract_strided_slice %173 {offsets = [0, 256], sizes = [8, 128], strides = [1, 1]} : vector<8x384xf32> to vector<8x128xf32>
    %192 = arith.addf %191, %12 : vector<8x128xf32>
    %193 = arith.mulf %181, %192 : vector<8x128xf32>
    %194 = arith.addf %190, %193 : vector<8x128xf32>
    %195 = math.tanh %194 : vector<8x128xf32>
    %cst_56 = arith.constant 1.000000e+00 : f32
    %196 = vector.broadcast %cst_56 : f32 to vector<8x128xf32>
    %197 = arith.subf %196, %189 : vector<8x128xf32>
    %198 = arith.mulf %197, %195 : vector<8x128xf32>
    %199 = arith.mulf %189, %162 : vector<8x128xf32>
    %200 = arith.addf %198, %199 : vector<8x128xf32>
    %201 = vector.shape_cast %200 : vector<8x128xf32> to vector<1x8x128xf32>
    %202 = arith.index_cast %167 : i32 to index
    %c0_57 = arith.constant 0 : index
    %c0_58 = arith.constant 0 : index
    %203 = vector.load %arg14[%202, %c0_57, %c0_58] : memref<8x8x128xf32, #tpu.memory_space<vmem>>, vector<1x8x128xf32>
    tpu.vector_store %arg14[%202, %c0_57, %c0_58], %201 {strides = array<i32>} : memref<8x8x128xf32, #tpu.memory_space<vmem>>, vector<1x8x128xf32>,
    %c5_i32 = arith.constant 5 : i32
    %c1_i32_59 = arith.constant 1 : i32
    %204 = arith.muli %c5_i32, %c1_i32_59 : i32
    %205 = tpu.assume_multiple %204, 1 : i32
    %206 = arith.index_cast %205 : i32 to index
    %c0_60 = arith.constant 0 : index
    %c0_61 = arith.constant 0 : index
    %207 = vector.load %arg17[%206, %c0_60, %c0_61] : memref<8x8x384xf32, #tpu.memory_space<vmem>>, vector<1x8x384xf32>
    %208 = vector.shape_cast %207 : vector<1x8x384xf32> to vector<8x384xf32>
    %209 = vector.extract_strided_slice %200 {offsets = [0, 0], sizes = [8, 32], strides = [1, 1]} : vector<8x128xf32> to vector<8x32xf32>
    %210 = arith.truncf %209 : vector<8x32xf32> to vector<8x32xbf16>
    %cst_62 = arith.constant dense<0.000000e+00> : vector<8x384xf32>
    %211 = tpu.matmul %210, %1, %cst_62 {dimension_numbers = #tpu.dot_dimension_numbers<[1], [0], [0], [1], [0, 0, 1, 1], [], []>} : vector<8x32xbf16>, vector<32x384xbf16>, vector<8x384xf32> -> vector<8x384xf32>
    %212 = vector.extract_strided_slice %208 {offsets = [0, 0], sizes = [8, 128], strides = [1, 1]} : vector<8x384xf32> to vector<8x128xf32>
    %213 = vector.extract_strided_slice %211 {offsets = [0, 0], sizes = [8, 128], strides = [1, 1]} : vector<8x384xf32> to vector<8x128xf32>
    %214 = arith.addf %212, %213 : vector<8x128xf32>
    %215 = arith.negf %214 : vector<8x128xf32>
    %216 = math.exp %215 : vector<8x128xf32>
    %cst_63 = arith.constant 1.000000e+00 : f32
    %217 = vector.broadcast %cst_63 : f32 to vector<8x128xf32>
    %218 = arith.addf %217, %216 : vector<8x128xf32>
    %219 = arith.divf %217, %218 : vector<8x128xf32>
    %220 = vector.extract_strided_slice %208 {offsets = [0, 128], sizes = [8, 128], strides = [1, 1]} : vector<8x384xf32> to vector<8x128xf32>
    %221 = vector.extract_strided_slice %211 {offsets = [0, 128], sizes = [8, 128], strides = [1, 1]} : vector<8x384xf32> to vector<8x128xf32>
    %222 = arith.addf %220, %221 : vector<8x128xf32>
    %223 = arith.negf %222 : vector<8x128xf32>
    %224 = math.exp %223 : vector<8x128xf32>
    %cst_64 = arith.constant 1.000000e+00 : f32
    %225 = vector.broadcast %cst_64 : f32 to vector<8x128xf32>
    %226 = arith.addf %225, %224 : vector<8x128xf32>
    %227 = arith.divf %225, %226 : vector<8x128xf32>
    %228 = vector.extract_strided_slice %208 {offsets = [0, 256], sizes = [8, 128], strides = [1, 1]} : vector<8x384xf32> to vector<8x128xf32>
    %229 = vector.extract_strided_slice %211 {offsets = [0, 256], sizes = [8, 128], strides = [1, 1]} : vector<8x384xf32> to vector<8x128xf32>
    %230 = arith.addf %229, %12 : vector<8x128xf32>
    %231 = arith.mulf %219, %230 : vector<8x128xf32>
    %232 = arith.addf %228, %231 : vector<8x128xf32>
    %233 = math.tanh %232 : vector<8x128xf32>
    %cst_65 = arith.constant 1.000000e+00 : f32
    %234 = vector.broadcast %cst_65 : f32 to vector<8x128xf32>
    %235 = arith.subf %234, %227 : vector<8x128xf32>
    %236 = arith.mulf %235, %233 : vector<8x128xf32>
    %237 = arith.mulf %227, %200 : vector<8x128xf32>
    %238 = arith.addf %236, %237 : vector<8x128xf32>
    %239 = vector.shape_cast %238 : vector<8x128xf32> to vector<1x8x128xf32>
    %240 = arith.index_cast %205 : i32 to index
    %c0_66 = arith.constant 0 : index
    %c0_67 = arith.constant 0 : index
    %241 = vector.load %arg14[%240, %c0_66, %c0_67] : memref<8x8x128xf32, #tpu.memory_space<vmem>>, vector<1x8x128xf32>
    tpu.vector_store %arg14[%240, %c0_66, %c0_67], %239 {strides = array<i32>} : memref<8x8x128xf32, #tpu.memory_space<vmem>>, vector<1x8x128xf32>,
    %c6_i32 = arith.constant 6 : i32
    %c1_i32_68 = arith.constant 1 : i32
    %242 = arith.muli %c6_i32, %c1_i32_68 : i32
    %243 = tpu.assume_multiple %242, 1 : i32
    %244 = arith.index_cast %243 : i32 to index
    %c0_69 = arith.constant 0 : index
    %c0_70 = arith.constant 0 : index
    %245 = vector.load %arg17[%244, %c0_69, %c0_70] : memref<8x8x384xf32, #tpu.memory_space<vmem>>, vector<1x8x384xf32>
    %246 = vector.shape_cast %245 : vector<1x8x384xf32> to vector<8x384xf32>
    %247 = vector.extract_strided_slice %238 {offsets = [0, 0], sizes = [8, 32], strides = [1, 1]} : vector<8x128xf32> to vector<8x32xf32>
    %248 = arith.truncf %247 : vector<8x32xf32> to vector<8x32xbf16>
    %cst_71 = arith.constant dense<0.000000e+00> : vector<8x384xf32>
    %249 = tpu.matmul %248, %1, %cst_71 {dimension_numbers = #tpu.dot_dimension_numbers<[1], [0], [0], [1], [0, 0, 1, 1], [], []>} : vector<8x32xbf16>, vector<32x384xbf16>, vector<8x384xf32> -> vector<8x384xf32>
    %250 = vector.extract_strided_slice %246 {offsets = [0, 0], sizes = [8, 128], strides = [1, 1]} : vector<8x384xf32> to vector<8x128xf32>
    %251 = vector.extract_strided_slice %249 {offsets = [0, 0], sizes = [8, 128], strides = [1, 1]} : vector<8x384xf32> to vector<8x128xf32>
    %252 = arith.addf %250, %251 : vector<8x128xf32>
    %253 = arith.negf %252 : vector<8x128xf32>
    %254 = math.exp %253 : vector<8x128xf32>
    %cst_72 = arith.constant 1.000000e+00 : f32
    %255 = vector.broadcast %cst_72 : f32 to vector<8x128xf32>
    %256 = arith.addf %255, %254 : vector<8x128xf32>
    %257 = arith.divf %255, %256 : vector<8x128xf32>
    %258 = vector.extract_strided_slice %246 {offsets = [0, 128], sizes = [8, 128], strides = [1, 1]} : vector<8x384xf32> to vector<8x128xf32>
    %259 = vector.extract_strided_slice %249 {offsets = [0, 128], sizes = [8, 128], strides = [1, 1]} : vector<8x384xf32> to vector<8x128xf32>
    %260 = arith.addf %258, %259 : vector<8x128xf32>
    %261 = arith.negf %260 : vector<8x128xf32>
    %262 = math.exp %261 : vector<8x128xf32>
    %cst_73 = arith.constant 1.000000e+00 : f32
    %263 = vector.broadcast %cst_73 : f32 to vector<8x128xf32>
    %264 = arith.addf %263, %262 : vector<8x128xf32>
    %265 = arith.divf %263, %264 : vector<8x128xf32>
    %266 = vector.extract_strided_slice %246 {offsets = [0, 256], sizes = [8, 128], strides = [1, 1]} : vector<8x384xf32> to vector<8x128xf32>
    %267 = vector.extract_strided_slice %249 {offsets = [0, 256], sizes = [8, 128], strides = [1, 1]} : vector<8x384xf32> to vector<8x128xf32>
    %268 = arith.addf %267, %12 : vector<8x128xf32>
    %269 = arith.mulf %257, %268 : vector<8x128xf32>
    %270 = arith.addf %266, %269 : vector<8x128xf32>
    %271 = math.tanh %270 : vector<8x128xf32>
    %cst_74 = arith.constant 1.000000e+00 : f32
    %272 = vector.broadcast %cst_74 : f32 to vector<8x128xf32>
    %273 = arith.subf %272, %265 : vector<8x128xf32>
    %274 = arith.mulf %273, %271 : vector<8x128xf32>
    %275 = arith.mulf %265, %238 : vector<8x128xf32>
    %276 = arith.addf %274, %275 : vector<8x128xf32>
    %277 = vector.shape_cast %276 : vector<8x128xf32> to vector<1x8x128xf32>
    %278 = arith.index_cast %243 : i32 to index
    %c0_75 = arith.constant 0 : index
    %c0_76 = arith.constant 0 : index
    %279 = vector.load %arg14[%278, %c0_75, %c0_76] : memref<8x8x128xf32, #tpu.memory_space<vmem>>, vector<1x8x128xf32>
    tpu.vector_store %arg14[%278, %c0_75, %c0_76], %277 {strides = array<i32>} : memref<8x8x128xf32, #tpu.memory_space<vmem>>, vector<1x8x128xf32>,
    %c7_i32 = arith.constant 7 : i32
    %c1_i32_77 = arith.constant 1 : i32
    %280 = arith.muli %c7_i32, %c1_i32_77 : i32
    %281 = tpu.assume_multiple %280, 1 : i32
    %282 = arith.index_cast %281 : i32 to index
    %c0_78 = arith.constant 0 : index
    %c0_79 = arith.constant 0 : index
    %283 = vector.load %arg17[%282, %c0_78, %c0_79] : memref<8x8x384xf32, #tpu.memory_space<vmem>>, vector<1x8x384xf32>
    %284 = vector.shape_cast %283 : vector<1x8x384xf32> to vector<8x384xf32>
    %285 = vector.extract_strided_slice %276 {offsets = [0, 0], sizes = [8, 32], strides = [1, 1]} : vector<8x128xf32> to vector<8x32xf32>
    %286 = arith.truncf %285 : vector<8x32xf32> to vector<8x32xbf16>
    %cst_80 = arith.constant dense<0.000000e+00> : vector<8x384xf32>
    %287 = tpu.matmul %286, %1, %cst_80 {dimension_numbers = #tpu.dot_dimension_numbers<[1], [0], [0], [1], [0, 0, 1, 1], [], []>} : vector<8x32xbf16>, vector<32x384xbf16>, vector<8x384xf32> -> vector<8x384xf32>
    %288 = vector.extract_strided_slice %284 {offsets = [0, 0], sizes = [8, 128], strides = [1, 1]} : vector<8x384xf32> to vector<8x128xf32>
    %289 = vector.extract_strided_slice %287 {offsets = [0, 0], sizes = [8, 128], strides = [1, 1]} : vector<8x384xf32> to vector<8x128xf32>
    %290 = arith.addf %288, %289 : vector<8x128xf32>
    %291 = arith.negf %290 : vector<8x128xf32>
    %292 = math.exp %291 : vector<8x128xf32>
    %cst_81 = arith.constant 1.000000e+00 : f32
    %293 = vector.broadcast %cst_81 : f32 to vector<8x128xf32>
    %294 = arith.addf %293, %292 : vector<8x128xf32>
    %295 = arith.divf %293, %294 : vector<8x128xf32>
    %296 = vector.extract_strided_slice %284 {offsets = [0, 128], sizes = [8, 128], strides = [1, 1]} : vector<8x384xf32> to vector<8x128xf32>
    %297 = vector.extract_strided_slice %287 {offsets = [0, 128], sizes = [8, 128], strides = [1, 1]} : vector<8x384xf32> to vector<8x128xf32>
    %298 = arith.addf %296, %297 : vector<8x128xf32>
    %299 = arith.negf %298 : vector<8x128xf32>
    %300 = math.exp %299 : vector<8x128xf32>
    %cst_82 = arith.constant 1.000000e+00 : f32
    %301 = vector.broadcast %cst_82 : f32 to vector<8x128xf32>
    %302 = arith.addf %301, %300 : vector<8x128xf32>
    %303 = arith.divf %301, %302 : vector<8x128xf32>
    %304 = vector.extract_strided_slice %284 {offsets = [0, 256], sizes = [8, 128], strides = [1, 1]} : vector<8x384xf32> to vector<8x128xf32>
    %305 = vector.extract_strided_slice %287 {offsets = [0, 256], sizes = [8, 128], strides = [1, 1]} : vector<8x384xf32> to vector<8x128xf32>
    %306 = arith.addf %305, %12 : vector<8x128xf32>
    %307 = arith.mulf %295, %306 : vector<8x128xf32>
    %308 = arith.addf %304, %307 : vector<8x128xf32>
    %309 = math.tanh %308 : vector<8x128xf32>
    %cst_83 = arith.constant 1.000000e+00 : f32
    %310 = vector.broadcast %cst_83 : f32 to vector<8x128xf32>
    %311 = arith.subf %310, %303 : vector<8x128xf32>
    %312 = arith.mulf %311, %309 : vector<8x128xf32>
    %313 = arith.mulf %303, %276 : vector<8x128xf32>
    %314 = arith.addf %312, %313 : vector<8x128xf32>
    %315 = vector.shape_cast %314 : vector<8x128xf32> to vector<1x8x128xf32>
    %316 = arith.index_cast %281 : i32 to index
    %c0_84 = arith.constant 0 : index
    %c0_85 = arith.constant 0 : index
    %317 = vector.load %arg14[%316, %c0_84, %c0_85] : memref<8x8x128xf32, #tpu.memory_space<vmem>>, vector<1x8x128xf32>
    tpu.vector_store %arg14[%316, %c0_84, %c0_85], %315 {strides = array<i32>} : memref<8x8x128xf32, #tpu.memory_space<vmem>>, vector<1x8x128xf32>,
    %c8_i32 = arith.constant 8 : i32
    %c0_86 = arith.constant 0 : index
    %c0_87 = arith.constant 0 : index
    %318 = vector.load %arg6[%c0_86, %c0_87] : memref<128x384xf32, #tpu.memory_space<vmem>>, vector<128x384xf32>
    %c0_88 = arith.constant 0 : index
    %c0_89 = arith.constant 0 : index
    %319 = vector.load %arg7[%c0_88, %c0_89] : memref<32x384xbf16, #tpu.memory_space<vmem>>, vector<32x384xbf16>
    %c0_90 = arith.constant 0 : index
    %c0_91 = arith.constant 0 : index
    %320 = vector.load %arg8[%c0_90, %c0_91] : memref<1x384xf32, #tpu.memory_space<vmem>>, vector<1x384xf32>
    %c0_92 = arith.constant 0 : index
    %c0_93 = arith.constant 0 : index
    %321 = vector.load %arg9[%c0_92, %c0_93] : memref<1x128xf32, #tpu.memory_space<vmem>>, vector<1x128xf32>
    %c0_94 = arith.constant 0 : index
    %c0_95 = arith.constant 0 : index
    %c0_96 = arith.constant 0 : index
    %322 = vector.load %arg14[%c0_94, %c0_95, %c0_96] : memref<8x8x128xf32, #tpu.memory_space<vmem>>, vector<8x8x128xf32>
    %323 = vector.shape_cast %322 : vector<8x8x128xf32> to vector<64x128xf32>
    %cst_97 = arith.constant dense<0.000000e+00> : vector<64x384xf32>
    %324 = tpu.matmul %323, %318, %cst_97 {dimension_numbers = #tpu.dot_dimension_numbers<[1], [0], [0], [1], [0, 0, 1, 1], [], []>} : vector<64x128xf32>, vector<128x384xf32>, vector<64x384xf32> -> vector<64x384xf32>
    %325 = vector.broadcast %320 : vector<1x384xf32> to vector<64x384xf32>
    %326 = arith.addf %324, %325 : vector<64x384xf32>
    %327 = vector.shape_cast %326 : vector<64x384xf32> to vector<8x8x384xf32>
    %c0_98 = arith.constant 0 : index
    %c0_99 = arith.constant 0 : index
    %c0_100 = arith.constant 0 : index
    %328 = vector.load %arg17[%c0_98, %c0_99, %c0_100] : memref<8x8x384xf32, #tpu.memory_space<vmem>>, vector<8x8x384xf32>
    tpu.vector_store %arg17[%c0_98, %c0_99, %c0_100], %327 {strides = array<i32>} : memref<8x8x384xf32, #tpu.memory_space<vmem>>, vector<8x8x384xf32>,
    %329 = vector.shape_cast %321 : vector<1x128xf32> to vector<1x128xf32>
    %330 = vector.broadcast %329 : vector<1x128xf32> to vector<16x128xf32>
    %cst_101 = arith.constant 0.000000e+00 : f32
    %331 = vector.broadcast %cst_101 : f32 to vector<16x128xf32>
    %c0_i32_102 = arith.constant 0 : i32
    %c2_i32_103 = arith.constant 2 : i32
    %332 = arith.muli %c0_i32_102, %c2_i32_103 : i32
    %333 = tpu.assume_multiple %332, 2 : i32
    %334 = arith.index_cast %333 : i32 to index
    %c0_104 = arith.constant 0 : index
    %c0_105 = arith.constant 0 : index
    %335 = vector.load %arg17[%334, %c0_104, %c0_105] : memref<8x8x384xf32, #tpu.memory_space<vmem>>, vector<2x8x384xf32>
    %336 = vector.shape_cast %335 : vector<2x8x384xf32> to vector<16x384xf32>
    %337 = vector.extract_strided_slice %331 {offsets = [0, 0], sizes = [16, 32], strides = [1, 1]} : vector<16x128xf32> to vector<16x32xf32>
    %338 = arith.truncf %337 : vector<16x32xf32> to vector<16x32xbf16>
    %cst_106 = arith.constant dense<0.000000e+00> : vector<16x384xf32>
    %339 = tpu.matmul %338, %319, %cst_106 {dimension_numbers = #tpu.dot_dimension_numbers<[1], [0], [0], [1], [0, 0, 1, 1], [], []>} : vector<16x32xbf16>, vector<32x384xbf16>, vector<16x384xf32> -> vector<16x384xf32>
    %340 = vector.extract_strided_slice %336 {offsets = [0, 0], sizes = [16, 128], strides = [1, 1]} : vector<16x384xf32> to vector<16x128xf32>
    %341 = vector.extract_strided_slice %339 {offsets = [0, 0], sizes = [16, 128], strides = [1, 1]} : vector<16x384xf32> to vector<16x128xf32>
    %342 = arith.addf %340, %341 : vector<16x128xf32>
    %343 = arith.negf %342 : vector<16x128xf32>
    %344 = math.exp %343 : vector<16x128xf32>
    %cst_107 = arith.constant 1.000000e+00 : f32
    %345 = vector.broadcast %cst_107 : f32 to vector<16x128xf32>
    %346 = arith.addf %345, %344 : vector<16x128xf32>
    %347 = arith.divf %345, %346 : vector<16x128xf32>
    %348 = vector.extract_strided_slice %336 {offsets = [0, 128], sizes = [16, 128], strides = [1, 1]} : vector<16x384xf32> to vector<16x128xf32>
    %349 = vector.extract_strided_slice %339 {offsets = [0, 128], sizes = [16, 128], strides = [1, 1]} : vector<16x384xf32> to vector<16x128xf32>
    %350 = arith.addf %348, %349 : vector<16x128xf32>
    %351 = arith.negf %350 : vector<16x128xf32>
    %352 = math.exp %351 : vector<16x128xf32>
    %cst_108 = arith.constant 1.000000e+00 : f32
    %353 = vector.broadcast %cst_108 : f32 to vector<16x128xf32>
    %354 = arith.addf %353, %352 : vector<16x128xf32>
    %355 = arith.divf %353, %354 : vector<16x128xf32>
    %356 = vector.extract_strided_slice %336 {offsets = [0, 256], sizes = [16, 128], strides = [1, 1]} : vector<16x384xf32> to vector<16x128xf32>
    %357 = vector.extract_strided_slice %339 {offsets = [0, 256], sizes = [16, 128], strides = [1, 1]} : vector<16x384xf32> to vector<16x128xf32>
    %358 = arith.addf %357, %330 : vector<16x128xf32>
    %359 = arith.mulf %347, %358 : vector<16x128xf32>
    %360 = arith.addf %356, %359 : vector<16x128xf32>
    %361 = math.tanh %360 : vector<16x128xf32>
    %cst_109 = arith.constant 1.000000e+00 : f32
    %362 = vector.broadcast %cst_109 : f32 to vector<16x128xf32>
    %363 = arith.subf %362, %355 : vector<16x128xf32>
    %364 = arith.mulf %363, %361 : vector<16x128xf32>
    %365 = arith.mulf %355, %331 : vector<16x128xf32>
    %366 = arith.addf %364, %365 : vector<16x128xf32>
    %367 = vector.shape_cast %366 : vector<16x128xf32> to vector<2x8x128xf32>
    %368 = arith.index_cast %333 : i32 to index
    %c0_110 = arith.constant 0 : index
    %c0_111 = arith.constant 0 : index
    %369 = vector.load %arg15[%368, %c0_110, %c0_111] : memref<8x8x128xf32, #tpu.memory_space<vmem>>, vector<2x8x128xf32>
    tpu.vector_store %arg15[%368, %c0_110, %c0_111], %367 {strides = array<i32>} : memref<8x8x128xf32, #tpu.memory_space<vmem>>, vector<2x8x128xf32>,
    %c1_i32_112 = arith.constant 1 : i32
    %c2_i32_113 = arith.constant 2 : i32
    %370 = arith.muli %c1_i32_112, %c2_i32_113 : i32
    %371 = tpu.assume_multiple %370, 2 : i32
    %372 = arith.index_cast %371 : i32 to index
    %c0_114 = arith.constant 0 : index
    %c0_115 = arith.constant 0 : index
    %373 = vector.load %arg17[%372, %c0_114, %c0_115] : memref<8x8x384xf32, #tpu.memory_space<vmem>>, vector<2x8x384xf32>
    %374 = vector.shape_cast %373 : vector<2x8x384xf32> to vector<16x384xf32>
    %375 = vector.extract_strided_slice %366 {offsets = [0, 0], sizes = [16, 32], strides = [1, 1]} : vector<16x128xf32> to vector<16x32xf32>
    %376 = arith.truncf %375 : vector<16x32xf32> to vector<16x32xbf16>
    %cst_116 = arith.constant dense<0.000000e+00> : vector<16x384xf32>
    %377 = tpu.matmul %376, %319, %cst_116 {dimension_numbers = #tpu.dot_dimension_numbers<[1], [0], [0], [1], [0, 0, 1, 1], [], []>} : vector<16x32xbf16>, vector<32x384xbf16>, vector<16x384xf32> -> vector<16x384xf32>
    %378 = vector.extract_strided_slice %374 {offsets = [0, 0], sizes = [16, 128], strides = [1, 1]} : vector<16x384xf32> to vector<16x128xf32>
    %379 = vector.extract_strided_slice %377 {offsets = [0, 0], sizes = [16, 128], strides = [1, 1]} : vector<16x384xf32> to vector<16x128xf32>
    %380 = arith.addf %378, %379 : vector<16x128xf32>
    %381 = arith.negf %380 : vector<16x128xf32>
    %382 = math.exp %381 : vector<16x128xf32>
    %cst_117 = arith.constant 1.000000e+00 : f32
    %383 = vector.broadcast %cst_117 : f32 to vector<16x128xf32>
    %384 = arith.addf %383, %382 : vector<16x128xf32>
    %385 = arith.divf %383, %384 : vector<16x128xf32>
    %386 = vector.extract_strided_slice %374 {offsets = [0, 128], sizes = [16, 128], strides = [1, 1]} : vector<16x384xf32> to vector<16x128xf32>
    %387 = vector.extract_strided_slice %377 {offsets = [0, 128], sizes = [16, 128], strides = [1, 1]} : vector<16x384xf32> to vector<16x128xf32>
    %388 = arith.addf %386, %387 : vector<16x128xf32>
    %389 = arith.negf %388 : vector<16x128xf32>
    %390 = math.exp %389 : vector<16x128xf32>
    %cst_118 = arith.constant 1.000000e+00 : f32
    %391 = vector.broadcast %cst_118 : f32 to vector<16x128xf32>
    %392 = arith.addf %391, %390 : vector<16x128xf32>
    %393 = arith.divf %391, %392 : vector<16x128xf32>
    %394 = vector.extract_strided_slice %374 {offsets = [0, 256], sizes = [16, 128], strides = [1, 1]} : vector<16x384xf32> to vector<16x128xf32>
    %395 = vector.extract_strided_slice %377 {offsets = [0, 256], sizes = [16, 128], strides = [1, 1]} : vector<16x384xf32> to vector<16x128xf32>
    %396 = arith.addf %395, %330 : vector<16x128xf32>
    %397 = arith.mulf %385, %396 : vector<16x128xf32>
    %398 = arith.addf %394, %397 : vector<16x128xf32>
    %399 = math.tanh %398 : vector<16x128xf32>
    %cst_119 = arith.constant 1.000000e+00 : f32
    %400 = vector.broadcast %cst_119 : f32 to vector<16x128xf32>
    %401 = arith.subf %400, %393 : vector<16x128xf32>
    %402 = arith.mulf %401, %399 : vector<16x128xf32>
    %403 = arith.mulf %393, %366 : vector<16x128xf32>
    %404 = arith.addf %402, %403 : vector<16x128xf32>
    %405 = vector.shape_cast %404 : vector<16x128xf32> to vector<2x8x128xf32>
    %406 = arith.index_cast %371 : i32 to index
    %c0_120 = arith.constant 0 : index
    %c0_121 = arith.constant 0 : index
    %407 = vector.load %arg15[%406, %c0_120, %c0_121] : memref<8x8x128xf32, #tpu.memory_space<vmem>>, vector<2x8x128xf32>
    tpu.vector_store %arg15[%406, %c0_120, %c0_121], %405 {strides = array<i32>} : memref<8x8x128xf32, #tpu.memory_space<vmem>>, vector<2x8x128xf32>,
    %c2_i32_122 = arith.constant 2 : i32
    %c2_i32_123 = arith.constant 2 : i32
    %408 = arith.muli %c2_i32_122, %c2_i32_123 : i32
    %409 = tpu.assume_multiple %408, 2 : i32
    %410 = arith.index_cast %409 : i32 to index
    %c0_124 = arith.constant 0 : index
    %c0_125 = arith.constant 0 : index
    %411 = vector.load %arg17[%410, %c0_124, %c0_125] : memref<8x8x384xf32, #tpu.memory_space<vmem>>, vector<2x8x384xf32>
    %412 = vector.shape_cast %411 : vector<2x8x384xf32> to vector<16x384xf32>
    %413 = vector.extract_strided_slice %404 {offsets = [0, 0], sizes = [16, 32], strides = [1, 1]} : vector<16x128xf32> to vector<16x32xf32>
    %414 = arith.truncf %413 : vector<16x32xf32> to vector<16x32xbf16>
    %cst_126 = arith.constant dense<0.000000e+00> : vector<16x384xf32>
    %415 = tpu.matmul %414, %319, %cst_126 {dimension_numbers = #tpu.dot_dimension_numbers<[1], [0], [0], [1], [0, 0, 1, 1], [], []>} : vector<16x32xbf16>, vector<32x384xbf16>, vector<16x384xf32> -> vector<16x384xf32>
    %416 = vector.extract_strided_slice %412 {offsets = [0, 0], sizes = [16, 128], strides = [1, 1]} : vector<16x384xf32> to vector<16x128xf32>
    %417 = vector.extract_strided_slice %415 {offsets = [0, 0], sizes = [16, 128], strides = [1, 1]} : vector<16x384xf32> to vector<16x128xf32>
    %418 = arith.addf %416, %417 : vector<16x128xf32>
    %419 = arith.negf %418 : vector<16x128xf32>
    %420 = math.exp %419 : vector<16x128xf32>
    %cst_127 = arith.constant 1.000000e+00 : f32
    %421 = vector.broadcast %cst_127 : f32 to vector<16x128xf32>
    %422 = arith.addf %421, %420 : vector<16x128xf32>
    %423 = arith.divf %421, %422 : vector<16x128xf32>
    %424 = vector.extract_strided_slice %412 {offsets = [0, 128], sizes = [16, 128], strides = [1, 1]} : vector<16x384xf32> to vector<16x128xf32>
    %425 = vector.extract_strided_slice %415 {offsets = [0, 128], sizes = [16, 128], strides = [1, 1]} : vector<16x384xf32> to vector<16x128xf32>
    %426 = arith.addf %424, %425 : vector<16x128xf32>
    %427 = arith.negf %426 : vector<16x128xf32>
    %428 = math.exp %427 : vector<16x128xf32>
    %cst_128 = arith.constant 1.000000e+00 : f32
    %429 = vector.broadcast %cst_128 : f32 to vector<16x128xf32>
    %430 = arith.addf %429, %428 : vector<16x128xf32>
    %431 = arith.divf %429, %430 : vector<16x128xf32>
    %432 = vector.extract_strided_slice %412 {offsets = [0, 256], sizes = [16, 128], strides = [1, 1]} : vector<16x384xf32> to vector<16x128xf32>
    %433 = vector.extract_strided_slice %415 {offsets = [0, 256], sizes = [16, 128], strides = [1, 1]} : vector<16x384xf32> to vector<16x128xf32>
    %434 = arith.addf %433, %330 : vector<16x128xf32>
    %435 = arith.mulf %423, %434 : vector<16x128xf32>
    %436 = arith.addf %432, %435 : vector<16x128xf32>
    %437 = math.tanh %436 : vector<16x128xf32>
    %cst_129 = arith.constant 1.000000e+00 : f32
    %438 = vector.broadcast %cst_129 : f32 to vector<16x128xf32>
    %439 = arith.subf %438, %431 : vector<16x128xf32>
    %440 = arith.mulf %439, %437 : vector<16x128xf32>
    %441 = arith.mulf %431, %404 : vector<16x128xf32>
    %442 = arith.addf %440, %441 : vector<16x128xf32>
    %443 = vector.shape_cast %442 : vector<16x128xf32> to vector<2x8x128xf32>
    %444 = arith.index_cast %409 : i32 to index
    %c0_130 = arith.constant 0 : index
    %c0_131 = arith.constant 0 : index
    %445 = vector.load %arg15[%444, %c0_130, %c0_131] : memref<8x8x128xf32, #tpu.memory_space<vmem>>, vector<2x8x128xf32>
    tpu.vector_store %arg15[%444, %c0_130, %c0_131], %443 {strides = array<i32>} : memref<8x8x128xf32, #tpu.memory_space<vmem>>, vector<2x8x128xf32>,
    %c3_i32_132 = arith.constant 3 : i32
    %c2_i32_133 = arith.constant 2 : i32
    %446 = arith.muli %c3_i32_132, %c2_i32_133 : i32
    %447 = tpu.assume_multiple %446, 2 : i32
    %448 = arith.index_cast %447 : i32 to index
    %c0_134 = arith.constant 0 : index
    %c0_135 = arith.constant 0 : index
    %449 = vector.load %arg17[%448, %c0_134, %c0_135] : memref<8x8x384xf32, #tpu.memory_space<vmem>>, vector<2x8x384xf32>
    %450 = vector.shape_cast %449 : vector<2x8x384xf32> to vector<16x384xf32>
    %451 = vector.extract_strided_slice %442 {offsets = [0, 0], sizes = [16, 32], strides = [1, 1]} : vector<16x128xf32> to vector<16x32xf32>
    %452 = arith.truncf %451 : vector<16x32xf32> to vector<16x32xbf16>
    %cst_136 = arith.constant dense<0.000000e+00> : vector<16x384xf32>
    %453 = tpu.matmul %452, %319, %cst_136 {dimension_numbers = #tpu.dot_dimension_numbers<[1], [0], [0], [1], [0, 0, 1, 1], [], []>} : vector<16x32xbf16>, vector<32x384xbf16>, vector<16x384xf32> -> vector<16x384xf32>
    %454 = vector.extract_strided_slice %450 {offsets = [0, 0], sizes = [16, 128], strides = [1, 1]} : vector<16x384xf32> to vector<16x128xf32>
    %455 = vector.extract_strided_slice %453 {offsets = [0, 0], sizes = [16, 128], strides = [1, 1]} : vector<16x384xf32> to vector<16x128xf32>
    %456 = arith.addf %454, %455 : vector<16x128xf32>
    %457 = arith.negf %456 : vector<16x128xf32>
    %458 = math.exp %457 : vector<16x128xf32>
    %cst_137 = arith.constant 1.000000e+00 : f32
    %459 = vector.broadcast %cst_137 : f32 to vector<16x128xf32>
    %460 = arith.addf %459, %458 : vector<16x128xf32>
    %461 = arith.divf %459, %460 : vector<16x128xf32>
    %462 = vector.extract_strided_slice %450 {offsets = [0, 128], sizes = [16, 128], strides = [1, 1]} : vector<16x384xf32> to vector<16x128xf32>
    %463 = vector.extract_strided_slice %453 {offsets = [0, 128], sizes = [16, 128], strides = [1, 1]} : vector<16x384xf32> to vector<16x128xf32>
    %464 = arith.addf %462, %463 : vector<16x128xf32>
    %465 = arith.negf %464 : vector<16x128xf32>
    %466 = math.exp %465 : vector<16x128xf32>
    %cst_138 = arith.constant 1.000000e+00 : f32
    %467 = vector.broadcast %cst_138 : f32 to vector<16x128xf32>
    %468 = arith.addf %467, %466 : vector<16x128xf32>
    %469 = arith.divf %467, %468 : vector<16x128xf32>
    %470 = vector.extract_strided_slice %450 {offsets = [0, 256], sizes = [16, 128], strides = [1, 1]} : vector<16x384xf32> to vector<16x128xf32>
    %471 = vector.extract_strided_slice %453 {offsets = [0, 256], sizes = [16, 128], strides = [1, 1]} : vector<16x384xf32> to vector<16x128xf32>
    %472 = arith.addf %471, %330 : vector<16x128xf32>
    %473 = arith.mulf %461, %472 : vector<16x128xf32>
    %474 = arith.addf %470, %473 : vector<16x128xf32>
    %475 = math.tanh %474 : vector<16x128xf32>
    %cst_139 = arith.constant 1.000000e+00 : f32
    %476 = vector.broadcast %cst_139 : f32 to vector<16x128xf32>
    %477 = arith.subf %476, %469 : vector<16x128xf32>
    %478 = arith.mulf %477, %475 : vector<16x128xf32>
    %479 = arith.mulf %469, %442 : vector<16x128xf32>
    %480 = arith.addf %478, %479 : vector<16x128xf32>
    %481 = vector.shape_cast %480 : vector<16x128xf32> to vector<2x8x128xf32>
    %482 = arith.index_cast %447 : i32 to index
    %c0_140 = arith.constant 0 : index
    %c0_141 = arith.constant 0 : index
    %483 = vector.load %arg15[%482, %c0_140, %c0_141] : memref<8x8x128xf32, #tpu.memory_space<vmem>>, vector<2x8x128xf32>
    tpu.vector_store %arg15[%482, %c0_140, %c0_141], %481 {strides = array<i32>} : memref<8x8x128xf32, #tpu.memory_space<vmem>>, vector<2x8x128xf32>,
    %c4_i32_142 = arith.constant 4 : i32
    %c0_143 = arith.constant 0 : index
    %c0_144 = arith.constant 0 : index
    %484 = vector.load %arg10[%c0_143, %c0_144] : memref<128x384xf32, #tpu.memory_space<vmem>>, vector<128x384xf32>
    %c0_145 = arith.constant 0 : index
    %c0_146 = arith.constant 0 : index
    %485 = vector.load %arg11[%c0_145, %c0_146] : memref<32x384xbf16, #tpu.memory_space<vmem>>, vector<32x384xbf16>
    %c0_147 = arith.constant 0 : index
    %c0_148 = arith.constant 0 : index
    %486 = vector.load %arg12[%c0_147, %c0_148] : memref<1x384xf32, #tpu.memory_space<vmem>>, vector<1x384xf32>
    %c0_149 = arith.constant 0 : index
    %c0_150 = arith.constant 0 : index
    %487 = vector.load %arg13[%c0_149, %c0_150] : memref<1x128xf32, #tpu.memory_space<vmem>>, vector<1x128xf32>
    %c0_151 = arith.constant 0 : index
    %c0_152 = arith.constant 0 : index
    %c0_153 = arith.constant 0 : index
    %488 = vector.load %arg15[%c0_151, %c0_152, %c0_153] : memref<8x8x128xf32, #tpu.memory_space<vmem>>, vector<8x8x128xf32>
    %489 = vector.shape_cast %488 : vector<8x8x128xf32> to vector<64x128xf32>
    %cst_154 = arith.constant dense<0.000000e+00> : vector<64x384xf32>
    %490 = tpu.matmul %489, %484, %cst_154 {dimension_numbers = #tpu.dot_dimension_numbers<[1], [0], [0], [1], [0, 0, 1, 1], [], []>} : vector<64x128xf32>, vector<128x384xf32>, vector<64x384xf32> -> vector<64x384xf32>
    %491 = vector.broadcast %486 : vector<1x384xf32> to vector<64x384xf32>
    %492 = arith.addf %490, %491 : vector<64x384xf32>
    %493 = vector.shape_cast %492 : vector<64x384xf32> to vector<8x8x384xf32>
    %c0_155 = arith.constant 0 : index
    %c0_156 = arith.constant 0 : index
    %c0_157 = arith.constant 0 : index
    %494 = vector.load %arg17[%c0_155, %c0_156, %c0_157] : memref<8x8x384xf32, #tpu.memory_space<vmem>>, vector<8x8x384xf32>
    tpu.vector_store %arg17[%c0_155, %c0_156, %c0_157], %493 {strides = array<i32>} : memref<8x8x384xf32, #tpu.memory_space<vmem>>, vector<8x8x384xf32>,
    %495 = vector.shape_cast %487 : vector<1x128xf32> to vector<1x128xf32>
    %496 = vector.broadcast %495 : vector<1x128xf32> to vector<32x128xf32>
    %cst_158 = arith.constant 0.000000e+00 : f32
    %497 = vector.broadcast %cst_158 : f32 to vector<32x128xf32>
    %c0_i32_159 = arith.constant 0 : i32
    %c4_i32_160 = arith.constant 4 : i32
    %498 = arith.muli %c0_i32_159, %c4_i32_160 : i32
    %499 = tpu.assume_multiple %498, 4 : i32
    %500 = arith.index_cast %499 : i32 to index
    %c0_161 = arith.constant 0 : index
    %c0_162 = arith.constant 0 : index
    %501 = vector.load %arg17[%500, %c0_161, %c0_162] : memref<8x8x384xf32, #tpu.memory_space<vmem>>, vector<4x8x384xf32>
    %502 = vector.shape_cast %501 : vector<4x8x384xf32> to vector<32x384xf32>
    %503 = vector.extract_strided_slice %497 {offsets = [0, 0], sizes = [32, 32], strides = [1, 1]} : vector<32x128xf32> to vector<32x32xf32>
    %504 = arith.truncf %503 : vector<32x32xf32> to vector<32x32xbf16>
    %cst_163 = arith.constant dense<0.000000e+00> : vector<32x384xf32>
    %505 = tpu.matmul %504, %485, %cst_163 {dimension_numbers = #tpu.dot_dimension_numbers<[1], [0], [0], [1], [0, 0, 1, 1], [], []>} : vector<32x32xbf16>, vector<32x384xbf16>, vector<32x384xf32> -> vector<32x384xf32>
    %506 = vector.extract_strided_slice %502 {offsets = [0, 0], sizes = [32, 128], strides = [1, 1]} : vector<32x384xf32> to vector<32x128xf32>
    %507 = vector.extract_strided_slice %505 {offsets = [0, 0], sizes = [32, 128], strides = [1, 1]} : vector<32x384xf32> to vector<32x128xf32>
    %508 = arith.addf %506, %507 : vector<32x128xf32>
    %509 = arith.negf %508 : vector<32x128xf32>
    %510 = math.exp %509 : vector<32x128xf32>
    %cst_164 = arith.constant 1.000000e+00 : f32
    %511 = vector.broadcast %cst_164 : f32 to vector<32x128xf32>
    %512 = arith.addf %511, %510 : vector<32x128xf32>
    %513 = arith.divf %511, %512 : vector<32x128xf32>
    %514 = vector.extract_strided_slice %502 {offsets = [0, 128], sizes = [32, 128], strides = [1, 1]} : vector<32x384xf32> to vector<32x128xf32>
    %515 = vector.extract_strided_slice %505 {offsets = [0, 128], sizes = [32, 128], strides = [1, 1]} : vector<32x384xf32> to vector<32x128xf32>
    %516 = arith.addf %514, %515 : vector<32x128xf32>
    %517 = arith.negf %516 : vector<32x128xf32>
    %518 = math.exp %517 : vector<32x128xf32>
    %cst_165 = arith.constant 1.000000e+00 : f32
    %519 = vector.broadcast %cst_165 : f32 to vector<32x128xf32>
    %520 = arith.addf %519, %518 : vector<32x128xf32>
    %521 = arith.divf %519, %520 : vector<32x128xf32>
    %522 = vector.extract_strided_slice %502 {offsets = [0, 256], sizes = [32, 128], strides = [1, 1]} : vector<32x384xf32> to vector<32x128xf32>
    %523 = vector.extract_strided_slice %505 {offsets = [0, 256], sizes = [32, 128], strides = [1, 1]} : vector<32x384xf32> to vector<32x128xf32>
    %524 = arith.addf %523, %496 : vector<32x128xf32>
    %525 = arith.mulf %513, %524 : vector<32x128xf32>
    %526 = arith.addf %522, %525 : vector<32x128xf32>
    %527 = math.tanh %526 : vector<32x128xf32>
    %cst_166 = arith.constant 1.000000e+00 : f32
    %528 = vector.broadcast %cst_166 : f32 to vector<32x128xf32>
    %529 = arith.subf %528, %521 : vector<32x128xf32>
    %530 = arith.mulf %529, %527 : vector<32x128xf32>
    %531 = arith.mulf %521, %497 : vector<32x128xf32>
    %532 = arith.addf %530, %531 : vector<32x128xf32>
    %533 = vector.shape_cast %532 : vector<32x128xf32> to vector<4x8x128xf32>
    %534 = arith.index_cast %499 : i32 to index
    %c0_167 = arith.constant 0 : index
    %c0_168 = arith.constant 0 : index
    %535 = vector.load %arg16[%534, %c0_167, %c0_168] : memref<8x8x128xf32, #tpu.memory_space<vmem>>, vector<4x8x128xf32>
    tpu.vector_store %arg16[%534, %c0_167, %c0_168], %533 {strides = array<i32>} : memref<8x8x128xf32, #tpu.memory_space<vmem>>, vector<4x8x128xf32>,
    %c1_i32_169 = arith.constant 1 : i32
    %c4_i32_170 = arith.constant 4 : i32
    %536 = arith.muli %c1_i32_169, %c4_i32_170 : i32
    %537 = tpu.assume_multiple %536, 4 : i32
    %538 = arith.index_cast %537 : i32 to index
    %c0_171 = arith.constant 0 : index
    %c0_172 = arith.constant 0 : index
    %539 = vector.load %arg17[%538, %c0_171, %c0_172] : memref<8x8x384xf32, #tpu.memory_space<vmem>>, vector<4x8x384xf32>
    %540 = vector.shape_cast %539 : vector<4x8x384xf32> to vector<32x384xf32>
    %541 = vector.extract_strided_slice %532 {offsets = [0, 0], sizes = [32, 32], strides = [1, 1]} : vector<32x128xf32> to vector<32x32xf32>
    %542 = arith.truncf %541 : vector<32x32xf32> to vector<32x32xbf16>
    %cst_173 = arith.constant dense<0.000000e+00> : vector<32x384xf32>
    %543 = tpu.matmul %542, %485, %cst_173 {dimension_numbers = #tpu.dot_dimension_numbers<[1], [0], [0], [1], [0, 0, 1, 1], [], []>} : vector<32x32xbf16>, vector<32x384xbf16>, vector<32x384xf32> -> vector<32x384xf32>
    %544 = vector.extract_strided_slice %540 {offsets = [0, 0], sizes = [32, 128], strides = [1, 1]} : vector<32x384xf32> to vector<32x128xf32>
    %545 = vector.extract_strided_slice %543 {offsets = [0, 0], sizes = [32, 128], strides = [1, 1]} : vector<32x384xf32> to vector<32x128xf32>
    %546 = arith.addf %544, %545 : vector<32x128xf32>
    %547 = arith.negf %546 : vector<32x128xf32>
    %548 = math.exp %547 : vector<32x128xf32>
    %cst_174 = arith.constant 1.000000e+00 : f32
    %549 = vector.broadcast %cst_174 : f32 to vector<32x128xf32>
    %550 = arith.addf %549, %548 : vector<32x128xf32>
    %551 = arith.divf %549, %550 : vector<32x128xf32>
    %552 = vector.extract_strided_slice %540 {offsets = [0, 128], sizes = [32, 128], strides = [1, 1]} : vector<32x384xf32> to vector<32x128xf32>
    %553 = vector.extract_strided_slice %543 {offsets = [0, 128], sizes = [32, 128], strides = [1, 1]} : vector<32x384xf32> to vector<32x128xf32>
    %554 = arith.addf %552, %553 : vector<32x128xf32>
    %555 = arith.negf %554 : vector<32x128xf32>
    %556 = math.exp %555 : vector<32x128xf32>
    %cst_175 = arith.constant 1.000000e+00 : f32
    %557 = vector.broadcast %cst_175 : f32 to vector<32x128xf32>
    %558 = arith.addf %557, %556 : vector<32x128xf32>
    %559 = arith.divf %557, %558 : vector<32x128xf32>
    %560 = vector.extract_strided_slice %540 {offsets = [0, 256], sizes = [32, 128], strides = [1, 1]} : vector<32x384xf32> to vector<32x128xf32>
    %561 = vector.extract_strided_slice %543 {offsets = [0, 256], sizes = [32, 128], strides = [1, 1]} : vector<32x384xf32> to vector<32x128xf32>
    %562 = arith.addf %561, %496 : vector<32x128xf32>
    %563 = arith.mulf %551, %562 : vector<32x128xf32>
    %564 = arith.addf %560, %563 : vector<32x128xf32>
    %565 = math.tanh %564 : vector<32x128xf32>
    %cst_176 = arith.constant 1.000000e+00 : f32
    %566 = vector.broadcast %cst_176 : f32 to vector<32x128xf32>
    %567 = arith.subf %566, %559 : vector<32x128xf32>
    %568 = arith.mulf %567, %565 : vector<32x128xf32>
    %569 = arith.mulf %559, %532 : vector<32x128xf32>
    %570 = arith.addf %568, %569 : vector<32x128xf32>
    %571 = vector.shape_cast %570 : vector<32x128xf32> to vector<4x8x128xf32>
    %572 = arith.index_cast %537 : i32 to index
    %c0_177 = arith.constant 0 : index
    %c0_178 = arith.constant 0 : index
    %573 = vector.load %arg16[%572, %c0_177, %c0_178] : memref<8x8x128xf32, #tpu.memory_space<vmem>>, vector<4x8x128xf32>
    tpu.vector_store %arg16[%572, %c0_177, %c0_178], %571 {strides = array<i32>} : memref<8x8x128xf32, #tpu.memory_space<vmem>>, vector<4x8x128xf32>,
    %c2_i32_179 = arith.constant 2 : i32
    return
  }
  func.func @transform_0(%arg0: i32) -> (i32, i32, i32) {
    %c0_i32 = arith.constant 0 : i32
    %c0_i32_0 = arith.constant 0 : i32
    %c0_i32_1 = arith.constant 0 : i32
    return %c0_i32, %arg0, %c0_i32_0 : i32, i32, i32
  }
  func.func @transform_1(%arg0: i32) -> (i32, i32) {
    %c0_i32 = arith.constant 0 : i32
    %c0_i32_0 = arith.constant 0 : i32
    %c0_i32_1 = arith.constant 0 : i32
    return %c0_i32, %c0_i32_0 : i32, i32
  }
  func.func @transform_2(%arg0: i32) -> (i32, i32) {
    %c0_i32 = arith.constant 0 : i32
    %c0_i32_0 = arith.constant 0 : i32
    %c0_i32_1 = arith.constant 0 : i32
    return %c0_i32, %c0_i32_0 : i32, i32
  }
  func.func @transform_3(%arg0: i32) -> (i32, i32) {
    %c0_i32 = arith.constant 0 : i32
    %c0_i32_0 = arith.constant 0 : i32
    %c0_i32_1 = arith.constant 0 : i32
    return %c0_i32, %c0_i32_0 : i32, i32
  }
  func.func @transform_4(%arg0: i32) -> (i32, i32) {
    %c0_i32 = arith.constant 0 : i32
    %c0_i32_0 = arith.constant 0 : i32
    %c0_i32_1 = arith.constant 0 : i32
    return %c0_i32, %c0_i32_0 : i32, i32
  }
  func.func @transform_5(%arg0: i32) -> (i32, i32) {
    %c0_i32 = arith.constant 0 : i32
    %c0_i32_0 = arith.constant 0 : i32
    %c0_i32_1 = arith.constant 0 : i32
    return %c0_i32, %c0_i32_0 : i32, i32
  }
  func.func @transform_6(%arg0: i32) -> (i32, i32) {
    %c0_i32 = arith.constant 0 : i32
    %c0_i32_0 = arith.constant 0 : i32
    %c0_i32_1 = arith.constant 0 : i32
    return %c0_i32, %c0_i32_0 : i32, i32
  }
  func.func @transform_7(%arg0: i32) -> (i32, i32) {
    %c0_i32 = arith.constant 0 : i32
    %c0_i32_0 = arith.constant 0 : i32
    %c0_i32_1 = arith.constant 0 : i32
    return %c0_i32, %c0_i32_0 : i32, i32
  }
  func.func @transform_8(%arg0: i32) -> (i32, i32) {
    %c0_i32 = arith.constant 0 : i32
    %c0_i32_0 = arith.constant 0 : i32
    %c0_i32_1 = arith.constant 0 : i32
    return %c0_i32, %c0_i32_0 : i32, i32
  }
  func.func @transform_9(%arg0: i32) -> (i32, i32) {
    %c0_i32 = arith.constant 0 : i32
    %c0_i32_0 = arith.constant 0 : i32
    %c0_i32_1 = arith.constant 0 : i32
    return %c0_i32, %c0_i32_0 : i32, i32
  }
  func.func @transform_10(%arg0: i32) -> (i32, i32) {
    %c0_i32 = arith.constant 0 : i32
    %c0_i32_0 = arith.constant 0 : i32
    %c0_i32_1 = arith.constant 0 : i32
    return %c0_i32, %c0_i32_0 : i32, i32
  }
  func.func @transform_11(%arg0: i32) -> (i32, i32) {
    %c0_i32 = arith.constant 0 : i32
    %c0_i32_0 = arith.constant 0 : i32
    %c0_i32_1 = arith.constant 0 : i32
    return %c0_i32, %c0_i32_0 : i32, i32
  }
  func.func @transform_12(%arg0: i32) -> (i32, i32) {
    %c0_i32 = arith.constant 0 : i32
    %c0_i32_0 = arith.constant 0 : i32
    %c0_i32_1 = arith.constant 0 : i32
    return %c0_i32, %c0_i32_0 : i32, i32
  }
  func.func @transform_13(%arg0: i32) -> (i32, i32, i32) {
    %c0_i32 = arith.constant 0 : i32
    %c0_i32_0 = arith.constant 0 : i32
    %c0_i32_1 = arith.constant 0 : i32
    return %c0_i32, %arg0, %c0_i32_0 : i32, i32, i32
  }
  func.func @transform_14(%arg0: i32) -> (i32, i32, i32) {
    %c0_i32 = arith.constant 0 : i32
    %c0_i32_0 = arith.constant 0 : i32
    %c0_i32_1 = arith.constant 0 : i32
    return %c0_i32, %arg0, %c0_i32_0 : i32, i32, i32
  }
  func.func @transform_15(%arg0: i32) -> (i32, i32, i32) {
    %c0_i32 = arith.constant 0 : i32
    %c0_i32_0 = arith.constant 0 : i32
    %c0_i32_1 = arith.constant 0 : i32
    return %c0_i32, %arg0, %c0_i32_0 : i32, i32, i32
  }
}

</mosaic_0001>

<bundles_post_ra>
// kernel: _lambda_.1
= control target key start
LH: loop header
LB: loop body
LE: loop exit
PB: predicated region body
PF: predicated region fallthrough
CT: control target
= control target key end

     0   :  { %21 = vsyncpa [#allocation4], 0  ;;  %s4906_s0 = inlined_call_operand.vmem [shape: f32[8,8,128], index: 0, kind: input, shape index: {}]   ;;  %s4907_s1 = inlined_call_operand.hbm [shape: f32[128,384], index: 1, kind: input, shape index: {}]   ;;  %s4908_s2 = inlined_call_operand.vmem [shape: bf16[32,384], index: 2, kind: input, shape index: {}]   ;;  %s4909_s3 = inlined_call_operand.vmem [shape: f32[1,384], index: 3, kind: input, shape index: {}]   ;;  %s4910_s4 = inlined_call_operand.vmem [shape: f32[1,128], index: 4, kind: input, shape index: {}]   ;;  %s4911_s5 = inlined_call_operand.hbm [shape: f32[128,384], index: 5, kind: input, shape index: {}]   ;;  %s4912_s6 = inlined_call_operand.vmem [shape: bf16[32,384], index: 6, kind: input, shape index: {}]   ;;  %s4913_s7 = inlined_call_operand.vmem [shape: f32[1,384], index: 7, kind: input, shape index: {}]   ;;  %s4914_s8 = inlined_call_operand.vmem [shape: f32[1,128], index: 8, kind: input, shape index: {}]   ;;  %s4915_s9 = inlined_call_operand.hbm [shape: f32[128,384], index: 9, kind: input, shape index: {}]   ;;  %s4916_s10 = inlined_call_operand.hbm [shape: bf16[32,384], index: 10, kind: input, shape index: {}]   ;;  %s4917_s11 = inlined_call_operand.vmem [shape: f32[1,384], index: 11, kind: input, shape index: {}]   ;;  %s4918_s12 = inlined_call_operand.vmem [shape: f32[1,128], index: 12, kind: input, shape index: {}]   ;;  %s4919_s13 = inlined_call_operand.vmem [shape: f32[8,8,128], index: 13, kind: output, shape index: {0}]   ;;  %s4920_s14 = inlined_call_operand.vmem [shape: f32[8,8,128], index: 14, kind: output, shape index: {1}]   ;;  %s4921_s15 = inlined_call_operand.vmem [shape: f32[8,8,128], index: 15, kind: output, shape index: {2}]  }
   0x1   :  { %22 = vsyncpa [#allocation6], 0 }
   0x2   :  { %23 = vsyncpa [#allocation9], 0  ;;  %s3991_s18 = smov [#allocation5]   ;;  %s3992_s20 = smov [#allocation3]  }
   0x3   :  { %s49_s19 = sshll.u32 %s3991_s18, 4  ;;  %s31_s21 = sshll.u32 %s3992_s20, 4  ;;  %s50_s19 = int_to_ptr.vmem [resolvable:$true] %s49_s19  ;;  %s32_s21 = int_to_ptr.vmem [resolvable:$true] %s31_s21 }
   0x4   :  { %s3913_s22 = scalar_lea.vmem %s50_s19, 6144  ;;  %p3918_p1 = scmp.lt.s32.totalorder %s50_s19, %s50_s19 }
   0x5   :  { %p3914_p0 = scmp.ne.s32.totalorder %s50_s19, %s3913_s22  ;;  %p3919_p2 = scmp.lt.s32.totalorder %s3913_s22, %s3913_s22 }
   0x7   :  { %p3920_p3 = por %p3919_p2, %p3918_p1 }
   0x9   :  { %p3921_p4 = pnand %p3920_p3, %p3914_p0 }
   0xb   :  { %3924 = shalt.err (!%p3921_p4)
}
   0xc   :  { %s3993_s23 = smov 384   ;;  %s3994_s24 = smov 24  }
   0xd   :  { %55 = dma.hbm_to_vmem [thread:$0]  %s4911_s5, 6144, %s50_s19, [#allocation6], %s3993_s23, %s3993_s23, %s3994_s24  }
   0xe   :  { %s3933_s27 = scalar_lea.vmem %s32_s21, 6144  ;;  %p3938_p6 = scmp.lt.s32.totalorder %s32_s21, %s32_s21 }
   0xf   :  { %p3934_p5 = scmp.ne.s32.totalorder %s32_s21, %s3933_s27  ;;  %p3939_p7 = scmp.lt.s32.totalorder %s3933_s27, %s3933_s27 }
  0x11   :  { %p3940_p8 = por %p3939_p7, %p3938_p6 }
  0x13   :  { %p3941_p9 = pnand %p3940_p8, %p3934_p5 }
  0x15   :  { %3944 = shalt.err (!%p3941_p9)
}
  0x16   :  { %37 = dma.hbm_to_vmem [thread:$0]  %s4907_s1, 6144, %s32_s21, [#allocation4], %s3993_s23, %s3993_s23, %s3994_s24  }
  0x17   :  { %s3995_s30 = smov [#allocation7]   ;;  %s3996_s17 = smov [#allocation8]  }
  0x18   :  { %s67_s16 = sshll.u32 %s3995_s30, 4  ;;  %s79_s18 = sshll.u32 %s3996_s17, 4  ;;  %s68_s16 = int_to_ptr.vmem [resolvable:$true] %s67_s16  ;;  %s80_s18 = int_to_ptr.vmem [resolvable:$true] %s79_s18 }
  0x19   :  { %s3953_s20 = scalar_lea.vmem %s68_s16, 6144  ;;  %p3958_p11 = scmp.lt.s32.totalorder %s68_s16, %s68_s16 }
  0x1a   :  { %p3954_p10 = scmp.ne.s32.totalorder %s68_s16, %s3953_s20  ;;  %p3959_p12 = scmp.lt.s32.totalorder %s3953_s20, %s3953_s20 }
  0x1c   :  { %p3960_p13 = por %p3959_p12, %p3958_p11 }
  0x1e   :  { %p3961_p0 = pnand %p3960_p13, %p3954_p10 }
  0x20   :  { %3964 = shalt.err (!%p3961_p0)
}
  0x21   :  { %73 = dma.hbm_to_vmem [thread:$0]  %s4915_s9, 6144, %s68_s16, [#allocation6], %s3993_s23, %s3993_s23, %s3994_s24  }
  0x22   :  { %s3973_s22 = scalar_lea.vmem %s80_s18, 768  ;;  %p3978_p2 = scmp.lt.s32.totalorder %s80_s18, %s80_s18 }
  0x23   :  { %p3974_p1 = scmp.ne.s32.totalorder %s80_s18, %s3973_s22  ;;  %p3979_p3 = scmp.lt.s32.totalorder %s3973_s22, %s3973_s22 }
  0x25   :  { %p3980_p4 = por %p3979_p3, %p3978_p2 }
  0x27   :  { %p3981_p5 = pnand %p3980_p4, %p3974_p1 }
  0x29   :  { %3984 = shalt.err (!%p3981_p5)
}
  0x2a   :  { %s3997_s1 = smov 192   ;;  %s3998_s21 = smov 12  }
  0x2b   :  { %85 = dma.hbm_to_vmem [thread:$0]  %s4916_s10, 768, %s80_s18, [#allocation9], %s3997_s1, %s3997_s1, %s3998_s21  }
  0x2c   :  { %3985 = dma.done.wait [#allocation4], 6144  }
  0x2d   :  { %3986 = vsyncadd [#allocation4], 4294961152 }
  0x2e   :  { %3987 = dma.done.wait [#allocation6], 12288  }
  0x2f   :  { %3988 = vsyncadd [#allocation6], 4294955008 }
  0x30   :  { %3989 = dma.done.wait [#allocation9], 768  }
  0x31   :  { %3990 = vsyncadd [#allocation9], 4294966528  ;;  %v3999_v0 = vmov 0.0   ;;  %v150_v1 = vld [vmem:[#allocation3 + $0x178] sm:$0xff]  ;;  %v147_v2 = vld [vmem:[#allocation3 + $0x160] sm:$0xff]  ;;  %v4000_v61 = vmov 0  }
  0x32   :  { %249 = vmatprep.mubr.f32.mxu0 %v3999_v0  ;;  %3386 = vmatprep.subr.mxu1 %v150_v1  ;;  %v144_v3 = vld [vmem:[#allocation3 + $0x148] sm:$0xff]  ;;  %v149_v4 = vld [vmem:[#allocation3 + $0x170] sm:$0xff]  ;;  %v146_v6 = vld [vmem:[#allocation3 + $0x158] sm:$0xff]  ;;  %vm4001_vm0 = vmmov 0   ;;  %vm471_vm1 = vcmask 261120  }
  0x33   :  { %3387 = vmatpush3.msra.mxu1 %v150_v1  ;;  %v148_v5 = vld [vmem:[#allocation3 + $0x168] sm:$0xff]  ;;  %185 = vmatprep.subr.mxu0 %v149_v4  ;;  %v145_v7 = vld [vmem:[#allocation3 + $0x150] sm:$0xff]  ;;  %v143_v9 = vld [vmem:[#allocation3 + $0x140] sm:$0xff]  ;;  %v170_v1 = vlaneseq }
  0x34   :  { %3388 = vmatprep.subr.mxu1 %v147_v2  ;;  %v141_v8 = vld [vmem:[#allocation3 + $0x130] sm:$0xff]  ;;  %186 = vmatpush1.msra.mxu0 %v148_v5  ;;  %v142_v10 = vld [vmem:[#allocation3 + $0x138] sm:$0xff]  ;;  %v140_v12 = vld [vmem:[#allocation3 + $0x128] sm:$0xff] }
  0x35   :  { %3389 = vmatpush3.msra.mxu1 %v147_v2  ;;  %187 = vmatprep.subr.mxu0 %v146_v6  ;;  %v138_v11 = vld [vmem:[#allocation3 + $0x118] sm:$0xff]  ;;  %v139_v13 = vld [vmem:[#allocation3 + $0x120] sm:$0xff]  ;;  %v137_v15 = vld [vmem:[#allocation3 + $0x110] sm:$0xff]  ;;  %v171_v2 = vshrl.u32 %v170_v1, 7 }
  0x36   :  { %3390 = vmatprep.subr.mxu1 %v144_v3  ;;  %188 = vmatpush1.msra.mxu0 %v145_v7  ;;  %v135_v14 = vld [vmem:[#allocation3 + $0x100] sm:$0xff]  ;;  %v136_v16 = vld [vmem:[#allocation3 + $0x108] sm:$0xff]  ;;  %v134_v18 = vld [vmem:[#allocation3 + $0xf8] sm:$0xff] }
  0x37   :  { %3391 = vmatpush3.msra.mxu1 %v144_v3  ;;  %189 = vmatprep.subr.mxu0 %v143_v9  ;;  %v132_v17 = vld [vmem:[#allocation3 + $0xe8] sm:$0xff]  ;;  %v133_v19 = vld [vmem:[#allocation3 + $0xf0] sm:$0xff]  ;;  %v131_v21 = vld [vmem:[#allocation3 + $0xe0] sm:$0xff]  ;;  %v4186_v3 = vsub.s32 2, %v171_v2 }
  0x38   :  { %3392 = vmatprep.subr.mxu1 %v141_v8  ;;  %190 = vmatpush1.msra.mxu0 %v142_v10  ;;  %v129_v20 = vld [vmem:[#allocation3 + $0xd0] sm:$0xff]  ;;  %v130_v22 = vld [vmem:[#allocation3 + $0xd8] sm:$0xff]  ;;  %v128_v24 = vld [vmem:[#allocation3 + $0xc8] sm:$0xff] }
  0x39   :  { %3393 = vmatpush3.msra.mxu1 %v141_v8  ;;  %191 = vmatprep.subr.mxu0 %v140_v12  ;;  %v126_v23 = vld [vmem:[#allocation3 + $0xb8] sm:$0xff]  ;;  %v127_v25 = vld [vmem:[#allocation3 + $0xc0] sm:$0xff]  ;;  %v125_v27 = vld [vmem:[#allocation3 + $0xb0] sm:$0xff] }
  0x3a   :  { %3394 = vmatprep.subr.mxu1 %v138_v11  ;;  %192 = vmatpush1.msra.mxu0 %v139_v13  ;;  %v123_v26 = vld [vmem:[#allocation3 + $0xa0] sm:$0xff]  ;;  %v120_v28 = vld [vmem:[#allocation3 + $0x88] sm:$0xff]  ;;  %v122_v30 = vld [vmem:[#allocation3 + $0x98] sm:$0xff] }
  0x3b   :  { %3395 = vmatpush3.msra.mxu1 %v138_v11  ;;  %193 = vmatprep.subr.mxu0 %v137_v15  ;;  %v124_v29 = vld [vmem:[#allocation3 + $0xa8] sm:$0xff]  ;;  %v117_v31 = vld [vmem:[#allocation3 + $0x70] sm:$0xff]  ;;  %v4098_v32 = vld [vmem:[%s4906_s0] sm:$0xff]  ;;  %v4202_v11 = vsub.s32 0, %v171_v2 }
  0x3c   :  { %3396 = vmatprep.subr.mxu1 %v135_v14  ;;  %194 = vmatpush1.msra.mxu0 %v136_v16  ;;  %v114_v33 = vld [vmem:[#allocation3 + $0x58] sm:$0xff]  ;;  %v121_v34 = vld [vmem:[#allocation3 + $0x90] sm:$0xff]  ;;  %v119_v35 = vld [vmem:[#allocation3 + $0x80] sm:$0xff] }
  0x3d   :  { %3397 = vmatpush3.msra.mxu1 %v135_v14  ;;  %195 = vmatprep.subr.mxu0 %v134_v18  ;;  %v118_v36 = vld [vmem:[#allocation3 + $0x78] sm:$0xff]  ;;  %v111_v37 = vld [vmem:[#allocation3 + $0x40] sm:$0xff]  ;;  %v116_v38 = vld [vmem:[#allocation3 + $0x68] sm:$0xff] }
  0x3e   :  { %3398 = vmatprep.subr.mxu1 %v132_v17  ;;  %196 = vmatpush1.msra.mxu0 %v133_v19  ;;  %v115_v39 = vld [vmem:[#allocation3 + $0x60] sm:$0xff]  ;;  %v113_v40 = vld [vmem:[#allocation3 + $0x50] sm:$0xff]  ;;  %v108_v41 = vld [vmem:[#allocation3 + $0x28] sm:$0xff] }
  0x3f   :  { %3399 = vmatpush3.msra.mxu1 %v132_v17  ;;  %197 = vmatprep.subr.mxu0 %v131_v21  ;;  %v112_v42 = vld [vmem:[#allocation3 + $0x48] sm:$0xff]  ;;  %v110_v43 = vld [vmem:[#allocation3 + $0x38] sm:$0xff]  ;;  %v105_v44 = vld [vmem:[#allocation3 + $0x10] sm:$0xff] }
  0x40   :  { %3400 = vmatprep.subr.mxu1 %v129_v20  ;;  %198 = vmatpush1.msra.mxu0 %v130_v22  ;;  %v109_v45 = vld [vmem:[#allocation3 + $0x30] sm:$0xff]  ;;  %v4104_v46 = vld [vmem:[%s4908_s2 + $0x1c] ss:$12 sps:$4 sm:$0xff]   ;;  %v107_v47 = vld [vmem:[#allocation3 + $0x20] sm:$0xff]  ;;  %v4218_v22 = vsub.s32 1, %v171_v2 }
  0x41   :  { %3401 = vmatpush3.msra.mxu1 %v129_v20  ;;  %199 = vmatprep.subr.mxu0 %v128_v24  ;;  %v162_v48 = vld [vmem:[%s4906_s0 + $0x8] sm:$0xff]  ;;  %v4112_v49 = vld [vmem:[%s4908_s2 + $0x18] ss:$12 sps:$4 sm:$0xff]   ;;  %v163_v50 = vld [vmem:[%s4906_s0 + $0x10] sm:$0xff] }
  0x42   :  { %3402 = vmatprep.subr.mxu1 %v126_v23  ;;  %200 = vmatpush1.msra.mxu0 %v127_v25  ;;  %v4120_v51 = vld [vmem:[%s4908_s2 + $0x4] ss:$12 sps:$4 sm:$0xff]   ;;  %v106_v52 = vld [vmem:[#allocation3 + $0x18] sm:$0xff]  ;;  %v104_v53 = vld [vmem:[#allocation3 + $0x8] sm:$0xff] }
  0x43   :  { %3403 = vmatpush3.msra.mxu1 %v126_v23  ;;  %201 = vmatprep.subr.mxu0 %v125_v27  ;;  %v164_v54 = vld [vmem:[%s4906_s0 + $0x18] sm:$0xff]  ;;  %v4130_v55 = vld [vmem:[%s4908_s2] ss:$12 sps:$4 sm:$0xff]   ;;  %v167_v59 = vld [vmem:[%s4906_s0 + $0x30] sm:$0xff] }
  0x44   :  { %3404 = vmatprep.subr.mxu1 %v123_v26  ;;  %202 = vmatpush1.msra.mxu0 %v124_v29  ;;  %v103_v56 = vld [vmem:[#allocation3] sm:$0xff]  ;;  %v166_v58 = vld [vmem:[%s4906_s0 + $0x28] sm:$0xff]  ;;  %v168_v60 = vld [vmem:[%s4906_s0 + $0x38] sm:$0xff] }
  0x45   :  { %3405 = vmatpush3.msra.mxu1 %v123_v26  ;;  %203 = vmatprep.subr.mxu0 %v122_v30  ;;  %v165_v57 = vld [vmem:[%s4906_s0 + $0x20] sm:$0xff]  ;;  %v4167_v63 = vld [vmem:[%s4908_s2 + $0x8] ss:$12 sps:$4 sm:$0xff]  }
  0x46   :  { %3406 = vmatprep.subr.mxu1 %v120_v28  ;;  %3418 = vmatprep.mubr.f32.mxu1 %v4098_v32  ;;  %v4158_v62 = vld [vmem:[%s4908_s2 + $0x20] ss:$12 sps:$4 sm:$0xff]  }
  0x47   :  { %3407 = vmatpush3.msra.mxu1 %v120_v28  ;;  %204 = vmatpush1.msra.mxu0 %v121_v34  ;;  %v159_v4 = vld [vmem:[%s4909_s3] sm:$0x7] }
  0x48   :  { %3408 = vmatprep.subr.mxu1 %v117_v31  ;;  %205 = vmatprep.subr.mxu0 %v119_v35  ;;  %v4192_v5 = vrot.slane %v159_v4, %v4186_v3  ;;  %v4211_v18 = vrot.slane %v159_v4, %v4202_v11  ;;  %v4230_v30 = vrot.slane %v159_v4, %v4218_v22 }
  0x49   :  { %3409 = vmatpush3.msra.mxu1 %v117_v31  ;;  %206 = vmatpush1.msra.mxu0 %v118_v36 }
  0x4a   :  { %3410 = vmatprep.subr.mxu1 %v114_v33  ;;  %207 = vmatprep.subr.mxu0 %v116_v38 }
  0x4b   :  { %3411 = vmatpush3.msra.mxu1 %v114_v33  ;;  %208 = vmatpush1.msra.mxu0 %v115_v39 }
  0x4c   :  { %3412 = vmatprep.subr.mxu1 %v111_v37  ;;  %209 = vmatprep.subr.mxu0 %v113_v40 }
  0x4d   :  { %3413 = vmatpush3.msra.mxu1 %v111_v37  ;;  %210 = vmatpush1.msra.mxu0 %v112_v42 }
  0x4e   :  { %3414 = vmatprep.subr.mxu1 %v108_v41  ;;  %211 = vmatprep.subr.mxu0 %v110_v43 }
  0x4f   :  { %3415 = vmatpush3.msra.mxu1 %v108_v41  ;;  %212 = vmatpush1.msra.mxu0 %v109_v45 }
  0x50   :  { %3416 = vmatprep.subr.mxu1 %v105_v44  ;;  %213 = vmatprep.subr.mxu0 %v107_v47 }
  0x51   :  { %3417 = vmatpush3.msra.mxu1 %v105_v44  ;;  %214 = vmatpush1.msra.mxu0 %v106_v52 }
  0x52   :  { %3419 = vmatmul.mubr.f32.vlgmr.msra.gmra.mxu1 %v162_v48  ;;  %487 = vmatprep.subr.bf16.mxu1 %v4104_v46 }
  0x53   :  { %488 = vmatpush1.bf16.msra.mxu1 %v4112_v49  ;;  %3421 = vmatprep.mubr.f32.mxu1 %v163_v50 }
  0x54   :  { %489 = vmatprep.subr.bf16.mxu1 %v4120_v51  ;;  %215 = vmatprep.subr.mxu0 %v104_v53 }
  0x55   :  { %216 = vmatpush1.msra.mxu0 %v103_v56 }
  0x56   :  { %3422 = vmatmul.mubr.f32.gmra.mxu1 %v164_v54  ;;  %250 = vmatmul.mubr.f32.vlgmr.msra.gmra.mxu0 %v4098_v32 }
  0x57   :  { %3424 = vmatprep.mubr.f32.mxu1 %v165_v57  ;;  %490 = vmatpush1.bf16.msra.mxu1 %v4130_v55 }
  0x58   :  { %3430 = vmatprep.subr.bf16.mxu1 %v3999_v0  ;;  %603 = vmatprep.subr.bf16.mxu0 %v4104_v46 }
  0x59   :  { %255 = vmatprep.mubr.f32.mxu0 %v3999_v0  ;;  %604 = vmatpush1.bf16.msra.mxu0 %v4112_v49 }
  0x5a   :  { %3425 = vmatmul.mubr.f32.gmra.mxu1 %v166_v58  ;;  %605 = vmatprep.subr.bf16.mxu0 %v4120_v51 }
  0x5b   :  { %3427 = vmatprep.mubr.f32.mxu1 %v167_v59  ;;  %256 = vmatmul.mubr.f32.gmra.mxu0 %v162_v48 }
  0x5c   :  { %261 = vmatprep.mubr.f32.mxu0 %v3999_v0 }
  0x5d   :  { %606 = vmatpush1.bf16.msra.mxu0 %v4130_v55 }
  0x5e   :  { %3428 = vmatmul.mubr.f32.gmra.mxu1 %v168_v60  ;;  %719 = vmatprep.subr.bf16.mxu0 %v4104_v46 }
  0x5f   :  { %507 = vmatprep.mubr.bf16.mxu1 %v4000_v61  ;;  %262 = vmatmul.mubr.f32.gmra.mxu0 %v163_v50 }
  0x60   :  { %267 = vmatprep.mubr.f32.mxu0 %v3999_v0 }
  0x62   :  { %508 = vmatmul.mubr.bf16.vlgmr.msra.gmra.mxu1 %v4000_v61 }
  0x63   :  { %3431 = vmatpush3.bf16.msra.mxu1 %v4158_v62  ;;  %3434 = vmatprep.mubr.msk.bf16.mxu1 %vm4001_vm0, %v3999_v0 }
  0x64   :  { %3432 = vmatprep.subr.bf16.mxu1 %v3999_v0  ;;  %268 = vmatmul.mubr.f32.gmra.mxu0 %v164_v54 }
  0x65   :  { %273 = vmatprep.mubr.f32.mxu0 %v3999_v0 }
  0x67   :  { %3433 = vmatpush3.bf16.msra.mxu1 %v4167_v63 }
  0x68   :  { %274 = vmatmul.mubr.f32.gmra.mxu0 %v165_v57  ;;  %3438 = vmatprep.subr.bf16.mxu1 %v3999_v0 }
  0x69   :  { %279 = vmatprep.mubr.f32.mxu0 %v3999_v0 }
  0x6a   :  { %3435 = vmatmul.mubr.bf16.vlgmr.msra.gmra.mxu1 %v4000_v61 }
  0x6b   :  { %3439 = vmatpush3.bf16.msra.mxu1 %v4158_v62  ;;  %3442 = vmatprep.mubr.msk.bf16.mxu1 %vm4001_vm0, %v3999_v0 }
  0x6c   :  { %280 = vmatmul.mubr.f32.gmra.mxu0 %v166_v58  ;;  %3440 = vmatprep.subr.bf16.mxu1 %v3999_v0 }
  0x6d   :  { %285 = vmatprep.mubr.f32.mxu0 %v3999_v0 }
  0x6f   :  { %3441 = vmatpush3.bf16.msra.mxu1 %v4167_v63 }
  0x70   :  { %286 = vmatmul.mubr.f32.gmra.mxu0 %v167_v59  ;;  %3446 = vmatprep.subr.bf16.mxu1 %v3999_v0 }
  0x71   :  { %291 = vmatprep.mubr.f32.mxu0 %v3999_v0 }
  0x74   :  { %292 = vmatmul.mubr.f32.gmra.mxu0 %v168_v60 }
  0x75   :  { %623 = vmatprep.mubr.bf16.mxu0 %v4000_v61 }
 0x112   :  { %v3420_v6 = vpop.f32.mrf.mxu1 }
 0x113   :  { %v4195_v7 = vadd.f32 %v3420_v6, %v4192_v5 }
 0x114   :  { %v4197_v8 = vpop.f32.mrf.mxu1 }
 0x116   :  { %v3423_v9 = vpop.f32.mrf.mxu1  ;;  %v251_v13 = vpop.f32.mrf.mxu0 }
 0x117   :  { %v4200_v10 = vadd.f32 %v3423_v9, %v4192_v5  ;;  %v252_v26 = vadd.f32 %v251_v13, %v4211_v18 }
 0x118   :  { %v374_v12 = vpop.f32.mrf.mxu1  ;;  %v253_v16 = vpop.f32.mrf.mxu0 }
 0x119   :  { %v4205_v14 = vadd.f32 %v374_v12, %v4192_v5  ;;  %v254_v42 = vadd.f32 %v253_v16, %v4230_v30 }
 0x11a   :  { %v3426_v15 = vpop.f32.mrf.mxu1 }
 0x11b   :  { %v4208_v17 = vadd.f32 %v3426_v15, %v4192_v5  ;;  %v4213_v20 = vpop.f32.mrf.mxu0 }
 0x11c   :  { %v384_v19 = vpop.f32.mrf.mxu1 }
 0x11d   :  { %v4216_v21 = vadd.f32 %v384_v19, %v4192_v5  ;;  %v4220_v24 = vpop.f32.mrf.mxu0 }
 0x11e   :  { %v3429_v23 = vpop.f32.mrf.mxu1 }
 0x11f   :  { %v4223_v25 = vadd.f32 %v3429_v23, %v4192_v5  ;;  %v263_v28 = vpop.f32.mrf.mxu0 }
 0x120   :  { %v394_v27 = vpop.f32.mrf.mxu1  ;;  %v4233_v31 = vadd.f32 %v263_v28, %v4211_v18 }
 0x121   :  { %v4227_v29 = vadd.f32 %v394_v27, %v4192_v5  ;;  %v265_v33 = vpop.f32.mrf.mxu0 }
 0x122   :  { %v509_v32 = vpop.f32.mrf.mxu1  ;;  %v4236_v35 = vadd.f32 %v265_v33, %v4230_v30  ;;  %v365_v33 = vadd.f32 %v4197_v8, %v4192_v5 }
 0x123   :  { %v556_v34 = vadd.f32 %v509_v32, %v252_v26  ;;  %v4269_v26 = vld [vmem:[%s4910_s4] ss:$0 sm:$0xff] }
 0x124   :  { %v511_v36 = vpop.f32.mrf.mxu1  ;;  %v269_v37 = vpop.f32.mrf.mxu0 }
 0x125   :  { %v3167_v38 = vmul.f32 -1.442695, %v556_v34  ;;  %v4239_v39 = vadd.f32 %v269_v37, %v4211_v18  ;;  %v563_v47 = vadd.f32 %v511_v36, %v254_v42 }
 0x126   :  { %v513_v40 = vpop.f32.mrf.mxu1  ;;  %v271_v41 = vpop.f32.mrf.mxu0 }
 0x127   :  { %3665 = vpow2.f32 %v3167_v38  ;;  %v4243_v43 = vadd.f32 %v271_v41, %v4230_v30  ;;  %v3168_v57 = vmul.f32 -1.442695, %v563_v47 }
 0x128   :  { %v514_v44 = vpop.f32.mrf.mxu1  ;;  %v275_v45 = vpop.f32.mrf.mxu0 }
 0x129   :  { %v4246_v48 = vadd.f32 %v275_v45, %v4211_v18  ;;  %3667 = vpow2.f32 %v3168_v57  ;;  %v258_v45 = vadd.f32 %v4213_v20, %v4211_v18 }
 0x12a   :  { %v550_v50 = vpop.f32.mrf.mxu1  ;;  %v277_v52 = vpop.f32.mrf.mxu0 }
 0x12b   :  { %v4249_v53 = vadd.f32 %v277_v52, %v4230_v30  ;;  %v570_v28 = vadd.f32 %v4269_v26, %v550_v50 }
 0x12c   :  { %v3436_v54 = vpop.f32.mrf.mxu1  ;;  %v281_v56 = vpop.f32.mrf.mxu0 }
 0x12d   :  { %v4252_v58 = vadd.f32 %v281_v56, %v4211_v18 }
 0x12e   :  { %v553_v59 = vpop.f32.mrf.mxu1  ;;  %v283_v60 = vpop.f32.mrf.mxu0 }
 0x12f   :  { %v4255_v1 = vadd.f32 %v283_v60, %v4230_v30 }
 0x130   :  { %v3437_v2 = vpop.f32.mrf.mxu1  ;;  %v287_v4 = vpop.f32.mrf.mxu0 }
 0x131   :  { %v4258_v6 = vadd.f32 %v287_v4, %v4211_v18  ;;  %v260_v2 = vadd.f32 %v4220_v24, %v4230_v30 }
 0x132   :  { %v289_v9 = vpop.f32.mrf.mxu0 }
 0x133   :  { %v4261_v12 = vadd.f32 %v289_v9, %v4230_v30 }
 0x134   :  { %v3666_v13 = vpop.eup %3665  ;;  %v293_v15 = vpop.f32.mrf.mxu0 }
 0x135   :  { %v560_v16 = vadd.f32 1.0, %v3666_v13  ;;  %v4264_v19 = vadd.f32 %v293_v15, %v4211_v18 }
 0x136   :  { %v3668_v23 = vpop.eup %3667  ;;  %v4295_v8 = vpop.f32.mrf.mxu0 }
 0x137   :  { %3669 = vrcp.f32 %v560_v16  ;;  %v567_v27 = vadd.f32 1.0, %v3668_v23 }
 0x139   :  { %3671 = vrcp.f32 %v567_v27 }
 0x144   :  { %v3670_v32 = vpop.eup %3669 }
 0x145   :  { %v571_v34 = vmul.f32 %v3670_v32, %v570_v28 }
 0x146   :  { %v3672_v37 = vpop.eup %3671 }
 0x147   :  { %v572_v36 = vadd.f32 %v571_v34, %v365_v33  ;;  %v574_v38 = vsub.f32 1.0, %v3672_v37  ;;  %v576_v41 = vmul.f32 0.0, %v3672_v37 }
 0x149   :  { %3673 = vtanh.f32 %v572_v36 }
 0x156   :  { %v3674_v40 = vpop.eup %3673 }
 0x157   :  { %v575_v42 = vmul.f32 %v3674_v40, %v574_v38 }
 0x159   :  { %v4274_v44 = vadd.f32 %v576_v41, %v575_v42 }
 0x15b   :  { %580 = vst [vmem:[%s4919_s13] sm:$0xff] %v4274_v44  ;;  %v587_v5 = vpack.c.bf16 %v4274_v44, %v4274_v44 }
 0x15d   :  { %3169 = vmatmul.mubr.msk.bf16.vlgmr.msra.gmra.mxu0 %vm471_vm1, %v587_v5  ;;  %3443 = vmatmul.mubr.msk.bf16.vlgmr.msra.gmra.mxu1 %vm471_vm1, %v587_v5 }
 0x15e   :  { %720 = vmatpush1.bf16.msra.mxu0 %v4112_v49  ;;  %3447 = vmatpush3.bf16.msra.mxu1 %v4158_v62 }
 0x15f   :  { %721 = vmatprep.subr.bf16.mxu0 %v4120_v51  ;;  %3448 = vmatprep.subr.bf16.mxu1 %v3999_v0 }
 0x160   :  { %739 = vmatprep.mubr.bf16.mxu0 %v4000_v61  ;;  %3450 = vmatprep.mubr.msk.bf16.mxu1 %vm4001_vm0, %v3999_v0 }
 0x162   :  { %722 = vmatpush1.bf16.msra.mxu0 %v4130_v55  ;;  %3449 = vmatpush3.bf16.msra.mxu1 %v4167_v63 }
 0x163   :  { %835 = vmatprep.subr.bf16.mxu0 %v4104_v46  ;;  %3454 = vmatprep.subr.bf16.mxu1 %v3999_v0 }
 0x21d   :  { %v625_v47 = vpop.f32.mrf.mxu0  ;;  %v666_v50 = vpop.f32.mrf.mxu1 }
 0x21e   :  { %v672_v52 = vadd.f32 %v625_v47, %v258_v45  ;;  %v686_v27 = vadd.f32 %v4269_v26, %v666_v50 }
 0x21f   :  { %v627_v54 = vpop.f32.mrf.mxu0  ;;  %v3444_v56 = vpop.f32.mrf.mxu1 }
 0x220   :  { %v3171_v57 = vmul.f32 -1.442695, %v672_v52  ;;  %v679_v13 = vadd.f32 %v627_v54, %v260_v2 }
 0x221   :  { %v629_v59 = vpop.f32.mrf.mxu0  ;;  %v669_v60 = vpop.f32.mrf.mxu1 }
 0x222   :  { %3675 = vpow2.f32 %v3171_v57  ;;  %v3172_v15 = vmul.f32 -1.442695, %v679_v13 }
 0x223   :  { %v630_v4 = vpop.f32.mrf.mxu0  ;;  %v3445_v9 = vpop.f32.mrf.mxu1 }
 0x224   :  { %3677 = vpow2.f32 %v3172_v15 }
 0x22f   :  { %v3676_v16 = vpop.eup %3675 }
 0x230   :  { %v676_v23 = vadd.f32 1.0, %v3676_v16 }
 0x231   :  { %v3678_v18 = vpop.eup %3677 }
 0x232   :  { %3679 = vrcp.f32 %v676_v23  ;;  %v683_v20 = vadd.f32 1.0, %v3678_v18 }
 0x234   :  { %3681 = vrcp.f32 %v683_v20 }
 0x23f   :  { %v3680_v28 = vpop.eup %3679 }
 0x240   :  { %v687_v32 = vmul.f32 %v3680_v28, %v686_v27 }
 0x241   :  { %v3682_v24 = vpop.eup %3681 }
 0x242   :  { %v688_v33 = vadd.f32 %v687_v32, %v4195_v7  ;;  %v690_v34 = vsub.f32 1.0, %v3682_v24  ;;  %v692_v38 = vmul.f32 %v3682_v24, %v4274_v44 }
 0x244   :  { %3683 = vtanh.f32 %v688_v33 }
 0x251   :  { %v3684_v36 = vpop.eup %3683 }
 0x252   :  { %v691_v37 = vmul.f32 %v3684_v36, %v690_v34 }
 0x254   :  { %v4304_v40 = vadd.f32 %v692_v38, %v691_v37 }
 0x256   :  { %3173 = vst [vmem:[%s4919_s13 + $0x8] sm:$0xff] %v4304_v40  ;;  %v703_v41 = vpack.c.bf16 %v4304_v40, %v4304_v40 }
 0x258   :  { %3174 = vmatmul.mubr.msk.bf16.vlgmr.msra.gmra.mxu0 %vm471_vm1, %v703_v41  ;;  %3451 = vmatmul.mubr.msk.bf16.vlgmr.msra.gmra.mxu1 %vm471_vm1, %v703_v41 }
 0x259   :  { %836 = vmatpush1.bf16.msra.mxu0 %v4112_v49  ;;  %3455 = vmatpush3.bf16.msra.mxu1 %v4158_v62 }
 0x25a   :  { %837 = vmatprep.subr.bf16.mxu0 %v4120_v51  ;;  %3456 = vmatprep.subr.bf16.mxu1 %v3999_v0 }
 0x25b   :  { %855 = vmatprep.mubr.bf16.mxu0 %v4000_v61  ;;  %3458 = vmatprep.mubr.msk.bf16.mxu1 %vm4001_vm0, %v3999_v0 }
 0x25d   :  { %838 = vmatpush1.bf16.msra.mxu0 %v4130_v55  ;;  %3457 = vmatpush3.bf16.msra.mxu1 %v4167_v63 }
 0x25e   :  { %951 = vmatprep.subr.bf16.mxu0 %v4104_v46  ;;  %3462 = vmatprep.subr.bf16.mxu1 %v3999_v0 }
 0x318   :  { %v741_v7 = vpop.f32.mrf.mxu0  ;;  %v782_v42 = vpop.f32.mrf.mxu1 }
 0x319   :  { %v788_v5 = vadd.f32 %v741_v7, %v4233_v31  ;;  %v802_v15 = vadd.f32 %v4269_v26, %v782_v42 }
 0x31a   :  { %v743_v45 = vpop.f32.mrf.mxu0  ;;  %v3452_v47 = vpop.f32.mrf.mxu1 }
 0x31b   :  { %v3176_v50 = vmul.f32 -1.442695, %v788_v5  ;;  %v795_v59 = vadd.f32 %v743_v45, %v4236_v35 }
 0x31c   :  { %v745_v52 = vpop.f32.mrf.mxu0  ;;  %v785_v54 = vpop.f32.mrf.mxu1 }
 0x31d   :  { %3685 = vpow2.f32 %v3176_v50  ;;  %v3177_v60 = vmul.f32 -1.442695, %v795_v59 }
 0x31e   :  { %v746_v56 = vpop.f32.mrf.mxu0  ;;  %v3453_v57 = vpop.f32.mrf.mxu1 }
 0x31f   :  { %3687 = vpow2.f32 %v3177_v60 }
 0x32a   :  { %v3686_v2 = vpop.eup %3685 }
 0x32b   :  { %v792_v4 = vadd.f32 1.0, %v3686_v2 }
 0x32c   :  { %v3688_v9 = vpop.eup %3687 }
 0x32d   :  { %3689 = vrcp.f32 %v792_v4  ;;  %v799_v13 = vadd.f32 1.0, %v3688_v9 }
 0x32f   :  { %3691 = vrcp.f32 %v799_v13 }
 0x33a   :  { %v3690_v31 = vpop.eup %3689 }
 0x33b   :  { %v803_v16 = vmul.f32 %v3690_v31, %v802_v15 }
 0x33c   :  { %v3692_v18 = vpop.eup %3691 }
 0x33d   :  { %v804_v23 = vadd.f32 %v803_v16, %v4205_v14  ;;  %v806_v20 = vsub.f32 1.0, %v3692_v18  ;;  %v808_v35 = vmul.f32 %v3692_v18, %v4304_v40 }
 0x33f   :  { %3693 = vtanh.f32 %v804_v23 }
 0x34c   :  { %v3694_v27 = vpop.eup %3693 }
 0x34d   :  { %v807_v28 = vmul.f32 %v3694_v27, %v806_v20 }
 0x34f   :  { %v4330_v32 = vadd.f32 %v808_v35, %v807_v28 }
 0x351   :  { %3178 = vst [vmem:[%s4919_s13 + $0x10] sm:$0xff] %v4330_v32  ;;  %v819_v33 = vpack.c.bf16 %v4330_v32, %v4330_v32 }
 0x353   :  { %3179 = vmatmul.mubr.msk.bf16.vlgmr.msra.gmra.mxu0 %vm471_vm1, %v819_v33  ;;  %3459 = vmatmul.mubr.msk.bf16.vlgmr.msra.gmra.mxu1 %vm471_vm1, %v819_v33 }
 0x354   :  { %952 = vmatpush1.bf16.msra.mxu0 %v4112_v49  ;;  %3463 = vmatpush3.bf16.msra.mxu1 %v4158_v62 }
 0x355   :  { %953 = vmatprep.subr.bf16.mxu0 %v4120_v51  ;;  %3464 = vmatprep.subr.bf16.mxu1 %v3999_v0 }
 0x356   :  { %971 = vmatprep.mubr.bf16.mxu0 %v4000_v61  ;;  %3466 = vmatprep.mubr.msk.bf16.mxu1 %vm4001_vm0, %v3999_v0 }
 0x358   :  { %954 = vmatpush1.bf16.msra.mxu0 %v4130_v55  ;;  %3465 = vmatpush3.bf16.msra.mxu1 %v4167_v63 }
 0x359   :  { %1067 = vmatprep.subr.bf16.mxu0 %v4104_v46  ;;  %3470 = vmatprep.subr.bf16.mxu1 %v3999_v0 }
 0x413   :  { %v857_v14 = vpop.f32.mrf.mxu0  ;;  %v898_v24 = vpop.f32.mrf.mxu1 }
 0x414   :  { %v904_v34 = vadd.f32 %v857_v14, %v4239_v39  ;;  %v918_v57 = vadd.f32 %v4269_v26, %v898_v24 }
 0x415   :  { %v859_v36 = vpop.f32.mrf.mxu0  ;;  %v3460_v37 = vpop.f32.mrf.mxu1 }
 0x416   :  { %v3181_v38 = vmul.f32 -1.442695, %v904_v34  ;;  %v911_v45 = vadd.f32 %v859_v36, %v4243_v43 }
 0x417   :  { %v861_v41 = vpop.f32.mrf.mxu0  ;;  %v901_v7 = vpop.f32.mrf.mxu1 }
 0x418   :  { %3695 = vpow2.f32 %v3181_v38  ;;  %v3182_v47 = vmul.f32 -1.442695, %v911_v45 }
 0x419   :  { %v862_v42 = vpop.f32.mrf.mxu0  ;;  %v3461_v5 = vpop.f32.mrf.mxu1 }
 0x41a   :  { %3697 = vpow2.f32 %v3182_v47 }
 0x425   :  { %v3696_v50 = vpop.eup %3695 }
 0x426   :  { %v908_v52 = vadd.f32 1.0, %v3696_v50 }
 0x427   :  { %v3698_v54 = vpop.eup %3697 }
 0x428   :  { %3699 = vrcp.f32 %v908_v52  ;;  %v915_v56 = vadd.f32 1.0, %v3698_v54 }
 0x42a   :  { %3701 = vrcp.f32 %v915_v56 }
 0x435   :  { %v3700_v39 = vpop.eup %3699 }
 0x436   :  { %v919_v59 = vmul.f32 %v3700_v39, %v918_v57 }
 0x437   :  { %v3702_v2 = vpop.eup %3701 }
 0x438   :  { %v920_v60 = vadd.f32 %v919_v59, %v4200_v10  ;;  %v922_v4 = vsub.f32 1.0, %v3702_v2  ;;  %v924_v43 = vmul.f32 %v3702_v2, %v4330_v32 }
 0x43a   :  { %3703 = vtanh.f32 %v920_v60 }
 0x447   :  { %v3704_v9 = vpop.eup %3703 }
 0x448   :  { %v923_v13 = vmul.f32 %v3704_v9, %v922_v4 }
 0x44a   :  { %v4356_v15 = vadd.f32 %v924_v43, %v923_v13 }
 0x44c   :  { %3183 = vst [vmem:[%s4919_s13 + $0x18] sm:$0xff] %v4356_v15  ;;  %v935_v31 = vpack.c.bf16 %v4356_v15, %v4356_v15 }
 0x44e   :  { %3184 = vmatmul.mubr.msk.bf16.vlgmr.msra.gmra.mxu0 %vm471_vm1, %v935_v31  ;;  %3467 = vmatmul.mubr.msk.bf16.vlgmr.msra.gmra.mxu1 %vm471_vm1, %v935_v31 }
 0x44f   :  { %1068 = vmatpush1.bf16.msra.mxu0 %v4112_v49  ;;  %3471 = vmatpush3.bf16.msra.mxu1 %v4158_v62 }
 0x450   :  { %1069 = vmatprep.subr.bf16.mxu0 %v4120_v51  ;;  %3472 = vmatprep.subr.bf16.mxu1 %v3999_v0 }
 0x451   :  { %1087 = vmatprep.mubr.bf16.mxu0 %v4000_v61  ;;  %3474 = vmatprep.mubr.msk.bf16.mxu1 %vm4001_vm0, %v3999_v0 }
 0x453   :  { %1070 = vmatpush1.bf16.msra.mxu0 %v4130_v55  ;;  %3473 = vmatpush3.bf16.msra.mxu1 %v4167_v63 }
 0x454   :  { %1183 = vmatprep.subr.bf16.mxu0 %v4104_v46  ;;  %3478 = vmatprep.subr.bf16.mxu1 %v3999_v0 }
 0x50e   :  { %v973_v10 = vpop.f32.mrf.mxu0  ;;  %v1014_v16 = vpop.f32.mrf.mxu1 }
 0x50f   :  { %v1020_v23 = vadd.f32 %v973_v10, %v4246_v48  ;;  %v1034_v7 = vadd.f32 %v4269_v26, %v1014_v16 }
 0x510   :  { %v975_v18 = vpop.f32.mrf.mxu0  ;;  %v3468_v20 = vpop.f32.mrf.mxu1 }
 0x511   :  { %v3186_v27 = vmul.f32 -1.442695, %v1020_v23  ;;  %v1027_v24 = vadd.f32 %v975_v18, %v4249_v53 }
 0x512   :  { %v977_v28 = vpop.f32.mrf.mxu0  ;;  %v1017_v35 = vpop.f32.mrf.mxu1 }
 0x513   :  { %3705 = vpow2.f32 %v3186_v27  ;;  %v3187_v34 = vmul.f32 -1.442695, %v1027_v24 }
 0x514   :  { %v978_v33 = vpop.f32.mrf.mxu0  ;;  %v3469_v14 = vpop.f32.mrf.mxu1 }
 0x515   :  { %3707 = vpow2.f32 %v3187_v34 }
 0x520   :  { %v3706_v36 = vpop.eup %3705 }
 0x521   :  { %v1024_v37 = vadd.f32 1.0, %v3706_v36 }
 0x522   :  { %v3708_v38 = vpop.eup %3707 }
 0x523   :  { %3709 = vrcp.f32 %v1024_v37  ;;  %v1031_v41 = vadd.f32 1.0, %v3708_v38  ;;  %v1440_v37 = vld [vmem:[#allocation5 + $0x178] sm:$0xff] }
 0x525   :  { %3711 = vrcp.f32 %v1031_v41 }
 0x530   :  { %v3710_v48 = vpop.eup %3709 }
 0x531   :  { %v1035_v42 = vmul.f32 %v3710_v48, %v1034_v7 }
 0x532   :  { %v3712_v45 = vpop.eup %3711 }
 0x533   :  { %v1036_v5 = vadd.f32 %v1035_v42, %v4216_v21  ;;  %v1038_v47 = vsub.f32 1.0, %v3712_v45  ;;  %v1040_v53 = vmul.f32 %v3712_v45, %v4356_v15 }
 0x535   :  { %3713 = vtanh.f32 %v1036_v5 }
 0x542   :  { %v3714_v50 = vpop.eup %3713 }
 0x543   :  { %v1039_v52 = vmul.f32 %v3714_v50, %v1038_v47 }
 0x545   :  { %v4382_v54 = vadd.f32 %v1040_v53, %v1039_v52 }
 0x547   :  { %3188 = vst [vmem:[%s4919_s13 + $0x20] sm:$0xff] %v4382_v54  ;;  %v1051_v56 = vpack.c.bf16 %v4382_v54, %v4382_v54 }
 0x549   :  { %3189 = vmatmul.mubr.msk.bf16.vlgmr.msra.gmra.mxu0 %vm471_vm1, %v1051_v56  ;;  %3475 = vmatmul.mubr.msk.bf16.vlgmr.msra.gmra.mxu1 %vm471_vm1, %v1051_v56 }
 0x54a   :  { %1184 = vmatpush1.bf16.msra.mxu0 %v4112_v49  ;;  %3479 = vmatpush3.bf16.msra.mxu1 %v4158_v62 }
 0x54b   :  { %1185 = vmatprep.subr.bf16.mxu0 %v4120_v51  ;;  %3480 = vmatprep.subr.bf16.mxu1 %v3999_v0 }
 0x54c   :  { %1203 = vmatprep.mubr.bf16.mxu0 %v4000_v61  ;;  %3482 = vmatprep.mubr.msk.bf16.mxu1 %vm4001_vm0, %v3999_v0 }
 0x54e   :  { %1186 = vmatpush1.bf16.msra.mxu0 %v4130_v55  ;;  %3481 = vmatpush3.bf16.msra.mxu1 %v4167_v63 }
 0x54f   :  { %1299 = vmatprep.subr.bf16.mxu0 %v4104_v46  ;;  %3486 = vmatprep.subr.bf16.mxu1 %v3999_v0 }
 0x609   :  { %v1089_v21 = vpop.f32.mrf.mxu0  ;;  %v1130_v57 = vpop.f32.mrf.mxu1 }
 0x60a   :  { %v1136_v39 = vadd.f32 %v1089_v21, %v4252_v58  ;;  %v1150_v20 = vadd.f32 %v4269_v26, %v1130_v57 }
 0x60b   :  { %v1091_v59 = vpop.f32.mrf.mxu0  ;;  %v3476_v60 = vpop.f32.mrf.mxu1 }
 0x60c   :  { %v3191_v2 = vmul.f32 -1.442695, %v1136_v39  ;;  %v1143_v31 = vadd.f32 %v1091_v59, %v4255_v1 }
 0x60d   :  { %v1093_v4 = vpop.f32.mrf.mxu0  ;;  %v1133_v9 = vpop.f32.mrf.mxu1 }
 0x60e   :  { %3715 = vpow2.f32 %v3191_v2  ;;  %v3192_v10 = vmul.f32 -1.442695, %v1143_v31  ;;  %v1435_v31 = vld [vmem:[#allocation5 + $0x150] sm:$0xff] }
 0x60f   :  { %v1094_v13 = vpop.f32.mrf.mxu0  ;;  %v3477_v43 = vpop.f32.mrf.mxu1 }
 0x610   :  { %3717 = vpow2.f32 %v3192_v10  ;;  %v1438_v13 = vld [vmem:[#allocation5 + $0x168] sm:$0xff]  ;;  %v1436_v43 = vld [vmem:[#allocation5 + $0x158] sm:$0xff]  ;;  %v1433_v10 = vld [vmem:[#allocation5 + $0x140] sm:$0xff] }
 0x61b   :  { %v3716_v16 = vpop.eup %3715 }
 0x61c   :  { %v1140_v46 = vadd.f32 1.0, %v3716_v16  ;;  %v1434_v16 = vld [vmem:[#allocation5 + $0x148] sm:$0xff] }
 0x61d   :  { %v3718_v23 = vpop.eup %3717 }
 0x61e   :  { %3719 = vrcp.f32 %v1140_v46  ;;  %v1147_v18 = vadd.f32 1.0, %v3718_v23  ;;  %v1432_v46 = vld [vmem:[#allocation5 + $0x138] sm:$0xff]  ;;  %v1430_v23 = vld [vmem:[#allocation5 + $0x128] sm:$0xff] }
 0x620   :  { %3721 = vrcp.f32 %v1147_v18  ;;  %v1431_v18 = vld [vmem:[#allocation5 + $0x130] sm:$0xff] }
 0x62b   :  { %v3720_v58 = vpop.eup %3719 }
 0x62c   :  { %v1151_v27 = vmul.f32 %v3720_v58, %v1150_v20  ;;  %v1429_v20 = vld [vmem:[#allocation5 + $0x120] sm:$0xff]  ;;  %v1427_v58 = vld [vmem:[#allocation5 + $0x110] sm:$0xff] }
 0x62d   :  { %v3722_v35 = vpop.eup %3721 }
 0x62e   :  { %v1152_v28 = vadd.f32 %v1151_v27, %v4208_v17  ;;  %v1154_v33 = vsub.f32 1.0, %v3722_v35  ;;  %v1156_v1 = vmul.f32 %v3722_v35, %v4382_v54  ;;  %v1439_v17 = vld [vmem:[#allocation5 + $0x170] sm:$0xff]  ;;  %v1428_v27 = vld [vmem:[#allocation5 + $0x118] sm:$0xff] }
 0x62f   :  { %v1424_v35 = vld [vmem:[#allocation5 + $0xf8] sm:$0xff] }
 0x630   :  { %3723 = vtanh.f32 %v1152_v28  ;;  %v1426_v28 = vld [vmem:[#allocation5 + $0x108] sm:$0xff] }
 0x63d   :  { %v3724_v14 = vpop.eup %3723 }
 0x63e   :  { %v1155_v24 = vmul.f32 %v3724_v14, %v1154_v33  ;;  %v1425_v33 = vld [vmem:[#allocation5 + $0x100] sm:$0xff]  ;;  %v1423_v14 = vld [vmem:[#allocation5 + $0xf0] sm:$0xff] }
 0x640   :  { %v4408_v34 = vadd.f32 %v1156_v1, %v1155_v24  ;;  %v1421_v24 = vld [vmem:[#allocation5 + $0xe0] sm:$0xff]  ;;  %v1422_v1 = vld [vmem:[#allocation5 + $0xe8] sm:$0xff] }
 0x642   :  { %3193 = vst [vmem:[%s4919_s13 + $0x28] sm:$0xff] %v4408_v34  ;;  %v1167_v36 = vpack.c.bf16 %v4408_v34, %v4408_v34 }
 0x644   :  { %3194 = vmatmul.mubr.msk.bf16.vlgmr.msra.gmra.mxu0 %vm471_vm1, %v1167_v36  ;;  %3483 = vmatmul.mubr.msk.bf16.vlgmr.msra.gmra.mxu1 %vm471_vm1, %v1167_v36  ;;  %v1420_v36 = vld [vmem:[#allocation5 + $0xd8] sm:$0xff] }
 0x645   :  { %1300 = vmatpush1.bf16.msra.mxu0 %v4112_v49  ;;  %3487 = vmatpush3.bf16.msra.mxu1 %v4158_v62 }
 0x646   :  { %1301 = vmatprep.subr.bf16.mxu0 %v4120_v51  ;;  %3488 = vmatprep.subr.bf16.mxu1 %v3999_v0 }
 0x647   :  { %1319 = vmatprep.mubr.bf16.mxu0 %v4000_v61  ;;  %3490 = vmatprep.mubr.msk.bf16.mxu1 %vm4001_vm0, %v3999_v0 }
 0x649   :  { %1302 = vmatpush1.bf16.msra.mxu0 %v4130_v55  ;;  %3489 = vmatpush3.bf16.msra.mxu1 %v4167_v63 }
 0x64a   :  { %1475 = vmatprep.subr.mxu0 %v1439_v17  ;;  %3494 = vmatprep.subr.mxu1 %v1440_v37  ;;  %v1418_v17 = vld [vmem:[#allocation5 + $0xc8] sm:$0xff] }
 0x704   :  { %v1205_v49 = vpop.f32.mrf.mxu0  ;;  %v1246_v38 = vpop.f32.mrf.mxu1 }
 0x705   :  { %v1252_v62 = vadd.f32 %v1205_v49, %v4258_v6  ;;  %v1266_v56 = vadd.f32 %v4269_v26, %v1246_v38  ;;  %v1417_v49 = vld [vmem:[#allocation5 + $0xc0] sm:$0xff]  ;;  %v1415_v38 = vld [vmem:[#allocation5 + $0xb0] sm:$0xff] }
 0x706   :  { %v1207_v51 = vpop.f32.mrf.mxu0  ;;  %v3484_v41 = vpop.f32.mrf.mxu1 }
 0x707   :  { %v3196_v7 = vmul.f32 -1.442695, %v1252_v62  ;;  %v1259_v55 = vadd.f32 %v1207_v51, %v4261_v12  ;;  %v1416_v62 = vld [vmem:[#allocation5 + $0xb8] sm:$0xff]  ;;  %v1414_v51 = vld [vmem:[#allocation5 + $0xa8] sm:$0xff] }
 0x708   :  { %v1209_v48 = vpop.f32.mrf.mxu0  ;;  %v1249_v42 = vpop.f32.mrf.mxu1  ;;  %v1412_v41 = vld [vmem:[#allocation5 + $0x98] sm:$0xff] }
 0x709   :  { %3725 = vpow2.f32 %v3196_v7  ;;  %v3197_v47 = vmul.f32 -1.442695, %v1259_v55  ;;  %v1413_v7 = vld [vmem:[#allocation5 + $0xa0] sm:$0xff]  ;;  %v1411_v48 = vld [vmem:[#allocation5 + $0x90] sm:$0xff]  ;;  %v1406_v55 = vld [vmem:[#allocation5 + $0x68] sm:$0xff] }
 0x70a   :  { %v1210_v5 = vpop.f32.mrf.mxu0  ;;  %v3485_v45 = vpop.f32.mrf.mxu1  ;;  %v1409_v42 = vld [vmem:[#allocation5 + $0x80] sm:$0xff] }
 0x70b   :  { %3727 = vpow2.f32 %v3197_v47  ;;  %v1410_v5 = vld [vmem:[#allocation5 + $0x88] sm:$0xff]  ;;  %v1408_v45 = vld [vmem:[#allocation5 + $0x78] sm:$0xff]  ;;  %v1407_v47 = vld [vmem:[#allocation5 + $0x70] sm:$0xff] }
 0x716   :  { %v3726_v63 = vpop.eup %3725 }
 0x717   :  { %v1256_v50 = vadd.f32 1.0, %v3726_v63  ;;  %v1405_v63 = vld [vmem:[#allocation5 + $0x60] sm:$0xff] }
 0x718   :  { %v3728_v52 = vpop.eup %3727 }
 0x719   :  { %3729 = vrcp.f32 %v1256_v50  ;;  %v1263_v53 = vadd.f32 1.0, %v3728_v52  ;;  %v1403_v50 = vld [vmem:[#allocation5 + $0x50] sm:$0xff]  ;;  %v1404_v52 = vld [vmem:[#allocation5 + $0x58] sm:$0xff] }
 0x71b   :  { %3731 = vrcp.f32 %v1263_v53  ;;  %v1402_v53 = vld [vmem:[#allocation5 + $0x48] sm:$0xff] }
 0x726   :  { %v3730_v6 = vpop.eup %3729 }
 0x727   :  { %v1267_v21 = vmul.f32 %v3730_v6, %v1266_v56  ;;  %v1400_v56 = vld [vmem:[#allocation5 + $0x38] sm:$0xff]  ;;  %v1401_v6 = vld [vmem:[#allocation5 + $0x40] sm:$0xff] }
 0x728   :  { %v3732_v39 = vpop.eup %3731 }
 0x729   :  { %v1268_v57 = vadd.f32 %v1267_v21, %v4227_v29  ;;  %v1270_v59 = vsub.f32 1.0, %v3732_v39  ;;  %v1272_v12 = vmul.f32 %v3732_v39, %v4408_v34  ;;  %v1437_v29 = vld [vmem:[#allocation5 + $0x160] sm:$0xff]  ;;  %v1399_v21 = vld [vmem:[#allocation5 + $0x30] sm:$0xff]  ;;  %v1398_v39 = vld [vmem:[#allocation5 + $0x28] sm:$0xff] }
 0x72b   :  { %3733 = vtanh.f32 %v1268_v57  ;;  %v1397_v57 = vld [vmem:[#allocation5 + $0x20] sm:$0xff] }
 0x738   :  { %v3734_v60 = vpop.eup %3733 }
 0x739   :  { %v1271_v2 = vmul.f32 %v3734_v60, %v1270_v59  ;;  %v1396_v59 = vld [vmem:[#allocation5 + $0x18] sm:$0xff]  ;;  %v1394_v60 = vld [vmem:[#allocation5 + $0x8] sm:$0xff] }
 0x73b   :  { %v4432_v4 = vadd.f32 %v1272_v12, %v1271_v2  ;;  %v1395_v2 = vld [vmem:[#allocation5 + $0x10] sm:$0xff]  ;;  %v1393_v12 = vld [vmem:[#allocation5] sm:$0xff] }
 0x73d   :  { %3198 = vst [vmem:[%s4919_s13 + $0x30] sm:$0xff] %v4432_v4  ;;  %v1283_v9 = vpack.c.bf16 %v4432_v4, %v4432_v4 }
 0x73f   :  { %3199 = vmatmul.mubr.msk.bf16.vlgmr.msra.gmra.mxu0 %vm471_vm1, %v1283_v9  ;;  %3491 = vmatmul.mubr.msk.bf16.vlgmr.msra.gmra.mxu1 %vm471_vm1, %v1283_v9 }
 0x740   :  { %1476 = vmatpush1.msra.mxu0 %v1438_v13  ;;  %3495 = vmatpush3.msra.mxu1 %v1440_v37  ;;  %v1419_v37 = vld [vmem:[#allocation5 + $0xd0] sm:$0xff] }
 0x741   :  { %1477 = vmatprep.subr.mxu0 %v1436_v43  ;;  %3496 = vmatprep.subr.mxu1 %v1437_v29 }
 0x742   :  { %3526 = vmatprep.mubr.f32.mxu1 %v4274_v44  ;;  %1478 = vmatpush1.msra.mxu0 %v1435_v31 }
 0x743   :  { %3497 = vmatpush3.msra.mxu1 %v1437_v29  ;;  %1479 = vmatprep.subr.mxu0 %v1433_v10 }
 0x744   :  { %3498 = vmatprep.subr.mxu1 %v1434_v16  ;;  %1480 = vmatpush1.msra.mxu0 %v1432_v46 }
 0x745   :  { %3499 = vmatpush3.msra.mxu1 %v1434_v16  ;;  %1481 = vmatprep.subr.mxu0 %v1430_v23  ;;  %v296_v16 = vadd.f32 %v4295_v8, %v4230_v30 }
 0x746   :  { %3500 = vmatprep.subr.mxu1 %v1431_v18  ;;  %1482 = vmatpush1.msra.mxu0 %v1429_v20 }
 0x747   :  { %3501 = vmatpush3.msra.mxu1 %v1431_v18  ;;  %1483 = vmatprep.subr.mxu0 %v1427_v58 }
 0x748   :  { %3502 = vmatprep.subr.mxu1 %v1428_v27  ;;  %1484 = vmatpush1.msra.mxu0 %v1426_v28 }
 0x749   :  { %3503 = vmatpush3.msra.mxu1 %v1428_v27  ;;  %1485 = vmatprep.subr.mxu0 %v1424_v35 }
 0x74a   :  { %3504 = vmatprep.subr.mxu1 %v1425_v33  ;;  %1486 = vmatpush1.msra.mxu0 %v1423_v14 }
 0x74b   :  { %3505 = vmatpush3.msra.mxu1 %v1425_v33  ;;  %1487 = vmatprep.subr.mxu0 %v1421_v24 }
 0x74c   :  { %3506 = vmatprep.subr.mxu1 %v1422_v1  ;;  %1488 = vmatpush1.msra.mxu0 %v1420_v36 }
 0x74d   :  { %3507 = vmatpush3.msra.mxu1 %v1422_v1  ;;  %1489 = vmatprep.subr.mxu0 %v1418_v17 }
 0x74e   :  { %3508 = vmatprep.subr.mxu1 %v1419_v37  ;;  %1490 = vmatpush1.msra.mxu0 %v1417_v49 }
 0x74f   :  { %3509 = vmatpush3.msra.mxu1 %v1419_v37  ;;  %1491 = vmatprep.subr.mxu0 %v1415_v38 }
 0x750   :  { %3510 = vmatprep.subr.mxu1 %v1416_v62  ;;  %1492 = vmatpush1.msra.mxu0 %v1414_v51 }
 0x751   :  { %3511 = vmatpush3.msra.mxu1 %v1416_v62  ;;  %1493 = vmatprep.subr.mxu0 %v1412_v41  ;;  %v1449_v41 = vld [vmem:[%s4913_s7] sm:$0x7] }
 0x752   :  { %3512 = vmatprep.subr.mxu1 %v1413_v7  ;;  %1494 = vmatpush1.msra.mxu0 %v1411_v48 }
 0x753   :  { %3513 = vmatpush3.msra.mxu1 %v1413_v7  ;;  %1495 = vmatprep.subr.mxu0 %v1409_v42  ;;  %v4541_v42 = vrot.slane %v1449_v41, %v4202_v11 }
 0x754   :  { %3514 = vmatprep.subr.mxu1 %v1410_v5  ;;  %1496 = vmatpush1.msra.mxu0 %v1408_v45 }
 0x755   :  { %3515 = vmatpush3.msra.mxu1 %v1410_v5  ;;  %1497 = vmatprep.subr.mxu0 %v1406_v55 }
 0x756   :  { %3516 = vmatprep.subr.mxu1 %v1407_v47  ;;  %1498 = vmatpush1.msra.mxu0 %v1405_v63 }
 0x757   :  { %3517 = vmatpush3.msra.mxu1 %v1407_v47  ;;  %1499 = vmatprep.subr.mxu0 %v1403_v50 }
 0x758   :  { %3518 = vmatprep.subr.mxu1 %v1404_v52  ;;  %1500 = vmatpush1.msra.mxu0 %v1402_v53 }
 0x759   :  { %3519 = vmatpush3.msra.mxu1 %v1404_v52  ;;  %1501 = vmatprep.subr.mxu0 %v1400_v56  ;;  %v4549_v52 = vrot.slane %v1449_v41, %v4218_v22 }
 0x75a   :  { %3520 = vmatprep.subr.mxu1 %v1401_v6  ;;  %1502 = vmatpush1.msra.mxu0 %v1399_v21 }
 0x75b   :  { %3521 = vmatpush3.msra.mxu1 %v1401_v6  ;;  %1503 = vmatprep.subr.mxu0 %v1397_v57 }
 0x75c   :  { %3522 = vmatprep.subr.mxu1 %v1398_v39  ;;  %1504 = vmatpush1.msra.mxu0 %v1396_v59 }
 0x75d   :  { %3523 = vmatpush3.msra.mxu1 %v1398_v39  ;;  %1505 = vmatprep.subr.mxu0 %v1394_v60 }
 0x75e   :  { %3524 = vmatprep.subr.mxu1 %v1395_v2  ;;  %1506 = vmatpush1.msra.mxu0 %v1393_v12 }
 0x75f   :  { %1539 = vmatprep.mubr.f32.mxu0 %v3999_v0  ;;  %3525 = vmatpush3.msra.mxu1 %v1395_v2 }
 0x760   :  { %1540 = vmatmul.mubr.f32.vlgmr.msra.gmra.mxu0 %v4274_v44  ;;  %3527 = vmatmul.mubr.f32.vlgmr.msra.gmra.mxu1 %v4304_v40  ;;  %v4467_v44 = vld [vmem:[%s4912_s6 + $0x1c] ss:$12 sps:$4 sm:$0xff]  }
 0x761   :  { %3529 = vmatprep.mubr.f32.mxu1 %v4330_v32  ;;  %1545 = vmatprep.mubr.f32.mxu0 %v3999_v0 }
 0x762   :  { %1776 = vmatprep.subr.bf16.mxu1 %v4467_v44  ;;  %1921 = vmatprep.subr.bf16.mxu0 %v4467_v44 }
 0x764   :  { %1546 = vmatmul.mubr.f32.gmra.mxu0 %v4304_v40  ;;  %3530 = vmatmul.mubr.f32.gmra.mxu1 %v4356_v15  ;;  %v4472_v40 = vld [vmem:[%s4912_s6 + $0x18] ss:$12 sps:$4 sm:$0xff]  }
 0x765   :  { %3532 = vmatprep.mubr.f32.mxu1 %v4382_v54  ;;  %1551 = vmatprep.mubr.f32.mxu0 %v3999_v0 }
 0x766   :  { %1777 = vmatpush1.bf16.msra.mxu1 %v4472_v40  ;;  %1922 = vmatpush1.bf16.msra.mxu0 %v4472_v40 }
 0x768   :  { %1552 = vmatmul.mubr.f32.gmra.mxu0 %v4330_v32  ;;  %3533 = vmatmul.mubr.f32.gmra.mxu1 %v4408_v34  ;;  %v4481_v32 = vld [vmem:[%s4912_s6 + $0x4] ss:$12 sps:$4 sm:$0xff]  }
 0x769   :  { %3535 = vmatprep.mubr.f32.mxu1 %v4432_v4  ;;  %1557 = vmatprep.mubr.f32.mxu0 %v3999_v0 }
 0x76a   :  { %1778 = vmatprep.subr.bf16.mxu1 %v4481_v32  ;;  %1923 = vmatprep.subr.bf16.mxu0 %v4481_v32 }
 0x76c   :  { %1558 = vmatmul.mubr.f32.gmra.mxu0 %v4356_v15  ;;  %v4486_v15 = vld [vmem:[%s4912_s6] ss:$12 sps:$4 sm:$0xff]  }
 0x76d   :  { %1563 = vmatprep.mubr.f32.mxu0 %v3999_v0  ;;  %1779 = vmatpush1.bf16.msra.mxu1 %v4486_v15 }
 0x76e   :  { %1924 = vmatpush1.bf16.msra.mxu0 %v4486_v15  ;;  %3538 = vmatprep.subr.bf16.mxu1 %v3999_v0 }
 0x76f   :  { %2066 = vmatprep.subr.bf16.mxu0 %v4467_v44 }
 0x770   :  { %1564 = vmatmul.mubr.f32.gmra.mxu0 %v4382_v54 }
 0x771   :  { %1569 = vmatprep.mubr.f32.mxu0 %v3999_v0 }
 0x774   :  { %1570 = vmatmul.mubr.f32.gmra.mxu0 %v4408_v34 }
 0x775   :  { %1575 = vmatprep.mubr.f32.mxu0 %v3999_v0 }
 0x778   :  { %1576 = vmatmul.mubr.f32.gmra.mxu0 %v4432_v4 }
 0x779   :  { %1581 = vmatprep.mubr.f32.mxu0 %v3999_v0 }
 0x7ff   :  { %v1321_v54 = vpop.f32.mrf.mxu0  ;;  %v1362_v34 = vpop.f32.mrf.mxu1 }
 0x800   :  { %v1368_v9 = vadd.f32 %v1321_v54, %v4264_v19  ;;  %v1382_v19 = vadd.f32 %v4269_v26, %v1362_v34  ;;  %v4515_v26 = vld [vmem:[%s4912_s6 + $0x8] ss:$12 sps:$4 sm:$0xff]  }
 0x801   :  { %v1323_v13 = vpop.f32.mrf.mxu0  ;;  %v3492_v43 = vpop.f32.mrf.mxu1 }
 0x802   :  { %v3201_v29 = vmul.f32 -1.442695, %v1368_v9  ;;  %v1375_v18 = vadd.f32 %v1323_v13, %v296_v16 }
 0x803   :  { %v1325_v31 = vpop.f32.mrf.mxu0  ;;  %v1365_v10 = vpop.f32.mrf.mxu1 }
 0x804   :  { %3735 = vpow2.f32 %v3201_v29  ;;  %v3202_v20 = vmul.f32 -1.442695, %v1375_v18 }
 0x805   :  { %v1326_v46 = vpop.f32.mrf.mxu0  ;;  %v3493_v23 = vpop.f32.mrf.mxu1 }
 0x806   :  { %3737 = vpow2.f32 %v3202_v20 }
 0x811   :  { %v3736_v58 = vpop.eup %3735 }
 0x812   :  { %v1372_v27 = vadd.f32 1.0, %v3736_v58 }
 0x813   :  { %v3738_v28 = vpop.eup %3737 }
 0x814   :  { %3739 = vrcp.f32 %v1372_v27  ;;  %v1379_v35 = vadd.f32 1.0, %v3738_v28  ;;  %v4557_v27 = vld [vmem:[%s4914_s8] ss:$0 sm:$0xff] }
 0x816   :  { %3741 = vrcp.f32 %v1379_v35 }
 0x820   :  { %v1541_v7 = vpop.f32.mrf.mxu0 }
 0x821   :  { %v3740_v33 = vpop.eup %3739  ;;  %v1542_v47 = vadd.f32 %v1541_v7, %v4541_v42 }
 0x822   :  { %v1383_v14 = vmul.f32 %v3740_v33, %v1382_v19  ;;  %v1543_v5 = vpop.f32.mrf.mxu0  ;;  %v4561_v33 = vrot.slane %v1449_v41, %v4186_v3 }
 0x823   :  { %v3742_v30 = vpop.eup %3741  ;;  %v1544_v39 = vadd.f32 %v1543_v5, %v4549_v52 }
 0x824   :  { %v1384_v24 = vadd.f32 %v1383_v14, %v4223_v25  ;;  %v1386_v8 = vsub.f32 1.0, %v3742_v30  ;;  %v1388_v17 = vmul.f32 %v3742_v30, %v4432_v4  ;;  %v4507_v25 = vld [vmem:[%s4912_s6 + $0x20] ss:$12 sps:$4 sm:$0xff]   ;;  %v3528_v4 = vpop.f32.mrf.mxu1  ;;  %v1547_v63 = vpop.f32.mrf.mxu0 }
 0x825   :  { %v1548_v6 = vadd.f32 %v1547_v63, %v4541_v42 }
 0x826   :  { %3743 = vtanh.f32 %v1384_v24  ;;  %v1654_v49 = vpop.f32.mrf.mxu1  ;;  %v1549_v59 = vpop.f32.mrf.mxu0 }
 0x827   :  { %v1550_v34 = vadd.f32 %v1549_v59, %v4549_v52  ;;  %v1655_v30 = vadd.f32 %v1654_v49, %v4561_v33 }
 0x828   :  { %v4529_v38 = vpop.f32.mrf.mxu1 }
 0x82a   :  { %v4531_v62 = vpop.f32.mrf.mxu1 }
 0x82c   :  { %v4533_v51 = vpop.f32.mrf.mxu1 }
 0x82e   :  { %v4538_v48 = vpop.f32.mrf.mxu1 }
 0x833   :  { %v3744_v1 = vpop.eup %3743 }
 0x834   :  { %v1387_v36 = vmul.f32 %v3744_v1, %v1386_v8 }
 0x836   :  { %v1389_v37 = vadd.f32 %v1388_v17, %v1387_v36 }
 0x838   :  { %3203 = vst [vmem:[%s4919_s13 + $0x38] sm:$0xff] %v1389_v37  ;;  %1582 = vmatmul.mubr.f32.gmra.mxu0 %v1389_v37  ;;  %3536 = vmatmul.mubr.f32.gmra.mxu1 %v1389_v37  ;;  %v1660_v37 = vadd.f32 %v3528_v4, %v4561_v33 }
 0x839   :  { %1796 = vmatprep.mubr.bf16.mxu1 %v4000_v61  ;;  %1941 = vmatprep.mubr.bf16.mxu0 %v4000_v61 }
 0x83c   :  { %1797 = vmatmul.mubr.bf16.vlgmr.msra.gmra.mxu1 %v4000_v61 }
 0x83d   :  { %3539 = vmatpush3.bf16.msra.mxu1 %v4507_v25  ;;  %3542 = vmatprep.mubr.msk.bf16.mxu1 %vm4001_vm0, %v3999_v0 }
 0x83e   :  { %3540 = vmatprep.subr.bf16.mxu1 %v3999_v0 }
 0x841   :  { %3541 = vmatpush3.bf16.msra.mxu1 %v4515_v26 }
 0x842   :  { %3546 = vmatprep.subr.bf16.mxu1 %v3999_v0 }
 0x844   :  { %3543 = vmatmul.mubr.bf16.vlgmr.msra.gmra.mxu1 %v4000_v61 }
 0x845   :  { %3547 = vmatpush3.bf16.msra.mxu1 %v4507_v25  ;;  %3550 = vmatprep.mubr.msk.bf16.mxu1 %vm4001_vm0, %v3999_v0 }
 0x846   :  { %3548 = vmatprep.subr.bf16.mxu1 %v3999_v0 }
 0x849   :  { %3549 = vmatpush3.bf16.msra.mxu1 %v4515_v26 }
 0x84a   :  { %3554 = vmatprep.subr.bf16.mxu1 %v3999_v0 }
 0x8f8   :  { %v4543_v45 = vpop.f32.mrf.mxu1 }
 0x8fa   :  { %v4545_v55 = vpop.f32.mrf.mxu1 }
 0x8fc   :  { %v1798_v50 = vpop.f32.mrf.mxu1 }
 0x8fd   :  { %v1848_v53 = vadd.f32 %v1798_v50, %v1542_v47 }
 0x8fe   :  { %v1800_v56 = vpop.f32.mrf.mxu1 }
 0x8ff   :  { %v3211_v21 = vmul.f32 -1.442695, %v1848_v53  ;;  %v1862_v12 = vadd.f32 %v1800_v56, %v1544_v39 }
 0x900   :  { %v1802_v57 = vpop.f32.mrf.mxu1 }
 0x901   :  { %3745 = vpow2.f32 %v3211_v21  ;;  %v1849_v60 = vadd.f32 %v1802_v57, %v1548_v6  ;;  %v3213_v29 = vmul.f32 -1.442695, %v1862_v12 }
 0x902   :  { %v1804_v2 = vpop.f32.mrf.mxu1 }
 0x903   :  { %v3212_v54 = vmul.f32 -1.442695, %v1849_v60  ;;  %v1863_v13 = vadd.f32 %v1804_v2, %v1550_v34  ;;  %v1553_v60 = vpop.f32.mrf.mxu0 }
 0x904   :  { %v1841_v9 = vpop.f32.mrf.mxu1 }
 0x905   :  { %3747 = vpow2.f32 %v3212_v54  ;;  %v3214_v10 = vmul.f32 -1.442695, %v1863_v13  ;;  %v1876_v19 = vadd.f32 %v4557_v27, %v1841_v9  ;;  %v1555_v2 = vpop.f32.mrf.mxu0 }
 0x906   :  { %v3544_v43 = vpop.f32.mrf.mxu1  ;;  %3749 = vpow2.f32 %v3213_v29 }
 0x907   :  { %3751 = vpow2.f32 %v3214_v10  ;;  %v1559_v12 = vpop.f32.mrf.mxu0 }
 0x908   :  { %v1844_v31 = vpop.f32.mrf.mxu1 }
 0x909   :  { %v1877_v36 = vadd.f32 %v4557_v27, %v1844_v31  ;;  %v1561_v54 = vpop.f32.mrf.mxu0 }
 0x90a   :  { %v3545_v16 = vpop.f32.mrf.mxu1 }
 0x90b   :  { %v4593_v34 = vpop.f32.mrf.mxu0  ;;  %v1554_v16 = vadd.f32 %v1553_v60, %v4541_v42  ;;  %v1665_v60 = vadd.f32 %v4531_v62, %v4561_v33 }
 0x90d   :  { %v4595_v9 = vpop.f32.mrf.mxu0 }
 0x90e   :  { %v3746_v46 = vpop.eup %3745 }
 0x90f   :  { %v1856_v23 = vadd.f32 1.0, %v3746_v46  ;;  %v4597_v13 = vpop.f32.mrf.mxu0 }
 0x911   :  { %3753 = vrcp.f32 %v1856_v23  ;;  %v4599_v43 = vpop.f32.mrf.mxu0 }
 0x912   :  { %v3748_v18 = vpop.eup %3747 }
 0x913   :  { %v1857_v20 = vadd.f32 1.0, %v3748_v18  ;;  %v3750_v58 = vpop.eup %3749  ;;  %v4601_v29 = vpop.f32.mrf.mxu0 }
 0x914   :  { %v3752_v28 = vpop.eup %3751  ;;  %v1870_v35 = vadd.f32 1.0, %v3750_v58 }
 0x915   :  { %3755 = vrcp.f32 %v1857_v20  ;;  %v1871_v24 = vadd.f32 1.0, %v3752_v28  ;;  %v4603_v31 = vpop.f32.mrf.mxu0  ;;  %v1560_v28 = vadd.f32 %v1559_v12, %v4541_v42 }
 0x916   :  { %3757 = vrcp.f32 %v1870_v35 }
 0x917   :  { %3759 = vrcp.f32 %v1871_v24  ;;  %v4605_v10 = vpop.f32.mrf.mxu0  ;;  %v1556_v24 = vadd.f32 %v1555_v2, %v4549_v52 }
 0x91e   :  { %v3754_v14 = vpop.eup %3753 }
 0x91f   :  { %v1878_v8 = vmul.f32 %v3754_v14, %v1876_v19 }
 0x921   :  { %v1880_v1 = vadd.f32 %v1878_v8, %v1655_v30 }
 0x922   :  { %v3756_v17 = vpop.eup %3755 }
 0x923   :  { %3761 = vtanh.f32 %v1880_v1  ;;  %v1879_v7 = vmul.f32 %v3756_v17, %v1877_v36  ;;  %v3758_v47 = vpop.eup %3757 }
 0x924   :  { %v3760_v41 = vpop.eup %3759  ;;  %v1884_v63 = vsub.f32 1.0, %v3758_v47  ;;  %v1888_v53 = vmul.f32 0.0, %v3758_v47 }
 0x925   :  { %v1881_v5 = vadd.f32 %v1879_v7, %v1660_v37  ;;  %v1885_v49 = vsub.f32 1.0, %v3760_v41  ;;  %v1889_v57 = vmul.f32 0.0, %v3760_v41  ;;  %v1562_v37 = vadd.f32 %v1561_v54, %v4549_v52 }
 0x927   :  { %3763 = vtanh.f32 %v1881_v5 }
 0x930   :  { %v3762_v50 = vpop.eup %3761 }
 0x931   :  { %v1886_v56 = vmul.f32 %v3762_v50, %v1884_v63 }
 0x933   :  { %v4566_v6 = vadd.f32 %v1888_v53, %v1886_v56 }
 0x934   :  { %v3764_v21 = vpop.eup %3763 }
 0x935   :  { %1894 = vst [vmem:[%s4920_s14] sm:$0xff] %v4566_v6  ;;  %v1887_v4 = vmul.f32 %v3764_v21, %v1885_v49 }
 0x937   :  { %v4572_v39 = vadd.f32 %v1889_v57, %v1887_v4 }
 0x939   :  { %1895 = vst [vmem:[%s4920_s14 + $0x8] sm:$0xff] %v4572_v39  ;;  %v1905_v59 = vpack.c.bf16 %v4572_v39, %v4566_v6 }
 0x93b   :  { %3215 = vmatmul.mubr.msk.bf16.vlgmr.msra.gmra.mxu0 %vm471_vm1, %v1905_v59  ;;  %3551 = vmatmul.mubr.msk.bf16.vlgmr.msra.gmra.mxu1 %vm471_vm1, %v1905_v59 }
 0x93c   :  { %2067 = vmatpush1.bf16.msra.mxu0 %v4472_v40  ;;  %3555 = vmatpush3.bf16.msra.mxu1 %v4507_v25 }
 0x93d   :  { %2068 = vmatprep.subr.bf16.mxu0 %v4481_v32  ;;  %3556 = vmatprep.subr.bf16.mxu1 %v3999_v0 }
 0x93e   :  { %2086 = vmatprep.mubr.bf16.mxu0 %v4000_v61  ;;  %3558 = vmatprep.mubr.msk.bf16.mxu1 %vm4001_vm0, %v3999_v0 }
 0x940   :  { %2069 = vmatpush1.bf16.msra.mxu0 %v4486_v15  ;;  %3557 = vmatpush3.bf16.msra.mxu1 %v4515_v26 }
 0x941   :  { %2211 = vmatprep.subr.bf16.mxu0 %v4467_v44  ;;  %3562 = vmatprep.subr.bf16.mxu1 %v3999_v0  ;;  %v4607_v44 = vpop.f32.mrf.mxu0 }
 0x9fb   :  { %v1943_v46 = vpop.f32.mrf.mxu0  ;;  %v1986_v23 = vpop.f32.mrf.mxu1 }
 0x9fc   :  { %v1993_v18 = vadd.f32 %v1943_v46, %v1554_v16  ;;  %v2021_v57 = vadd.f32 %v4557_v27, %v1986_v23  ;;  %v1670_v46 = vadd.f32 %v4529_v38, %v4561_v33 }
 0x9fd   :  { %v1945_v20 = vpop.f32.mrf.mxu0  ;;  %v3552_v58 = vpop.f32.mrf.mxu1 }
 0x9fe   :  { %v3217_v35 = vmul.f32 -1.442695, %v1993_v18  ;;  %v2007_v1 = vadd.f32 %v1945_v20, %v1556_v24 }
 0x9ff   :  { %v1947_v19 = vpop.f32.mrf.mxu0  ;;  %v1989_v14 = vpop.f32.mrf.mxu1 }
 0xa00   :  { %3765 = vpow2.f32 %v3217_v35  ;;  %v1994_v30 = vadd.f32 %v1947_v19, %v1560_v28  ;;  %v3219_v5 = vmul.f32 -1.442695, %v2007_v1  ;;  %v2022_v54 = vadd.f32 %v4557_v27, %v1989_v14 }
 0xa01   :  { %v3553_v8 = vpop.f32.mrf.mxu1  ;;  %v1949_v17 = vpop.f32.mrf.mxu0 }
 0xa02   :  { %v3218_v36 = vmul.f32 -1.442695, %v1994_v30  ;;  %v2008_v7 = vadd.f32 %v1949_v17, %v1562_v37  ;;  %v2377_v17 = vld [vmem:[#allocation7 + $0x170] sm:$0xff]  ;;  %v4646_v37 = vld [vmem:[#allocation7 + $0x178] sm:$0xff] }
 0xa04   :  { %3767 = vpow2.f32 %v3218_v36  ;;  %v3220_v47 = vmul.f32 -1.442695, %v2008_v7 }
 0xa05   :  { %3769 = vpow2.f32 %v3219_v5 }
 0xa06   :  { %3771 = vpow2.f32 %v3220_v47 }
 0xa0d   :  { %v3766_v41 = vpop.eup %3765 }
 0xa0e   :  { %v2001_v63 = vadd.f32 1.0, %v3766_v41  ;;  %v1572_v41 = vadd.f32 %v4597_v13, %v4541_v42 }
 0xa10   :  { %3773 = vrcp.f32 %v2001_v63 }
 0xa11   :  { %v3768_v50 = vpop.eup %3767 }
 0xa12   :  { %v2002_v53 = vadd.f32 1.0, %v3768_v50  ;;  %v3770_v56 = vpop.eup %3769  ;;  %v1568_v50 = vadd.f32 %v4595_v9, %v4549_v52 }
 0xa13   :  { %v3772_v49 = vpop.eup %3771  ;;  %v2015_v21 = vadd.f32 1.0, %v3770_v56 }
 0xa14   :  { %3775 = vrcp.f32 %v2002_v53  ;;  %v2016_v59 = vadd.f32 1.0, %v3772_v49 }
 0xa15   :  { %3777 = vrcp.f32 %v2015_v21 }
 0xa16   :  { %3779 = vrcp.f32 %v2016_v59 }
 0xa1d   :  { %v3774_v4 = vpop.eup %3773 }
 0xa1e   :  { %v2023_v2 = vmul.f32 %v3774_v4, %v2021_v57  ;;  %v1574_v57 = vadd.f32 %v4599_v43, %v4549_v52  ;;  %v1675_v43 = vadd.f32 %v4538_v48, %v4561_v33 }
 0xa20   :  { %v2025_v12 = vadd.f32 %v2023_v2, %v1665_v60 }
 0xa21   :  { %v3776_v16 = vpop.eup %3775 }
 0xa22   :  { %3781 = vtanh.f32 %v2025_v12  ;;  %v2024_v18 = vmul.f32 %v3776_v16, %v2022_v54  ;;  %v3778_v23 = vpop.eup %3777 }
 0xa23   :  { %v3780_v58 = vpop.eup %3779  ;;  %v2029_v28 = vsub.f32 1.0, %v3778_v23  ;;  %v2033_v62 = vmul.f32 %v3778_v23, %v4566_v6 }
 0xa24   :  { %v2026_v20 = vadd.f32 %v2024_v18, %v1670_v46  ;;  %v2030_v24 = vsub.f32 1.0, %v3780_v58  ;;  %v2034_v1 = vmul.f32 %v3780_v58, %v4572_v39 }
 0xa26   :  { %3783 = vtanh.f32 %v2026_v20 }
 0xa2f   :  { %v3782_v35 = vpop.eup %3781 }
 0xa30   :  { %v2031_v19 = vmul.f32 %v3782_v35, %v2029_v28 }
 0xa32   :  { %v4620_v30 = vadd.f32 %v2033_v62, %v2031_v19  ;;  %v1680_v62 = vadd.f32 %v4533_v51, %v4561_v33 }
 0xa33   :  { %v3784_v14 = vpop.eup %3783 }
 0xa34   :  { %v2032_v8 = vmul.f32 %v3784_v14, %v2030_v24  ;;  %3221 = vst [vmem:[%s4920_s14 + $0x10] sm:$0xff] %v4620_v30 }
 0xa36   :  { %v4627_v38 = vadd.f32 %v2034_v1, %v2032_v8 }
 0xa38   :  { %3222 = vst [vmem:[%s4920_s14 + $0x18] sm:$0xff] %v4627_v38  ;;  %v2050_v36 = vpack.c.bf16 %v4627_v38, %v4620_v30 }
 0xa3a   :  { %3223 = vmatmul.mubr.msk.bf16.vlgmr.msra.gmra.mxu0 %vm471_vm1, %v2050_v36  ;;  %3559 = vmatmul.mubr.msk.bf16.vlgmr.msra.gmra.mxu1 %vm471_vm1, %v2050_v36 }
 0xa3b   :  { %2212 = vmatpush1.bf16.msra.mxu0 %v4472_v40  ;;  %3563 = vmatpush3.bf16.msra.mxu1 %v4507_v25  ;;  %v1566_v40 = vadd.f32 %v4593_v34, %v4541_v42 }
 0xa3c   :  { %2213 = vmatprep.subr.bf16.mxu0 %v4481_v32  ;;  %3564 = vmatprep.subr.bf16.mxu1 %v3999_v0 }
 0xa3d   :  { %2231 = vmatprep.mubr.bf16.mxu0 %v4000_v61  ;;  %3566 = vmatprep.mubr.msk.bf16.mxu1 %vm4001_vm0, %v3999_v0 }
 0xa3f   :  { %2214 = vmatpush1.bf16.msra.mxu0 %v4486_v15  ;;  %3565 = vmatpush3.bf16.msra.mxu1 %v4515_v26 }
 0xa40   :  { %2413 = vmatprep.subr.mxu0 %v2377_v17  ;;  %3570 = vmatprep.subr.mxu1 %v4646_v37 }
 0xafa   :  { %v2088_v32 = vpop.f32.mrf.mxu0  ;;  %v2131_v25 = vpop.f32.mrf.mxu1 }
 0xafb   :  { %v2138_v7 = vadd.f32 %v2088_v32, %v1566_v40  ;;  %v2166_v18 = vadd.f32 %v4557_v27, %v2131_v25 }
 0xafc   :  { %v2090_v5 = vpop.f32.mrf.mxu0  ;;  %v3560_v47 = vpop.f32.mrf.mxu1 }
 0xafd   :  { %v3225_v15 = vmul.f32 -1.442695, %v2138_v7  ;;  %v2152_v49 = vadd.f32 %v2090_v5, %v1568_v50  ;;  %v2373_v50 = vld [vmem:[#allocation7 + $0x150] sm:$0xff] }
 0xafe   :  { %v2092_v63 = vpop.f32.mrf.mxu0  ;;  %v2134_v26 = vpop.f32.mrf.mxu1 }
 0xaff   :  { %3785 = vpow2.f32 %v3225_v15  ;;  %v2139_v53 = vadd.f32 %v2092_v63, %v1572_v41  ;;  %v3227_v59 = vmul.f32 -1.442695, %v2152_v49  ;;  %v2167_v35 = vadd.f32 %v4557_v27, %v2134_v26  ;;  %v2376_v15 = vld [vmem:[#allocation7 + $0x168] sm:$0xff]  ;;  %v2374_v63 = vld [vmem:[#allocation7 + $0x158] sm:$0xff]  ;;  %v2375_v26 = vld [vmem:[#allocation7 + $0x160] sm:$0xff] }
 0xb00   :  { %v3561_v56 = vpop.f32.mrf.mxu1  ;;  %v2094_v34 = vpop.f32.mrf.mxu0  ;;  %v2370_v49 = vld [vmem:[#allocation7 + $0x138] sm:$0xff] }
 0xb01   :  { %v3226_v21 = vmul.f32 -1.442695, %v2139_v53  ;;  %v2153_v4 = vadd.f32 %v2094_v34, %v1574_v57  ;;  %v2371_v53 = vld [vmem:[#allocation7 + $0x140] sm:$0xff]  ;;  %v2372_v56 = vld [vmem:[#allocation7 + $0x148] sm:$0xff]  ;;  %v2369_v34 = vld [vmem:[#allocation7 + $0x130] sm:$0xff] }
 0xb02   :  { %v2367_v57 = vld [vmem:[#allocation7 + $0x120] sm:$0xff] }
 0xb03   :  { %3787 = vpow2.f32 %v3226_v21  ;;  %v3228_v60 = vmul.f32 -1.442695, %v2153_v4  ;;  %v2368_v21 = vld [vmem:[#allocation7 + $0x128] sm:$0xff]  ;;  %v2365_v4 = vld [vmem:[#allocation7 + $0x110] sm:$0xff] }
 0xb04   :  { %3789 = vpow2.f32 %v3227_v59  ;;  %v2366_v59 = vld [vmem:[#allocation7 + $0x118] sm:$0xff] }
 0xb05   :  { %3791 = vpow2.f32 %v3228_v60  ;;  %v2362_v60 = vld [vmem:[#allocation7 + $0xf8] sm:$0xff] }
 0xb0c   :  { %v3786_v13 = vpop.eup %3785 }
 0xb0d   :  { %v2146_v2 = vadd.f32 1.0, %v3786_v13  ;;  %v2363_v13 = vld [vmem:[#allocation7 + $0x100] sm:$0xff] }
 0xb0f   :  { %3793 = vrcp.f32 %v2146_v2  ;;  %v2361_v2 = vld [vmem:[#allocation7 + $0xf0] sm:$0xff] }
 0xb10   :  { %v3788_v12 = vpop.eup %3787 }
 0xb11   :  { %v2147_v9 = vadd.f32 1.0, %v3788_v12  ;;  %v3790_v54 = vpop.eup %3789  ;;  %v2359_v12 = vld [vmem:[#allocation7 + $0xe0] sm:$0xff] }
 0xb12   :  { %v3792_v16 = vpop.eup %3791  ;;  %v2160_v46 = vadd.f32 1.0, %v3790_v54  ;;  %v2358_v54 = vld [vmem:[#allocation7 + $0xd8] sm:$0xff] }
 0xb13   :  { %3795 = vrcp.f32 %v2147_v9  ;;  %v2161_v23 = vadd.f32 1.0, %v3792_v16  ;;  %v2360_v9 = vld [vmem:[#allocation7 + $0xe8] sm:$0xff] }
 0xb14   :  { %3797 = vrcp.f32 %v2160_v46  ;;  %v2356_v16 = vld [vmem:[#allocation7 + $0xc8] sm:$0xff]  ;;  %v2357_v46 = vld [vmem:[#allocation7 + $0xd0] sm:$0xff] }
 0xb15   :  { %3799 = vrcp.f32 %v2161_v23  ;;  %v2354_v23 = vld [vmem:[#allocation7 + $0xb8] sm:$0xff] }
 0xb1c   :  { %v3794_v20 = vpop.eup %3793 }
 0xb1d   :  { %v2168_v58 = vmul.f32 %v3794_v20, %v2166_v18  ;;  %v2355_v18 = vld [vmem:[#allocation7 + $0xc0] sm:$0xff]  ;;  %v2353_v20 = vld [vmem:[#allocation7 + $0xb0] sm:$0xff] }
 0xb1f   :  { %v2170_v28 = vadd.f32 %v2168_v58, %v1675_v43  ;;  %v2352_v43 = vld [vmem:[#allocation7 + $0xa8] sm:$0xff]  ;;  %v2350_v58 = vld [vmem:[#allocation7 + $0x98] sm:$0xff] }
 0xb20   :  { %v3796_v19 = vpop.eup %3795 }
 0xb21   :  { %3801 = vtanh.f32 %v2170_v28  ;;  %v2169_v24 = vmul.f32 %v3796_v19, %v2167_v35  ;;  %v3798_v8 = vpop.eup %3797  ;;  %v2351_v28 = vld [vmem:[#allocation7 + $0xa0] sm:$0xff]  ;;  %v2349_v35 = vld [vmem:[#allocation7 + $0x90] sm:$0xff] }
 0xb22   :  { %v3800_v1 = vpop.eup %3799  ;;  %v2174_v36 = vsub.f32 1.0, %v3798_v8  ;;  %v2178_v48 = vmul.f32 %v3798_v8, %v4620_v30  ;;  %v2347_v19 = vld [vmem:[#allocation7 + $0x80] sm:$0xff]  ;;  %v2345_v8 = vld [vmem:[#allocation7 + $0x70] sm:$0xff] }
 0xb23   :  { %v2171_v14 = vadd.f32 %v2169_v24, %v1680_v62  ;;  %v2175_v32 = vsub.f32 1.0, %v3800_v1  ;;  %v2179_v47 = vmul.f32 %v3800_v1, %v4627_v38  ;;  %v2348_v62 = vld [vmem:[#allocation7 + $0x88] sm:$0xff]  ;;  %v2346_v24 = vld [vmem:[#allocation7 + $0x78] sm:$0xff]  ;;  %v2343_v1 = vld [vmem:[#allocation7 + $0x60] sm:$0xff] }
 0xb25   :  { %3803 = vtanh.f32 %v2171_v14  ;;  %v2344_v14 = vld [vmem:[#allocation7 + $0x68] sm:$0xff] }
 0xb2e   :  { %v3802_v17 = vpop.eup %3801 }
 0xb2f   :  { %v2176_v40 = vmul.f32 %v3802_v17, %v2174_v36  ;;  %v2341_v36 = vld [vmem:[#allocation7 + $0x50] sm:$0xff]  ;;  %v2342_v17 = vld [vmem:[#allocation7 + $0x58] sm:$0xff] }
 0xb31   :  { %v4664_v25 = vadd.f32 %v2178_v48, %v2176_v40  ;;  %v2340_v40 = vld [vmem:[#allocation7 + $0x48] sm:$0xff]  ;;  %v2338_v48 = vld [vmem:[#allocation7 + $0x38] sm:$0xff] }
 0xb32   :  { %v3804_v7 = vpop.eup %3803 }
 0xb33   :  { %v2177_v5 = vmul.f32 %v3804_v7, %v2175_v32  ;;  %3229 = vst [vmem:[%s4920_s14 + $0x20] sm:$0xff] %v4664_v25  ;;  %v2339_v32 = vld [vmem:[#allocation7 + $0x40] sm:$0xff]  ;;  %v2337_v7 = vld [vmem:[#allocation7 + $0x30] sm:$0xff] }
 0xb35   :  { %v4671_v51 = vadd.f32 %v2179_v47, %v2177_v5  ;;  %v2335_v5 = vld [vmem:[#allocation7 + $0x20] sm:$0xff]  ;;  %v2336_v47 = vld [vmem:[#allocation7 + $0x28] sm:$0xff] }
 0xb37   :  { %3230 = vst [vmem:[%s4920_s14 + $0x28] sm:$0xff] %v4671_v51  ;;  %v2195_v41 = vpack.c.bf16 %v4671_v51, %v4664_v25 }
 0xb39   :  { %3231 = vmatmul.mubr.msk.bf16.vlgmr.msra.gmra.mxu0 %vm471_vm1, %v2195_v41  ;;  %3567 = vmatmul.mubr.msk.bf16.vlgmr.msra.gmra.mxu1 %vm471_vm1, %v2195_v41  ;;  %v2334_v41 = vld [vmem:[#allocation7 + $0x18] sm:$0xff] }
 0xb3a   :  { %2414 = vmatpush1.msra.mxu0 %v2376_v15  ;;  %3571 = vmatpush3.msra.mxu1 %v4646_v37  ;;  %v2364_v37 = vld [vmem:[#allocation7 + $0x108] sm:$0xff] }
 0xb3b   :  { %2415 = vmatprep.subr.mxu0 %v2374_v63  ;;  %3572 = vmatprep.subr.mxu1 %v2375_v26  ;;  %v2332_v15 = vld [vmem:[#allocation7 + $0x8] sm:$0xff]  ;;  %v2333_v63 = vld [vmem:[#allocation7 + $0x10] sm:$0xff] }
 0xb3c   :  { %3602 = vmatprep.mubr.f32.mxu1 %v4566_v6  ;;  %2416 = vmatpush1.msra.mxu0 %v2373_v50  ;;  %v4706_v50 = vld [vmem:[#allocation8 + $0x4] ss:$12 sps:$4 sm:$0xff]  }
 0xb3d   :  { %3573 = vmatpush3.msra.mxu1 %v2375_v26  ;;  %2417 = vmatprep.subr.mxu0 %v2371_v53  ;;  %v2331_v26 = vld [vmem:[#allocation7] sm:$0xff]  ;;  %v4714_v53 = vld [vmem:[#allocation8 + $0x8] ss:$12 sps:$4 sm:$0xff]  }
 0xb3e   :  { %3574 = vmatprep.subr.mxu1 %v2372_v56  ;;  %2418 = vmatpush1.msra.mxu0 %v2370_v49 }
 0xb3f   :  { %3575 = vmatpush3.msra.mxu1 %v2372_v56  ;;  %2419 = vmatprep.subr.mxu0 %v2368_v21  ;;  %v1578_v56 = vadd.f32 %v4601_v29, %v4541_v42 }
 0xb40   :  { %3576 = vmatprep.subr.mxu1 %v2369_v34  ;;  %2420 = vmatpush1.msra.mxu0 %v2367_v57 }
 0xb41   :  { %3577 = vmatpush3.msra.mxu1 %v2369_v34  ;;  %2421 = vmatprep.subr.mxu0 %v2365_v4 }
 0xb42   :  { %3578 = vmatprep.subr.mxu1 %v2366_v59  ;;  %2422 = vmatpush1.msra.mxu0 %v2364_v37 }
 0xb43   :  { %3579 = vmatpush3.msra.mxu1 %v2366_v59  ;;  %2423 = vmatprep.subr.mxu0 %v2362_v60  ;;  %v1584_v59 = vadd.f32 %v4605_v10, %v4541_v42 }
 0xb44   :  { %3580 = vmatprep.subr.mxu1 %v2363_v13  ;;  %2424 = vmatpush1.msra.mxu0 %v2361_v2  ;;  %v1580_v2 = vadd.f32 %v4603_v31, %v4549_v52 }
 0xb45   :  { %3581 = vmatpush3.msra.mxu1 %v2363_v13  ;;  %2425 = vmatprep.subr.mxu0 %v2359_v12 }
 0xb46   :  { %3582 = vmatprep.subr.mxu1 %v2360_v9  ;;  %2426 = vmatpush1.msra.mxu0 %v2358_v54 }
 0xb47   :  { %3583 = vmatpush3.msra.mxu1 %v2360_v9  ;;  %2427 = vmatprep.subr.mxu0 %v2356_v16 }
 0xb48   :  { %3584 = vmatprep.subr.mxu1 %v2357_v46  ;;  %2428 = vmatpush1.msra.mxu0 %v2355_v18 }
 0xb49   :  { %3585 = vmatpush3.msra.mxu1 %v2357_v46  ;;  %2429 = vmatprep.subr.mxu0 %v2353_v20  ;;  %v1586_v46 = vadd.f32 %v4607_v44, %v4549_v52  ;;  %v1685_v52 = vadd.f32 %v4545_v55, %v4561_v33 }
 0xb4a   :  { %3586 = vmatprep.subr.mxu1 %v2354_v23  ;;  %2430 = vmatpush1.msra.mxu0 %v2352_v43 }
 0xb4b   :  { %3587 = vmatpush3.msra.mxu1 %v2354_v23  ;;  %2431 = vmatprep.subr.mxu0 %v2350_v58 }
 0xb4c   :  { %3588 = vmatprep.subr.mxu1 %v2351_v28  ;;  %2432 = vmatpush1.msra.mxu0 %v2349_v35 }
 0xb4d   :  { %3589 = vmatpush3.msra.mxu1 %v2351_v28  ;;  %2433 = vmatprep.subr.mxu0 %v2347_v19 }
 0xb4e   :  { %3590 = vmatprep.subr.mxu1 %v2348_v62  ;;  %2434 = vmatpush1.msra.mxu0 %v2346_v24 }
 0xb4f   :  { %3591 = vmatpush3.msra.mxu1 %v2348_v62  ;;  %2435 = vmatprep.subr.mxu0 %v2344_v14 }
 0xb50   :  { %3592 = vmatprep.subr.mxu1 %v2345_v8  ;;  %2436 = vmatpush1.msra.mxu0 %v2343_v1 }
 0xb51   :  { %3593 = vmatpush3.msra.mxu1 %v2345_v8  ;;  %2437 = vmatprep.subr.mxu0 %v2341_v36  ;;  %v1690_v36 = vadd.f32 %v4543_v45, %v4561_v33 }
 0xb52   :  { %3594 = vmatprep.subr.mxu1 %v2342_v17  ;;  %2438 = vmatpush1.msra.mxu0 %v2340_v40 }
 0xb53   :  { %3595 = vmatpush3.msra.mxu1 %v2342_v17  ;;  %2439 = vmatprep.subr.mxu0 %v2338_v48 }
 0xb54   :  { %3596 = vmatprep.subr.mxu1 %v2339_v32  ;;  %2440 = vmatpush1.msra.mxu0 %v2337_v7 }
 0xb55   :  { %3597 = vmatpush3.msra.mxu1 %v2339_v32  ;;  %2441 = vmatprep.subr.mxu0 %v2335_v5 }
 0xb56   :  { %3598 = vmatprep.subr.mxu1 %v2336_v47  ;;  %2442 = vmatpush1.msra.mxu0 %v2334_v41 }
 0xb57   :  { %3599 = vmatpush3.msra.mxu1 %v2336_v47  ;;  %2443 = vmatprep.subr.mxu0 %v2332_v15 }
 0xb58   :  { %3600 = vmatprep.subr.mxu1 %v2333_v63  ;;  %2444 = vmatpush1.msra.mxu0 %v2331_v26 }
 0xb59   :  { %2477 = vmatprep.mubr.f32.mxu0 %v3999_v0  ;;  %3601 = vmatpush3.msra.mxu1 %v2333_v63 }
 0xb5a   :  { %2478 = vmatmul.mubr.f32.vlgmr.msra.gmra.mxu0 %v4566_v6  ;;  %3603 = vmatmul.mubr.f32.vlgmr.msra.gmra.mxu1 %v4572_v39  ;;  %v3659_v6 = vld [vmem:[#allocation8 + $0x1c] ss:$12 sps:$4 sm:$0xff]  }
 0xb5b   :  { %3605 = vmatprep.mubr.f32.mxu1 %v4620_v30  ;;  %2483 = vmatprep.mubr.f32.mxu0 %v3999_v0 }
 0xb5c   :  { %2720 = vmatprep.subr.bf16.mxu1 %v3659_v6 }
 0xb5e   :  { %2484 = vmatmul.mubr.f32.gmra.mxu0 %v4572_v39  ;;  %3606 = vmatmul.mubr.f32.gmra.mxu1 %v4627_v38  ;;  %v4701_v39 = vld [vmem:[#allocation8 + $0x18] ss:$12 sps:$4 sm:$0xff]  }
 0xb5f   :  { %3608 = vmatprep.mubr.f32.mxu1 %v4664_v25  ;;  %2489 = vmatprep.mubr.f32.mxu0 %v3999_v0 }
 0xb60   :  { %2721 = vmatpush1.bf16.msra.mxu1 %v4701_v39 }
 0xb61   :  { %2722 = vmatprep.subr.bf16.mxu1 %v4706_v50 }
 0xb62   :  { %2490 = vmatmul.mubr.f32.gmra.mxu0 %v4620_v30  ;;  %3609 = vmatmul.mubr.f32.gmra.mxu1 %v4671_v51  ;;  %v4704_v30 = vld [vmem:[#allocation8] ss:$12 sps:$4 sm:$0xff]  }
 0xb63   :  { %2495 = vmatprep.mubr.f32.mxu0 %v3999_v0 }
 0xb64   :  { %2723 = vmatpush1.bf16.msra.mxu1 %v4704_v30 }
 0xb65   :  { %2939 = vmatprep.subr.bf16.mxu1 %v3659_v6 }
 0xb66   :  { %2496 = vmatmul.mubr.f32.gmra.mxu0 %v4627_v38  ;;  %v4708_v38 = vld [vmem:[#allocation8 + $0x20] ss:$12 sps:$4 sm:$0xff]  }
 0xb67   :  { %2501 = vmatprep.mubr.f32.mxu0 %v3999_v0  ;;  %3614 = vmatprep.subr.bf16.mxu0 %v4708_v38 }
 0xb68   :  { %3615 = vmatpush3.bf16.msra.mxu0 %v4708_v38 }
 0xb69   :  { %3616 = vmatprep.subr.bf16.mxu0 %v4714_v53 }
 0xb6a   :  { %2502 = vmatmul.mubr.f32.gmra.mxu0 %v4664_v25 }
 0xb6b   :  { %2507 = vmatprep.mubr.f32.mxu0 %v3999_v0 }
 0xb6c   :  { %3617 = vmatpush3.bf16.msra.mxu0 %v4714_v53 }
 0xb6d   :  { %3622 = vmatprep.subr.bf16.mxu0 %v4708_v38 }
 0xb6e   :  { %2508 = vmatmul.mubr.f32.gmra.mxu0 %v4671_v51 }
 0xb6f   :  { %2513 = vmatprep.mubr.f32.mxu0 %v3999_v0 }
 0xbf9   :  { %v2233_v49 = vpop.f32.mrf.mxu0  ;;  %v2276_v21 = vpop.f32.mrf.mxu1 }
 0xbfa   :  { %v2283_v34 = vadd.f32 %v2233_v49, %v1578_v56  ;;  %v2311_v19 = vadd.f32 %v4557_v27, %v2276_v21 }
 0xbfb   :  { %v2235_v57 = vpop.f32.mrf.mxu0  ;;  %v3568_v4 = vpop.f32.mrf.mxu1 }
 0xbfc   :  { %v3233_v37 = vmul.f32 -1.442695, %v2283_v34  ;;  %v2297_v54 = vadd.f32 %v2235_v57, %v1580_v2  ;;  %v4768_v34 = vld [vmem:[%s4917_s11] sm:$0x7] }
 0xbfd   :  { %v2237_v60 = vpop.f32.mrf.mxu0  ;;  %v2279_v13 = vpop.f32.mrf.mxu1 }
 0xbfe   :  { %3805 = vpow2.f32 %v3233_v37  ;;  %v2284_v12 = vadd.f32 %v2237_v60, %v1584_v59  ;;  %v3235_v20 = vmul.f32 -1.442695, %v2297_v54  ;;  %v2312_v8 = vadd.f32 %v4557_v27, %v2279_v13 }
 0xbff   :  { %v3569_v9 = vpop.f32.mrf.mxu1  ;;  %v2239_v29 = vpop.f32.mrf.mxu0  ;;  %v4776_v59 = vrot.slane %v4768_v34, %v4202_v11 }
 0xc00   :  { %v3234_v16 = vmul.f32 -1.442695, %v2284_v12  ;;  %v2298_v18 = vadd.f32 %v2239_v29, %v1586_v46  ;;  %v4787_v9 = vrot.slane %v4768_v34, %v4218_v22 }
 0xc02   :  { %3807 = vpow2.f32 %v3234_v16  ;;  %v3236_v23 = vmul.f32 -1.442695, %v2298_v18 }
 0xc03   :  { %3809 = vpow2.f32 %v3235_v20 }
 0xc04   :  { %3811 = vpow2.f32 %v3236_v23 }
 0xc0b   :  { %v3806_v42 = vpop.eup %3805 }
 0xc0c   :  { %v2291_v10 = vadd.f32 1.0, %v3806_v42 }
 0xc0e   :  { %3813 = vrcp.f32 %v2291_v10 }
 0xc0f   :  { %v3808_v43 = vpop.eup %3807 }
 0xc10   :  { %v2292_v31 = vadd.f32 1.0, %v3808_v43  ;;  %v3810_v58 = vpop.eup %3809 }
 0xc11   :  { %v3812_v28 = vpop.eup %3811  ;;  %v2305_v35 = vadd.f32 1.0, %v3810_v58 }
 0xc12   :  { %3815 = vrcp.f32 %v2292_v31  ;;  %v2306_v24 = vadd.f32 1.0, %v3812_v28 }
 0xc13   :  { %3817 = vrcp.f32 %v2305_v35 }
 0xc14   :  { %3819 = vrcp.f32 %v2306_v24 }
 0xc1a   :  { %v4755_v26 = vpop.f32.mrf.mxu1 }
 0xc1b   :  { %v3814_v62 = vpop.eup %3813 }
 0xc1c   :  { %v2313_v44 = vmul.f32 %v3814_v62, %v2311_v19 }
 0xc1e   :  { %v2315_v14 = vadd.f32 %v2313_v44, %v1685_v52 }
 0xc1f   :  { %v3816_v1 = vpop.eup %3815 }
 0xc20   :  { %3821 = vtanh.f32 %v2315_v14  ;;  %v2314_v17 = vmul.f32 %v3816_v1, %v2312_v8  ;;  %v3818_v48 = vpop.eup %3817 }
 0xc21   :  { %v3820_v32 = vpop.eup %3819  ;;  %v2319_v7 = vsub.f32 1.0, %v3818_v48  ;;  %v2323_v55 = vmul.f32 %v3818_v48, %v4664_v25 }
 0xc22   :  { %v2316_v40 = vadd.f32 %v2314_v17, %v1690_v36  ;;  %v2320_v15 = vsub.f32 1.0, %v3820_v32  ;;  %v2324_v45 = vmul.f32 %v3820_v32, %v4671_v51 }
 0xc24   :  { %3823 = vtanh.f32 %v2316_v40 }
 0xc2d   :  { %v3822_v5 = vpop.eup %3821 }
 0xc2e   :  { %v2321_v47 = vmul.f32 %v3822_v5, %v2319_v7 }
 0xc30   :  { %v2325_v41 = vadd.f32 %v2323_v55, %v2321_v47 }
 0xc31   :  { %v3824_v63 = vpop.eup %3823 }
 0xc32   :  { %3237 = vst [vmem:[%s4920_s14 + $0x30] sm:$0xff] %v2325_v41  ;;  %v2322_v27 = vmul.f32 %v3824_v63, %v2320_v15  ;;  %2514 = vmatmul.mubr.f32.gmra.mxu0 %v2325_v41  ;;  %3611 = vmatprep.mubr.f32.mxu1 %v2325_v41 }
 0xc33   :  { %2519 = vmatprep.mubr.f32.mxu0 %v3999_v0  ;;  %v2479_v0 = vpop.f32.mrf.mxu0 }
 0xc34   :  { %v2326_v33 = vadd.f32 %v2324_v45, %v2322_v27  ;;  %v2480_v2 = vadd.f32 %v2479_v0, %v4776_v59 }
 0xc35   :  { %v2481_v25 = vpop.f32.mrf.mxu0 }
 0xc36   :  { %3238 = vst [vmem:[%s4920_s14 + $0x38] sm:$0xff] %v2326_v33  ;;  %2520 = vmatmul.mubr.f32.gmra.mxu0 %v2326_v33  ;;  %3612 = vmatmul.mubr.f32.gmra.mxu1 %v2326_v33  ;;  %v2482_v20 = vadd.f32 %v2481_v25, %v4787_v9 }
 0xc37   :  { %2740 = vmatprep.mubr.bf16.mxu1 %v4000_v61  ;;  %3618 = vmatprep.mubr.bf16.mxu0 %v4000_v61  ;;  %v2485_v51 = vpop.f32.mrf.mxu0 }
 0xc38   :  { %v2486_v11 = vadd.f32 %v2485_v51, %v4776_v59 }
 0xc39   :  { %v2487_v6 = vpop.f32.mrf.mxu0 }
 0xc3a   :  { %2741 = vmatmul.mubr.bf16.vlgmr.msra.gmra.mxu1 %v4000_v61  ;;  %3619 = vmatmul.mubr.bf16.vlgmr.msra.gmra.mxu0 %v4000_v61  ;;  %v2488_v58 = vadd.f32 %v2487_v6, %v4787_v9 }
 0xc3b   :  { %2750 = vmatprep.mubr.bf16.mxu1 %v4000_v61  ;;  %2940 = vmatpush1.bf16.msra.mxu1 %v4701_v39  ;;  %v4757_v39 = vpop.f32.mrf.mxu1 }
 0xc3c   :  { %2941 = vmatprep.subr.bf16.mxu1 %v4706_v50  ;;  %3623 = vmatpush3.bf16.msra.mxu0 %v4708_v38  ;;  %v2491_v50 = vpop.f32.mrf.mxu0 }
 0xc3d   :  { %3624 = vmatprep.subr.bf16.mxu0 %v4714_v53  ;;  %v4759_v38 = vpop.f32.mrf.mxu1  ;;  %v2492_v43 = vadd.f32 %v2491_v50, %v4776_v59 }
 0xc3e   :  { %v2493_v56 = vpop.f32.mrf.mxu0 }
 0xc3f   :  { %2942 = vmatpush1.bf16.msra.mxu1 %v4704_v30  ;;  %v4761_v49 = vpop.f32.mrf.mxu1  ;;  %v2494_v8 = vadd.f32 %v2493_v56, %v4787_v9 }
 0xc40   :  { %3625 = vmatpush3.bf16.msra.mxu0 %v4714_v53  ;;  %v2497_v30 = vpop.f32.mrf.mxu0 }
 0xc41   :  { %v4763_v53 = vpop.f32.mrf.mxu1  ;;  %v2498_v52 = vadd.f32 %v2497_v30, %v4776_v59 }
 0xc42   :  { %2751 = vmatmul.mubr.bf16.gmra.mxu1 %v4000_v61  ;;  %v2499_v21 = vpop.f32.mrf.mxu0 }
 0xc43   :  { %2959 = vmatprep.mubr.bf16.mxu1 %v4000_v61  ;;  %v4770_v57 = vpop.f32.mrf.mxu1  ;;  %v2500_v5 = vadd.f32 %v2499_v21, %v4787_v9  ;;  %v4811_v21 = vld [vmem:[%s4918_s12] ss:$0 sm:$0xff] }
 0xc44   :  { %v4772_v4 = vpop.f32.mrf.mxu0 }
 0xc46   :  { %v4780_v60 = vpop.f32.mrf.mxu0 }
 0xc48   :  { %v4789_v16 = vpop.f32.mrf.mxu0 }
 0xc4a   :  { %v4793_v42 = vpop.f32.mrf.mxu0 }
 0xcf2   :  { %v4797_v28 = vpop.f32.mrf.mxu0 }
 0xcf4   :  { %v4801_v1 = vpop.f32.mrf.mxu0 }
 0xcf6   :  { %v4778_v37 = vpop.f32.mrf.mxu1  ;;  %v4804_v47 = vpop.f32.mrf.mxu0 }
 0xcf8   :  { %v4782_v13 = vpop.f32.mrf.mxu1  ;;  %v4806_v27 = vpop.f32.mrf.mxu0 }
 0xcfa   :  { %v2742_v12 = vpop.f32.mrf.mxu1  ;;  %v3620_v0 = vpop.f32.mrf.mxu0 }
 0xcfb   :  { %v2810_v54 = vadd.f32 %v2742_v12, %v2480_v2 }
 0xcfc   :  { %v2744_v29 = vpop.f32.mrf.mxu1  ;;  %v2795_v6 = vpop.f32.mrf.mxu0 }
 0xcfd   :  { %v3246_v46 = vmul.f32 -1.442695, %v2810_v54  ;;  %v2838_v31 = vadd.f32 %v2744_v29, %v2482_v20 }
 0xcfe   :  { %v2746_v18 = vpop.f32.mrf.mxu1  ;;  %v3621_v2 = vpop.f32.mrf.mxu0 }
 0xcff   :  { %3825 = vpow2.f32 %v3246_v46  ;;  %v2811_v23 = vadd.f32 %v2746_v18, %v2486_v11  ;;  %v3250_v44 = vmul.f32 -1.442695, %v2838_v31  ;;  %v4815_v11 = vrot.slane %v4768_v34, %v4186_v3 }
 0xd00   :  { %v2748_v10 = vpop.f32.mrf.mxu1  ;;  %v2866_v46 = vadd.f32 %v4811_v21, %v2795_v6 }
 0xd01   :  { %v3247_v22 = vmul.f32 -1.442695, %v2811_v23  ;;  %v2839_v62 = vadd.f32 %v2748_v10, %v2488_v58  ;;  %v2798_v23 = vpop.f32.mrf.mxu0  ;;  %v2598_v34 = vadd.f32 %v4755_v26, %v4815_v11  ;;  %v2608_v26 = vadd.f32 %v4759_v38, %v4815_v11 }
 0xd02   :  { %v2752_v35 = vpop.f32.mrf.mxu1  ;;  %v2867_v58 = vadd.f32 %v4811_v21, %v2798_v23 }
 0xd03   :  { %3827 = vpow2.f32 %v3247_v22  ;;  %v2812_v19 = vadd.f32 %v2752_v35, %v2492_v43  ;;  %v3251_v40 = vmul.f32 -1.442695, %v2839_v62  ;;  %v2593_v43 = vadd.f32 %v4757_v39, %v4815_v11 }
 0xd04   :  { %v2754_v24 = vpop.f32.mrf.mxu1 }
 0xd05   :  { %v3248_v14 = vmul.f32 -1.442695, %v2812_v19  ;;  %v2840_v48 = vadd.f32 %v2754_v24, %v2494_v8  ;;  %v2868_v24 = vadd.f32 %v3620_v0, %v4811_v21 }
 0xd06   :  { %v2756_v36 = vpop.f32.mrf.mxu1 }
 0xd07   :  { %3829 = vpow2.f32 %v3248_v14  ;;  %v2813_v17 = vadd.f32 %v2756_v36, %v2498_v52  ;;  %v3252_v41 = vmul.f32 -1.442695, %v2840_v48  ;;  %v2603_v14 = vadd.f32 %v4761_v49, %v4815_v11 }
 0xd08   :  { %3831 = vpow2.f32 %v3250_v44  ;;  %v2758_v7 = vpop.f32.mrf.mxu1 }
 0xd09   :  { %v3249_v32 = vmul.f32 -1.442695, %v2813_v17  ;;  %v2841_v15 = vadd.f32 %v2758_v7, %v2500_v5  ;;  %v2869_v17 = vadd.f32 %v3621_v2, %v4811_v21 }
 0xd0b   :  { %3833 = vpow2.f32 %v3249_v32  ;;  %v3253_v33 = vmul.f32 -1.442695, %v2841_v15 }
 0xd0c   :  { %v3826_v55 = vpop.eup %3825  ;;  %3835 = vpow2.f32 %v3251_v40 }
 0xd0d   :  { %v2826_v63 = vadd.f32 1.0, %v3826_v55 }
 0xd0f   :  { %3837 = vrcp.f32 %v2826_v63 }
 0xd10   :  { %v3828_v45 = vpop.eup %3827  ;;  %3839 = vpow2.f32 %v3252_v41 }
 0xd11   :  { %v2827_v25 = vadd.f32 1.0, %v3828_v45 }
 0xd13   :  { %3841 = vrcp.f32 %v2827_v25 }
 0xd14   :  { %v3830_v51 = vpop.eup %3829  ;;  %3843 = vpow2.f32 %v3253_v33 }
 0xd15   :  { %v2828_v50 = vadd.f32 1.0, %v3830_v51  ;;  %v3832_v56 = vpop.eup %3831 }
 0xd16   :  { %v2854_v54 = vadd.f32 1.0, %v3832_v56 }
 0xd17   :  { %3845 = vrcp.f32 %v2828_v50 }
 0xd18   :  { %v3834_v30 = vpop.eup %3833 }
 0xd19   :  { %v3836_v12 = vpop.eup %3835  ;;  %v2829_v29 = vadd.f32 1.0, %v3834_v30 }
 0xd1a   :  { %v2855_v20 = vadd.f32 1.0, %v3836_v12 }
 0xd1b   :  { %3847 = vrcp.f32 %v2829_v29 }
 0xd1c   :  { %v3838_v18 = vpop.eup %3837  ;;  %3849 = vrcp.f32 %v2854_v54 }
 0xd1d   :  { %v3840_v10 = vpop.eup %3839  ;;  %v2870_v31 = vmul.f32 %v3838_v18, %v2866_v46  ;;  %3851 = vrcp.f32 %v2855_v20 }
 0xd1e   :  { %v2856_v19 = vadd.f32 1.0, %v3840_v10 }
 0xd1f   :  { %v2874_v22 = vadd.f32 %v2870_v31, %v2593_v43 }
 0xd20   :  { %v3842_v35 = vpop.eup %3841 }
 0xd21   :  { %v3844_v3 = vpop.eup %3843  ;;  %3853 = vtanh.f32 %v2874_v22  ;;  %v2871_v62 = vmul.f32 %v3842_v35, %v2867_v58  ;;  %v2510_v58 = vadd.f32 %v4789_v16, %v4776_v59 }
 0xd22   :  { %3855 = vrcp.f32 %v2856_v19  ;;  %v2857_v39 = vadd.f32 1.0, %v3844_v3  ;;  %v2506_v3 = vadd.f32 %v4780_v60, %v4787_v9 }
 0xd23   :  { %v2875_v52 = vadd.f32 %v2871_v62, %v2598_v34 }
 0xd24   :  { %v3846_v44 = vpop.eup %3845 }
 0xd25   :  { %v2872_v8 = vmul.f32 %v3846_v44, %v2868_v24  ;;  %3857 = vtanh.f32 %v2875_v52  ;;  %v2516_v24 = vadd.f32 %v4797_v28, %v4776_v59 }
 0xd26   :  { %3859 = vrcp.f32 %v2857_v39 }
 0xd27   :  { %v2876_v36 = vadd.f32 %v2872_v8, %v2603_v14 }
 0xd28   :  { %v3848_v40 = vpop.eup %3847 }
 0xd29   :  { %3861 = vtanh.f32 %v2876_v36  ;;  %v2873_v48 = vmul.f32 %v3848_v40, %v2869_v17  ;;  %v3850_v32 = vpop.eup %3849  ;;  %v2522_v36 = vadd.f32 %v4804_v47, %v4776_v59  ;;  %v2518_v40 = vadd.f32 %v4801_v1, %v4787_v9 }
 0xd2a   :  { %v3852_v5 = vpop.eup %3851  ;;  %v2882_v55 = vsub.f32 1.0, %v3850_v32  ;;  %v2890_v15 = vmul.f32 0.0, %v3850_v32 }
 0xd2b   :  { %v2877_v7 = vadd.f32 %v2873_v48, %v2608_v26  ;;  %v2883_v45 = vsub.f32 1.0, %v3852_v5  ;;  %v2891_v25 = vmul.f32 0.0, %v3852_v5  ;;  %v2524_v5 = vadd.f32 %v4806_v27, %v4787_v9 }
 0xd2d   :  { %3863 = vtanh.f32 %v2877_v7 }
 0xd2e   :  { %v3854_v41 = vpop.eup %3853 }
 0xd2f   :  { %v2886_v49 = vmul.f32 %v3854_v41, %v2882_v55  ;;  %v3856_v63 = vpop.eup %3855 }
 0xd30   :  { %v2884_v50 = vsub.f32 1.0, %v3856_v63  ;;  %v2892_v12 = vmul.f32 0.0, %v3856_v63 }
 0xd31   :  { %v4829_v33 = vadd.f32 %v2890_v15, %v2886_v49 }
 0xd32   :  { %v3858_v0 = vpop.eup %3857 }
 0xd33   :  { %2900 = vst [vmem:[%s4921_s15] sm:$0xff] %v4829_v33  ;;  %v2887_v38 = vmul.f32 %v3858_v0, %v2883_v45  ;;  %v3860_v51 = vpop.eup %3859 }
 0xd34   :  { %v2885_v54 = vsub.f32 1.0, %v3860_v51  ;;  %v2893_v20 = vmul.f32 0.0, %v3860_v51 }
 0xd35   :  { %v4835_v6 = vadd.f32 %v2891_v25, %v2887_v38 }
 0xd36   :  { %v3862_v56 = vpop.eup %3861 }
 0xd37   :  { %2901 = vst [vmem:[%s4921_s15 + $0x8] sm:$0xff] %v4835_v6  ;;  %v2919_v30 = vpack.c.bf16 %v4835_v6, %v4829_v33  ;;  %v2888_v2 = vmul.f32 %v3862_v56, %v2884_v50 }
 0xd39   :  { %3254 = vmatmul.mubr.msk.bf16.vlgmr.msra.gmra.mxu1 %vm471_vm1, %v2919_v30  ;;  %3626 = vmatprep.mubr.msk.bf16.mxu0 %vm471_vm1, %v2919_v30  ;;  %v4845_v29 = vadd.f32 %v2892_v12, %v2888_v2 }
 0xd3a   :  { %v3864_v46 = vpop.eup %3863  ;;  %2969 = vmatprep.mubr.bf16.mxu1 %v4000_v61  ;;  %v2504_v61 = vadd.f32 %v4772_v4, %v4776_v59  ;;  %v2512_v4 = vadd.f32 %v4793_v42, %v4787_v9 }
 0xd3b   :  { %v2889_v18 = vmul.f32 %v3864_v46, %v2885_v54  ;;  %2902 = vst [vmem:[%s4921_s15 + $0x10] sm:$0xff] %v4845_v29 }
 0xd3d   :  { %v4852_v23 = vadd.f32 %v2893_v20, %v2889_v18  ;;  %v2613_v18 = vadd.f32 %v4770_v57, %v4815_v11 }
 0xd3f   :  { %2903 = vst [vmem:[%s4921_s15 + $0x18] sm:$0xff] %v4852_v23  ;;  %v2920_v10 = vpack.c.bf16 %v4852_v23, %v4845_v29 }
 0xd41   :  { %3255 = vmatmul.mubr.msk.bf16.gmra.mxu1 %vm471_vm1, %v2920_v10  ;;  %3627 = vmatmul.mubr.msk.bf16.vlgmr.msra.gmra.mxu0 %vm471_vm1, %v2920_v10 }
 0xdf9   :  { %v2961_v43 = vpop.f32.mrf.mxu1 }
 0xdfa   :  { %v3029_v31 = vadd.f32 %v2961_v43, %v2504_v61 }
 0xdfb   :  { %v2963_v22 = vpop.f32.mrf.mxu1 }
 0xdfc   :  { %v3258_v35 = vmul.f32 -1.442695, %v3029_v31  ;;  %v3057_v52 = vadd.f32 %v2963_v22, %v2506_v3 }
 0xdfd   :  { %v2965_v19 = vpop.f32.mrf.mxu1 }
 0xdfe   :  { %3865 = vpow2.f32 %v3258_v35  ;;  %v3030_v34 = vadd.f32 %v2965_v19, %v2510_v58  ;;  %v3262_v60 = vmul.f32 -1.442695, %v3057_v52  ;;  %v2618_v58 = vadd.f32 %v4763_v53, %v4815_v11 }
 0xdff   :  { %v2967_v62 = vpop.f32.mrf.mxu1  ;;  %v2628_v53 = vadd.f32 %v4778_v37, %v4815_v11 }
 0xe00   :  { %v3259_v44 = vmul.f32 -1.442695, %v3030_v34  ;;  %v3058_v16 = vadd.f32 %v2967_v62, %v2512_v4  ;;  %v2623_v62 = vadd.f32 %v4782_v13, %v4815_v11 }
 0xe01   :  { %v2971_v39 = vpop.f32.mrf.mxu1  ;;  %v3628_v1 = vpop.f32.mrf.mxu0 }
 0xe02   :  { %3867 = vpow2.f32 %v3259_v44  ;;  %v3031_v14 = vadd.f32 %v2971_v39, %v2516_v24  ;;  %v3263_v48 = vmul.f32 -1.442695, %v3058_v16  ;;  %v3087_v19 = vadd.f32 %v3628_v1, %v4811_v21 }
 0xe03   :  { %v2973_v8 = vpop.f32.mrf.mxu1  ;;  %v3014_v0 = vpop.f32.mrf.mxu0 }
 0xe04   :  { %v3260_v17 = vmul.f32 -1.442695, %v3031_v14  ;;  %v3059_v32 = vadd.f32 %v2973_v8, %v2518_v40  ;;  %v3085_v30 = vadd.f32 %v4811_v21, %v3014_v0 }
 0xe05   :  { %v2975_v26 = vpop.f32.mrf.mxu1  ;;  %v3629_v27 = vpop.f32.mrf.mxu0 }
 0xe06   :  { %3869 = vpow2.f32 %v3260_v17  ;;  %v3032_v28 = vadd.f32 %v2975_v26, %v2522_v36  ;;  %v3264_v59 = vmul.f32 -1.442695, %v3059_v32  ;;  %v3088_v44 = vadd.f32 %v3629_v27, %v4811_v21 }
 0xe07   :  { %3871 = vpow2.f32 %v3262_v60  ;;  %v2977_v7 = vpop.f32.mrf.mxu1  ;;  %v3017_v54 = vpop.f32.mrf.mxu0 }
 0xe08   :  { %v3261_v42 = vmul.f32 -1.442695, %v3032_v28  ;;  %v3060_v47 = vadd.f32 %v2977_v7, %v2524_v5  ;;  %v3086_v61 = vadd.f32 %v4811_v21, %v3017_v54 }
 0xe0a   :  { %3873 = vpow2.f32 %v3261_v42  ;;  %v3265_v49 = vmul.f32 -1.442695, %v3060_v47 }
 0xe0b   :  { %v3866_v55 = vpop.eup %3865  ;;  %3875 = vpow2.f32 %v3263_v48 }
 0xe0c   :  { %v3045_v41 = vadd.f32 1.0, %v3866_v55 }
 0xe0e   :  { %3877 = vrcp.f32 %v3045_v41 }
 0xe0f   :  { %v3868_v15 = vpop.eup %3867  ;;  %3879 = vpow2.f32 %v3264_v59 }
 0xe10   :  { %v3046_v63 = vadd.f32 1.0, %v3868_v15 }
 0xe12   :  { %3881 = vrcp.f32 %v3046_v63 }
 0xe13   :  { %v3870_v45 = vpop.eup %3869  ;;  %3883 = vpow2.f32 %v3265_v49 }
 0xe14   :  { %v3047_v25 = vadd.f32 1.0, %v3870_v45  ;;  %v3872_v38 = vpop.eup %3871 }
 0xe15   :  { %v3073_v50 = vadd.f32 1.0, %v3872_v38 }
 0xe16   :  { %3885 = vrcp.f32 %v3047_v25 }
 0xe17   :  { %v3874_v9 = vpop.eup %3873 }
 0xe18   :  { %v3876_v51 = vpop.eup %3875  ;;  %v3048_v56 = vadd.f32 1.0, %v3874_v9 }
 0xe19   :  { %v3074_v12 = vadd.f32 1.0, %v3876_v51 }
 0xe1a   :  { %3887 = vrcp.f32 %v3048_v56 }
 0xe1b   :  { %v3878_v2 = vpop.eup %3877  ;;  %3889 = vrcp.f32 %v3073_v50 }
 0xe1c   :  { %v3880_v46 = vpop.eup %3879  ;;  %v3089_v20 = vmul.f32 %v3878_v2, %v3085_v30  ;;  %3891 = vrcp.f32 %v3074_v12 }
 0xe1d   :  { %v3075_v31 = vadd.f32 1.0, %v3880_v46 }
 0xe1e   :  { %v3093_v10 = vadd.f32 %v3089_v20, %v2613_v18 }
 0xe1f   :  { %v3882_v43 = vpop.eup %3881 }
 0xe20   :  { %v3884_v22 = vpop.eup %3883  ;;  %3893 = vtanh.f32 %v3093_v10  ;;  %v3090_v35 = vmul.f32 %v3882_v43, %v3086_v61 }
 0xe21   :  { %3895 = vrcp.f32 %v3075_v31  ;;  %v3076_v57 = vadd.f32 1.0, %v3884_v22 }
 0xe22   :  { %v3094_v3 = vadd.f32 %v3090_v35, %v2618_v58 }
 0xe23   :  { %v3886_v34 = vpop.eup %3885 }
 0xe24   :  { %v3091_v24 = vmul.f32 %v3886_v34, %v3087_v19  ;;  %3897 = vtanh.f32 %v3094_v3 }
 0xe25   :  { %3899 = vrcp.f32 %v3076_v57 }
 0xe26   :  { %v3095_v52 = vadd.f32 %v3091_v24, %v2623_v62 }
 0xe27   :  { %v3888_v4 = vpop.eup %3887 }
 0xe28   :  { %3901 = vtanh.f32 %v3095_v52  ;;  %v3092_v39 = vmul.f32 %v3888_v4, %v3088_v44  ;;  %v3890_v14 = vpop.eup %3889 }
 0xe29   :  { %v3892_v8 = vpop.eup %3891  ;;  %v3101_v36 = vsub.f32 1.0, %v3890_v14  ;;  %v3109_v13 = vmul.f32 %v3890_v14, %v4829_v33 }
 0xe2a   :  { %v3096_v16 = vadd.f32 %v3092_v39, %v2628_v53  ;;  %v3102_v26 = vsub.f32 1.0, %v3892_v8  ;;  %v3110_v48 = vmul.f32 %v3892_v8, %v4835_v6 }
 0xe2c   :  { %3903 = vtanh.f32 %v3096_v16 }
 0xe2d   :  { %v3894_v60 = vpop.eup %3893 }
 0xe2e   :  { %v3105_v17 = vmul.f32 %v3894_v60, %v3101_v36  ;;  %v3896_v40 = vpop.eup %3895 }
 0xe2f   :  { %v3103_v32 = vsub.f32 1.0, %v3896_v40  ;;  %v3111_v55 = vmul.f32 %v3896_v40, %v4845_v29 }
 0xe30   :  { %v3113_v28 = vadd.f32 %v3109_v13, %v3105_v17 }
 0xe31   :  { %v3898_v21 = vpop.eup %3897 }
 0xe32   :  { %3266 = vst [vmem:[%s4921_s15 + $0x20] sm:$0xff] %v3113_v28  ;;  %v3106_v37 = vmul.f32 %v3898_v21, %v3102_v26  ;;  %v3900_v11 = vpop.eup %3899 }
 0xe33   :  { %v3104_v59 = vsub.f32 1.0, %v3900_v11  ;;  %v3112_v41 = vmul.f32 %v3900_v11, %v4852_v23 }
 0xe34   :  { %v3114_v42 = vadd.f32 %v3110_v48, %v3106_v37 }
 0xe35   :  { %v3902_v7 = vpop.eup %3901 }
 0xe36   :  { %v3107_v5 = vmul.f32 %v3902_v7, %v3103_v32  ;;  %3267 = vst [vmem:[%s4921_s15 + $0x28] sm:$0xff] %v3114_v42 }
 0xe38   :  { %v3115_v33 = vadd.f32 %v3111_v55, %v3107_v5 }
 0xe39   :  { %v3904_v47 = vpop.eup %3903 }
 0xe3a   :  { %3268 = vst [vmem:[%s4921_s15 + $0x30] sm:$0xff] %v3115_v33  ;;  %v3108_v6 = vmul.f32 %v3904_v47, %v3104_v59 }
 0xe3c   :  { %v3116_v15 = vadd.f32 %v3112_v41, %v3108_v6 }
 0xe3e   :  { %3269 = vst [vmem:[%s4921_s15 + $0x38] sm:$0xff] %v3116_v15 }
 0xe3f   :  { %3135 = vsyncpa [#allocation4], 1 }
 0xe40   :  { %3136 = vsyncpa [#allocation6], 1 }
 0xe41   :  { %3137 = vsyncpa [#allocation9], 1 }

</bundles_post_ra>
